<compile_context>
chip_gen: v7x
topology: tpu7x:2x2x1
jax: 0.10.0
libtpu: 0.0.40
codegen_flags: <defaults>
</compile_context>

<pallas_src>
import math

import jax
import jax.numpy as jnp
from jax.experimental import pallas as pl
from jax.experimental.pallas import tpu as pltpu

# ----------------------------------------------------------------------------
# Scaled-down ViT config (structure identical to torchvision vit_b_16 with a
# 12-way head; full model is img=224, patch=16, dim=768, layers=12, heads=12,
# mlp=3072 -- too big for this demo).
# ----------------------------------------------------------------------------
BATCH = 2
IN_CH = 3
IMG = 32
PATCH = 16
DIM = 128            # hidden dim (lane-aligned)
HEADS = 4
HEAD_DIM = DIM // HEADS
MLP = 256
LAYERS = 2
NUM_CLASSES = 12
NC_PAD = 128         # lane-padded head width (lane-dense store; slice 12 cols outside)
N_PATCHES = (IMG // PATCH) ** 2
SEQ = N_PATCHES + 1              # +1 class token (= 5)
SEQ_PAD = 8                      # sublane-aligned sequence length
PATCH_DIM = IN_CH * PATCH * PATCH
LN_EPS = 1e-6                    # torchvision ViT uses LayerNorm(eps=1e-6)
ATT_SCALE = 1.0 / math.sqrt(HEAD_DIM)

GRID_STEPS = 1                   # 1 fused step (v5e/v6e optimum); v7x: see TODO above
IMGS_PER_STEP = BATCH // GRID_STEPS
ROWS = IMGS_PER_STEP * SEQ_PAD   # batch-folded row count per grid step


# ----------------------------------------------------------------------------
# Fused ViT forward kernel: whole (padded) batch per grid step, all weights and
# activations resident in VMEM, batch-folded matmuls.
# ----------------------------------------------------------------------------
def _fused_vit_kernel(
    patches_ref,                                   # (ROWS, PATCH_DIM); cls/pad rows are zero
    emb_ref,                                       # (SEQ_PAD, DIM) fused cls/pos/conv-bias rows
    w_patch_ref,                                   # (PATCH_DIM, DIM) bf16
    ln1_g_ref, ln1_b_ref, qkv_w_ref, qkv_b_ref,    # per-layer stacks (leading dim = LAYERS)
    out_w_ref, out_b_ref, ln2_g_ref, ln2_b_ref,
    w1_ref, b1_ref, w2_ref, b2_ref,
    lnf_g_ref, lnf_b_ref, head_w_ref, head_b_ref,  # final LN + lane-padded head
    logits_ref,                                    # (IMGS_PER_STEP, NC_PAD)
    attn_ref,                                      # VMEM scratch (ROWS, DIM) f32: head concat
):
    f32 = jnp.float32
    bf16 = jnp.bfloat16

    def layernorm(x, g, b):
        mu = jnp.mean(x, axis=-1, keepdims=True)
        var = jnp.mean(jnp.square(x - mu), axis=-1, keepdims=True)
        return (x - mu) * jax.lax.rsqrt(var + LN_EPS) * g + b

    # additive mask for the SEQ_PAD-SEQ zero-pad key columns (hoisted out of loops)
    col = jax.lax.broadcasted_iota(jnp.int32, (SEQ_PAD, SEQ_PAD), 1)
    key_bias = jnp.where(col < SEQ, 0.0, -1e30).astype(f32)

    # --- patch embedding: Conv2d(k=16, s=16) == patchify (wrapper) + one matmul.
    # Class token, positional embedding and the conv bias are pre-folded into
    # emb_ref (the cls/pad input rows are zero), so no iota/where splice here.
    tok = jnp.dot(patches_ref[...].astype(bf16), w_patch_ref[...],
                  preferred_element_type=f32)                               # (ROWS, DIM)
    h = (tok.reshape(IMGS_PER_STEP, SEQ_PAD, DIM) + emb_ref[...]).reshape(ROWS, DIM)

    # --- pre-LN transformer encoder blocks (static unroll over layers/heads) ---
    for l in range(LAYERS):
        # attention block: x + out_proj(MHA(LN(x)))
        y = layernorm(h, ln1_g_ref[l], ln1_b_ref[l])
        qkv = (jnp.dot(y.astype(bf16), qkv_w_ref[l],
                       preferred_element_type=f32) + qkv_b_ref[l])          # (ROWS, 3*DIM)
        for hh in range(HEADS):
            lo = hh * HEAD_DIM
            q = qkv[:, lo:lo + HEAD_DIM].reshape(IMGS_PER_STEP, SEQ_PAD, HEAD_DIM)
            k = qkv[:, DIM + lo:DIM + lo + HEAD_DIM].reshape(IMGS_PER_STEP, SEQ_PAD, HEAD_DIM)
            v = qkv[:, 2 * DIM + lo:2 * DIM + lo + HEAD_DIM].reshape(
                IMGS_PER_STEP, SEQ_PAD, HEAD_DIM)
            # image-batched scores, contracting last dims (no explicit transpose)
            s = jnp.einsum('bqd,bkd->bqk', q.astype(bf16), k.astype(bf16),
                           preferred_element_type=f32) * ATT_SCALE + key_bias
            s = s - jnp.max(s, axis=-1, keepdims=True)
            e = jnp.exp(s)
            p = e * pl.reciprocal(jnp.sum(e, axis=-1, keepdims=True), approx=True)
            o_h = jnp.einsum('bqk,bkd->bqd', p.astype(bf16), v.astype(bf16),
                             preferred_element_type=f32)                    # (B, S, HEAD_DIM)
            # head concat via lane-slice store into scratch (no partial matmuls)
            attn_ref[:, lo:lo + HEAD_DIM] = o_h.reshape(ROWS, HEAD_DIM)
        # single full (ROWS,128)@(128,128) out-projection per layer
        h = h + jnp.dot(attn_ref[...].astype(bf16), out_w_ref[l],
                        preferred_element_type=f32) + out_b_ref[l]

        # MLP block: x + W2(GELU(W1(LN(x))))
        y = layernorm(h, ln2_g_ref[l], ln2_b_ref[l])
        y = jnp.dot(y.astype(bf16), w1_ref[l], preferred_element_type=f32) + b1_ref[l]
        # exact (erf-based) GELU, matching torch.nn.GELU() default
        y = 0.5 * y * (1.0 + jax.lax.erf(y * (1.0 / math.sqrt(2.0))))
        y = jnp.dot(y.astype(bf16), w2_ref[l], preferred_element_type=f32) + b2_ref[l]
        h = h + y

    # --- final LayerNorm on the class-token rows only, lane-padded 12-way head ---
    cls = h.reshape(IMGS_PER_STEP, SEQ_PAD, DIM)[:, 0, :]                   # (IMGS, DIM)
    cls = layernorm(cls, lnf_g_ref[...], lnf_b_ref[...])
    logits_ref[...] = (jnp.dot(cls.astype(bf16), head_w_ref[...],
                               preferred_element_type=f32) + head_b_ref[...])


_WEIGHT_ORDER = (
    "w_patch",
    "ln1_g", "ln1_b", "qkv_w", "qkv_b", "out_w", "out_b",
    "ln2_g", "ln2_b", "w1", "b1", "w2", "b2",
    "lnf_g", "lnf_b", "head_w", "head_b",
)


def fused_vit(patches_flat, emb, params):
    """patches_flat: (B*SEQ_PAD, PATCH_DIM) with zero cls/pad rows. Returns (B, NC_PAD)."""
    weights = [params[k] for k in _WEIGHT_ORDER]

    def whole(arr):  # full-array block, resident in VMEM across all grid steps
        return pl.BlockSpec(arr.shape, lambda i, _n=arr.ndim: (0,) * _n)

    in_specs = [pl.BlockSpec((ROWS, PATCH_DIM), lambda i: (i, 0)), whole(emb)]
    in_specs += [whole(w) for w in weights]

    return pl.pallas_call(
        _fused_vit_kernel,
        out_shape=jax.ShapeDtypeStruct((BATCH, NC_PAD), jnp.float32),
        grid=(GRID_STEPS,),
        in_specs=in_specs,
        out_specs=pl.BlockSpec((IMGS_PER_STEP, NC_PAD), lambda i: (i, 0)),
        scratch_shapes=[pltpu.VMEM((ROWS, DIM), jnp.float32)],
        compiler_params=pltpu.CompilerParams(
            dimension_semantics=("parallel",)),   # TC split if GRID_STEPS>1 (v7x)
    )(patches_flat, emb, *weights)


# ----------------------------------------------------------------------------
# Parameters (deterministic synthetic init, layer params stacked along LAYERS;
# matmul weights stored in bf16, biases/LN params in f32)
# ----------------------------------------------------------------------------
def init_params(key):
    ks = jax.random.split(key, 8)

    def nrm(k, shape, std=0.02, dtype=jnp.bfloat16):
        return (std * jax.random.normal(k, shape, dtype=jnp.float32)).astype(dtype)

    head_w = nrm(ks[3], (DIM, NUM_CLASSES), dtype=jnp.float32)
    return {
        # conv_proj: Conv2d(3, D, kernel=16, stride=16) == patchify + matmul
        "w_patch": nrm(ks[0], (PATCH_DIM, DIM)),
        "b_patch": jnp.zeros((1, DIM), jnp.float32),
        "cls": nrm(ks[1], (1, 1, DIM), dtype=jnp.float32),
        "pos": nrm(ks[2], (1, SEQ, DIM), dtype=jnp.float32),
        "lnf_g": jnp.ones((1, DIM), jnp.float32),
        "lnf_b": jnp.zeros((1, DIM), jnp.float32),
        # head is zero-padded to 128 lanes for a lane-dense in-kernel store
        "head_w": jnp.pad(head_w, ((0, 0), (0, NC_PAD - NUM_CLASSES))).astype(jnp.bfloat16),
        "head_b": jnp.zeros((1, NC_PAD), jnp.float32),
        # per-layer stacks
        "ln1_g": jnp.ones((LAYERS, 1, DIM), jnp.float32),
        "ln1_b": jnp.zeros((LAYERS, 1, DIM), jnp.float32),
        "qkv_w": nrm(ks[4], (LAYERS, DIM, 3 * DIM)),      # in_proj (q|k|v stacked)
        "qkv_b": jnp.zeros((LAYERS, 1, 3 * DIM), jnp.float32),
        "out_w": nrm(ks[5], (LAYERS, DIM, DIM)),
        "out_b": jnp.zeros((LAYERS, 1, DIM), jnp.float32),
        "ln2_g": jnp.ones((LAYERS, 1, DIM), jnp.float32),
        "ln2_b": jnp.zeros((LAYERS, 1, DIM), jnp.float32),
        "w1": nrm(ks[6], (LAYERS, DIM, MLP)),
        "b1": jnp.zeros((LAYERS, 1, MLP), jnp.float32),
        "w2": nrm(ks[7], (LAYERS, MLP, DIM)),
        "b2": jnp.zeros((LAYERS, 1, DIM), jnp.float32),
    }


def _build_emb(params):
    """Fuse class token, positional embedding and conv bias into one (SEQ_PAD, DIM)
    per-row additive embedding (the cls/pad input rows fed to the kernel are zero)."""
    pos = params["pos"][0]                                   # (SEQ, DIM)
    cls_row = (params["cls"][0, 0] + pos[0])[None, :]        # class-token row
    patch_rows = pos[1:] + params["b_patch"]                 # conv bias folded in
    pad_rows = jnp.zeros((SEQ_PAD - SEQ, DIM), jnp.float32)  # pad rows stay exactly zero
    return jnp.concatenate([cls_row, patch_rows, pad_rows], axis=0)


# ----------------------------------------------------------------------------
# Forward pass (== ConvClassifier.forward)
# ----------------------------------------------------------------------------
def conv_classifier_forward(params, x):
    B = x.shape[0]
    nh = x.shape[2] // PATCH
    nw = x.shape[3] // PATCH

    # patchify (pure layout, stays in XLA): flatten each 16x16 patch in
    # (C, ph, pw) order to match the torch conv weight layout.
    patches = x.reshape(B, IN_CH, nh, PATCH, nw, PATCH)
    patches = patches.transpose(0, 2, 4, 1, 3, 5).reshape(B, nh * nw, PATCH_DIM)
    # row 0 = class-token placeholder, rows SEQ..SEQ_PAD-1 = sublane pad (masked keys)
    patches = jnp.pad(patches, ((0, 0), (1, SEQ_PAD - 1 - N_PATCHES), (0, 0)))
    patches = patches.reshape(B * SEQ_PAD, PATCH_DIM)        # batch-folded rows

    emb = _build_emb(params)
    logits_pad = fused_vit(patches, emb, params)             # (B, NC_PAD)
    return logits_pad[:, :NUM_CLASSES]


if __name__ == "__main__":
    key = jax.random.PRNGKey(0)
    pkey, xkey = jax.random.split(key)
    params = init_params(pkey)
    x = jax.random.normal(xkey, (BATCH, IN_CH, IMG, IMG), dtype=jnp.float32)

    logits = jax.jit(conv_classifier_forward)(params, x)
    jax.block_until_ready(logits)
    assert logits.shape == (BATCH, NUM_CLASSES), logits.shape
    assert logits.dtype == jnp.float32
    print("KERNEL_OK")
</pallas_src>

<mosaic_0001>
module attributes {stable_mosaic.version = 11 : i64} {
  func.func @_fused_vit_kernel(%arg0: i32, %arg1: memref<16x768xf32, #tpu.memory_space<vmem>>, %arg2: memref<8x128xf32, #tpu.memory_space<vmem>>, %arg3: memref<768x128xbf16, #tpu.memory_space<vmem>>, %arg4: memref<2x1x128xf32, #tpu.memory_space<vmem>>, %arg5: memref<2x1x128xf32, #tpu.memory_space<vmem>>, %arg6: memref<2x128x384xbf16, #tpu.memory_space<vmem>>, %arg7: memref<2x1x384xf32, #tpu.memory_space<vmem>>, %arg8: memref<2x128x128xbf16, #tpu.memory_space<vmem>>, %arg9: memref<2x1x128xf32, #tpu.memory_space<vmem>>, %arg10: memref<2x1x128xf32, #tpu.memory_space<vmem>>, %arg11: memref<2x1x128xf32, #tpu.memory_space<vmem>>, %arg12: memref<2x128x256xbf16, #tpu.memory_space<vmem>>, %arg13: memref<2x1x256xf32, #tpu.memory_space<vmem>>, %arg14: memref<2x256x128xbf16, #tpu.memory_space<vmem>>, %arg15: memref<2x1x128xf32, #tpu.memory_space<vmem>>, %arg16: memref<1x128xf32, #tpu.memory_space<vmem>>, %arg17: memref<1x128xf32, #tpu.memory_space<vmem>>, %arg18: memref<128x128xbf16, #tpu.memory_space<vmem>>, %arg19: memref<1x128xf32, #tpu.memory_space<vmem>>, %arg20: memref<2x128xf32, #tpu.memory_space<vmem>>, %arg21: memref<16x128xf32, #tpu.memory_space<vmem>>) attributes {dimension_semantics = [#tpu.dimension_semantics<parallel>], iteration_bounds = array<i64: 1>, scalar_prefetch = 0 : i64, scratch_operands = 1 : i64, tpu.core_type = #tpu.core_type<tc>, window_params = [{transform_indices = @transform_0, window_bounds = array<i64: 16, 768>}, {pipeline_mode = #tpu.pipeline_mode<synchronous>, transform_indices = @transform_1, window_bounds = array<i64: 8, 128>}, {pipeline_mode = #tpu.pipeline_mode<synchronous>, transform_indices = @transform_2, window_bounds = array<i64: 768, 128>}, {pipeline_mode = #tpu.pipeline_mode<synchronous>, transform_indices = @transform_3, window_bounds = array<i64: 2, 1, 128>}, {pipeline_mode = #tpu.pipeline_mode<synchronous>, transform_indices = @transform_4, window_bounds = array<i64: 2, 1, 128>}, {pipeline_mode = #tpu.pipeline_mode<synchronous>, transform_indices = @transform_5, window_bounds = array<i64: 2, 128, 384>}, {pipeline_mode = #tpu.pipeline_mode<synchronous>, transform_indices = @transform_6, window_bounds = array<i64: 2, 1, 384>}, {pipeline_mode = #tpu.pipeline_mode<synchronous>, transform_indices = @transform_7, window_bounds = array<i64: 2, 128, 128>}, {pipeline_mode = #tpu.pipeline_mode<synchronous>, transform_indices = @transform_8, window_bounds = array<i64: 2, 1, 128>}, {pipeline_mode = #tpu.pipeline_mode<synchronous>, transform_indices = @transform_9, window_bounds = array<i64: 2, 1, 128>}, {pipeline_mode = #tpu.pipeline_mode<synchronous>, transform_indices = @transform_10, window_bounds = array<i64: 2, 1, 128>}, {pipeline_mode = #tpu.pipeline_mode<synchronous>, transform_indices = @transform_11, window_bounds = array<i64: 2, 128, 256>}, {pipeline_mode = #tpu.pipeline_mode<synchronous>, transform_indices = @transform_12, window_bounds = array<i64: 2, 1, 256>}, {pipeline_mode = #tpu.pipeline_mode<synchronous>, transform_indices = @transform_13, window_bounds = array<i64: 2, 256, 128>}, {pipeline_mode = #tpu.pipeline_mode<synchronous>, transform_indices = @transform_14, window_bounds = array<i64: 2, 1, 128>}, {pipeline_mode = #tpu.pipeline_mode<synchronous>, transform_indices = @transform_15, window_bounds = array<i64: 1, 128>}, {pipeline_mode = #tpu.pipeline_mode<synchronous>, transform_indices = @transform_16, window_bounds = array<i64: 1, 128>}, {pipeline_mode = #tpu.pipeline_mode<synchronous>, transform_indices = @transform_17, window_bounds = array<i64: 128, 128>}, {pipeline_mode = #tpu.pipeline_mode<synchronous>, transform_indices = @transform_18, window_bounds = array<i64: 1, 128>}, {transform_indices = @transform_19, window_bounds = array<i64: 2, 128>}]} {
    %0 = tpu.iota {dimensions = array<i32: 1>} : vector<8x8xi32>
    %c5_i32 = arith.constant 5 : i32
    %1 = vector.broadcast %c5_i32 : i32 to vector<8x8xi32>
    %2 = arith.cmpi slt, %0, %1 : vector<8x8xi32>
    %cst = arith.constant 0.000000e+00 : f32
    %cst_0 = arith.constant -1.000000e+30 : f32
    %3 = vector.broadcast %cst : f32 to vector<8x8xf32>
    %4 = vector.broadcast %cst_0 : f32 to vector<8x8xf32>
    %5 = arith.select %2, %3, %4 : vector<8x8xi1>, vector<8x8xf32>
    %c0 = arith.constant 0 : index
    %c0_1 = arith.constant 0 : index
    %6 = vector.load %arg1[%c0, %c0_1] : memref<16x768xf32, #tpu.memory_space<vmem>>, vector<16x768xf32>
    %7 = arith.truncf %6 : vector<16x768xf32> to vector<16x768xbf16>
    %c0_2 = arith.constant 0 : index
    %c0_3 = arith.constant 0 : index
    %8 = vector.load %arg3[%c0_2, %c0_3] : memref<768x128xbf16, #tpu.memory_space<vmem>>, vector<768x128xbf16>
    %cst_4 = arith.constant dense<0.000000e+00> : vector<16x128xf32>
    %9 = tpu.matmul %7, %8, %cst_4 {dimension_numbers = #tpu.dot_dimension_numbers<[1], [0], [0], [1], [0, 0, 1, 1], [], []>} : vector<16x768xbf16>, vector<768x128xbf16>, vector<16x128xf32> -> vector<16x128xf32>
    %10 = vector.shape_cast %9 : vector<16x128xf32> to vector<2x8x128xf32>
    %c0_5 = arith.constant 0 : index
    %c0_6 = arith.constant 0 : index
    %11 = vector.load %arg2[%c0_5, %c0_6] : memref<8x128xf32, #tpu.memory_space<vmem>>, vector<8x128xf32>
    %12 = vector.shape_cast %11 : vector<8x128xf32> to vector<1x8x128xf32>
    %13 = vector.broadcast %12 : vector<1x8x128xf32> to vector<2x8x128xf32>
    %14 = arith.addf %10, %13 : vector<2x8x128xf32>
    %15 = vector.shape_cast %14 : vector<2x8x128xf32> to vector<16x128xf32>
    %c0_7 = arith.constant 0 : index
    %c0_8 = arith.constant 0 : index
    %c0_9 = arith.constant 0 : index
    %16 = vector.load %arg4[%c0_7, %c0_8, %c0_9] : memref<2x1x128xf32, #tpu.memory_space<vmem>>, vector<1x1x128xf32>
    %17 = vector.shape_cast %16 : vector<1x1x128xf32> to vector<1x128xf32>
    %c0_10 = arith.constant 0 : index
    %c0_11 = arith.constant 0 : index
    %c0_12 = arith.constant 0 : index
    %18 = vector.load %arg5[%c0_10, %c0_11, %c0_12] : memref<2x1x128xf32, #tpu.memory_space<vmem>>, vector<1x1x128xf32>
    %19 = vector.shape_cast %18 : vector<1x1x128xf32> to vector<1x128xf32>
    %cst_13 = arith.constant dense<0.000000e+00> : vector<16xf32>
    %20 = vector.multi_reduction <add>, %15, %cst_13 [1] : vector<16x128xf32> to vector<16xf32>
    %21 = vector.shape_cast %20 : vector<16xf32> to vector<16x1xf32>
    %cst_14 = arith.constant 1.280000e+02 : f32
    %22 = vector.broadcast %cst_14 : f32 to vector<16x1xf32>
    %23 = arith.divf %21, %22 : vector<16x1xf32>
    %24 = vector.broadcast %23 : vector<16x1xf32> to vector<16x128xf32>
    %25 = arith.subf %15, %24 : vector<16x128xf32>
    %26 = arith.mulf %25, %25 : vector<16x128xf32>
    %cst_15 = arith.constant dense<0.000000e+00> : vector<16xf32>
    %27 = vector.multi_reduction <add>, %26, %cst_15 [1] : vector<16x128xf32> to vector<16xf32>
    %28 = vector.shape_cast %27 : vector<16xf32> to vector<16x1xf32>
    %cst_16 = arith.constant 1.280000e+02 : f32
    %29 = vector.broadcast %cst_16 : f32 to vector<16x1xf32>
    %30 = arith.divf %28, %29 : vector<16x1xf32>
    %31 = vector.broadcast %23 : vector<16x1xf32> to vector<16x128xf32>
    %32 = arith.subf %15, %31 : vector<16x128xf32>
    %cst_17 = arith.constant 9.99999997E-7 : f32
    %33 = vector.broadcast %cst_17 : f32 to vector<16x1xf32>
    %34 = arith.addf %30, %33 : vector<16x1xf32>
    %35 = math.rsqrt %34 : vector<16x1xf32>
    %36 = vector.broadcast %35 : vector<16x1xf32> to vector<16x128xf32>
    %37 = arith.mulf %32, %36 : vector<16x128xf32>
    %38 = vector.broadcast %17 : vector<1x128xf32> to vector<16x128xf32>
    %39 = arith.mulf %37, %38 : vector<16x128xf32>
    %40 = vector.broadcast %19 : vector<1x128xf32> to vector<16x128xf32>
    %41 = arith.addf %39, %40 : vector<16x128xf32>
    %42 = arith.truncf %41 : vector<16x128xf32> to vector<16x128xbf16>
    %c0_18 = arith.constant 0 : index
    %c0_19 = arith.constant 0 : index
    %c0_20 = arith.constant 0 : index
    %43 = vector.load %arg6[%c0_18, %c0_19, %c0_20] : memref<2x128x384xbf16, #tpu.memory_space<vmem>>, vector<1x128x384xbf16>
    %44 = vector.shape_cast %43 : vector<1x128x384xbf16> to vector<128x384xbf16>
    %cst_21 = arith.constant dense<0.000000e+00> : vector<16x384xf32>
    %45 = tpu.matmul %42, %44, %cst_21 {dimension_numbers = #tpu.dot_dimension_numbers<[1], [0], [0], [1], [0, 0, 1, 1], [], []>} : vector<16x128xbf16>, vector<128x384xbf16>, vector<16x384xf32> -> vector<16x384xf32>
    %c0_22 = arith.constant 0 : index
    %c0_23 = arith.constant 0 : index
    %c0_24 = arith.constant 0 : index
    %46 = vector.load %arg7[%c0_22, %c0_23, %c0_24] : memref<2x1x384xf32, #tpu.memory_space<vmem>>, vector<1x1x384xf32>
    %47 = vector.shape_cast %46 : vector<1x1x384xf32> to vector<1x384xf32>
    %48 = vector.broadcast %47 : vector<1x384xf32> to vector<16x384xf32>
    %49 = arith.addf %45, %48 : vector<16x384xf32>
    %50 = vector.extract_strided_slice %49 {offsets = [0, 0], sizes = [16, 32], strides = [1, 1]} : vector<16x384xf32> to vector<16x32xf32>
    %51 = vector.shape_cast %50 : vector<16x32xf32> to vector<2x8x32xf32>
    %52 = vector.extract_strided_slice %49 {offsets = [0, 128], sizes = [16, 32], strides = [1, 1]} : vector<16x384xf32> to vector<16x32xf32>
    %53 = vector.shape_cast %52 : vector<16x32xf32> to vector<2x8x32xf32>
    %54 = vector.extract_strided_slice %49 {offsets = [0, 256], sizes = [16, 32], strides = [1, 1]} : vector<16x384xf32> to vector<16x32xf32>
    %55 = vector.shape_cast %54 : vector<16x32xf32> to vector<2x8x32xf32>
    %56 = arith.truncf %51 : vector<2x8x32xf32> to vector<2x8x32xbf16>
    %57 = arith.truncf %53 : vector<2x8x32xf32> to vector<2x8x32xbf16>
    "tpu.trace_start"() <{level = 10 : i32, message = "bqd,bkd->bqk"}> : () -> ()
    %cst_25 = arith.constant dense<0.000000e+00> : vector<2x8x8xf32>
    %58 = tpu.matmul %56, %57, %cst_25 {dimension_numbers = #tpu.dot_dimension_numbers<[2], [2], [1], [1], [0, 0, 0, 1, 1, 1], [0], [0]>} : vector<2x8x32xbf16>, vector<2x8x32xbf16>, vector<2x8x8xf32> -> vector<2x8x8xf32>
    "tpu.trace_stop"() : () -> ()
    %cst_26 = arith.constant 0.176776692 : f32
    %59 = vector.broadcast %cst_26 : f32 to vector<2x8x8xf32>
    %60 = arith.mulf %58, %59 : vector<2x8x8xf32>
    %61 = vector.shape_cast %5 : vector<8x8xf32> to vector<1x8x8xf32>
    %62 = vector.broadcast %61 : vector<1x8x8xf32> to vector<2x8x8xf32>
    %63 = arith.addf %60, %62 : vector<2x8x8xf32>
    %cst_27 = arith.constant dense<0xFF800000> : vector<2x8xf32>
    %64 = vector.multi_reduction <maximumf>, %63, %cst_27 [2] : vector<2x8x8xf32> to vector<2x8xf32>
    %65 = vector.shape_cast %64 : vector<2x8xf32> to vector<2x8x1xf32>
    %66 = vector.broadcast %65 : vector<2x8x1xf32> to vector<2x8x8xf32>
    %67 = arith.subf %63, %66 : vector<2x8x8xf32>
    %68 = math.exp %67 : vector<2x8x8xf32>
    %cst_28 = arith.constant dense<0.000000e+00> : vector<2x8xf32>
    %69 = vector.multi_reduction <add>, %68, %cst_28 [2] : vector<2x8x8xf32> to vector<2x8xf32>
    %70 = vector.shape_cast %69 : vector<2x8xf32> to vector<2x8x1xf32>
    %71 = tpu.reciprocal %70 {approx = true} : vector<2x8x1xf32> -> vector<2x8x1xf32>
    %72 = vector.broadcast %71 : vector<2x8x1xf32> to vector<2x8x8xf32>
    %73 = arith.mulf %68, %72 : vector<2x8x8xf32>
    %74 = arith.truncf %73 : vector<2x8x8xf32> to vector<2x8x8xbf16>
    %75 = arith.truncf %55 : vector<2x8x32xf32> to vector<2x8x32xbf16>
    "tpu.trace_start"() <{level = 10 : i32, message = "bqk,bkd->bqd"}> : () -> ()
    %cst_29 = arith.constant dense<0.000000e+00> : vector<2x8x32xf32>
    %76 = tpu.matmul %74, %75, %cst_29 {dimension_numbers = #tpu.dot_dimension_numbers<[2], [1], [1], [2], [0, 0, 0, 1, 1, 2], [0], [0]>} : vector<2x8x8xbf16>, vector<2x8x32xbf16>, vector<2x8x32xf32> -> vector<2x8x32xf32>
    "tpu.trace_stop"() : () -> ()
    %77 = vector.shape_cast %76 : vector<2x8x32xf32> to vector<16x32xf32>
    %c0_30 = arith.constant 0 : index
    %c0_31 = arith.constant 0 : index
    %78 = vector.load %arg21[%c0_30, %c0_31] : memref<16x128xf32, #tpu.memory_space<vmem>>, vector<16x32xf32>
    tpu.vector_store %arg21[%c0_30, %c0_31], %77 {strides = array<i32>} : memref<16x128xf32, #tpu.memory_space<vmem>>, vector<16x32xf32>,
    %79 = vector.extract_strided_slice %49 {offsets = [0, 32], sizes = [16, 32], strides = [1, 1]} : vector<16x384xf32> to vector<16x32xf32>
    %80 = vector.shape_cast %79 : vector<16x32xf32> to vector<2x8x32xf32>
    %81 = vector.extract_strided_slice %49 {offsets = [0, 160], sizes = [16, 32], strides = [1, 1]} : vector<16x384xf32> to vector<16x32xf32>
    %82 = vector.shape_cast %81 : vector<16x32xf32> to vector<2x8x32xf32>
    %83 = vector.extract_strided_slice %49 {offsets = [0, 288], sizes = [16, 32], strides = [1, 1]} : vector<16x384xf32> to vector<16x32xf32>
    %84 = vector.shape_cast %83 : vector<16x32xf32> to vector<2x8x32xf32>
    %85 = arith.truncf %80 : vector<2x8x32xf32> to vector<2x8x32xbf16>
    %86 = arith.truncf %82 : vector<2x8x32xf32> to vector<2x8x32xbf16>
    "tpu.trace_start"() <{level = 10 : i32, message = "bqd,bkd->bqk"}> : () -> ()
    %cst_32 = arith.constant dense<0.000000e+00> : vector<2x8x8xf32>
    %87 = tpu.matmul %85, %86, %cst_32 {dimension_numbers = #tpu.dot_dimension_numbers<[2], [2], [1], [1], [0, 0, 0, 1, 1, 1], [0], [0]>} : vector<2x8x32xbf16>, vector<2x8x32xbf16>, vector<2x8x8xf32> -> vector<2x8x8xf32>
    "tpu.trace_stop"() : () -> ()
    %cst_33 = arith.constant 0.176776692 : f32
    %88 = vector.broadcast %cst_33 : f32 to vector<2x8x8xf32>
    %89 = arith.mulf %87, %88 : vector<2x8x8xf32>
    %90 = vector.shape_cast %5 : vector<8x8xf32> to vector<1x8x8xf32>
    %91 = vector.broadcast %90 : vector<1x8x8xf32> to vector<2x8x8xf32>
    %92 = arith.addf %89, %91 : vector<2x8x8xf32>
    %cst_34 = arith.constant dense<0xFF800000> : vector<2x8xf32>
    %93 = vector.multi_reduction <maximumf>, %92, %cst_34 [2] : vector<2x8x8xf32> to vector<2x8xf32>
    %94 = vector.shape_cast %93 : vector<2x8xf32> to vector<2x8x1xf32>
    %95 = vector.broadcast %94 : vector<2x8x1xf32> to vector<2x8x8xf32>
    %96 = arith.subf %92, %95 : vector<2x8x8xf32>
    %97 = math.exp %96 : vector<2x8x8xf32>
    %cst_35 = arith.constant dense<0.000000e+00> : vector<2x8xf32>
    %98 = vector.multi_reduction <add>, %97, %cst_35 [2] : vector<2x8x8xf32> to vector<2x8xf32>
    %99 = vector.shape_cast %98 : vector<2x8xf32> to vector<2x8x1xf32>
    %100 = tpu.reciprocal %99 {approx = true} : vector<2x8x1xf32> -> vector<2x8x1xf32>
    %101 = vector.broadcast %100 : vector<2x8x1xf32> to vector<2x8x8xf32>
    %102 = arith.mulf %97, %101 : vector<2x8x8xf32>
    %103 = arith.truncf %102 : vector<2x8x8xf32> to vector<2x8x8xbf16>
    %104 = arith.truncf %84 : vector<2x8x32xf32> to vector<2x8x32xbf16>
    "tpu.trace_start"() <{level = 10 : i32, message = "bqk,bkd->bqd"}> : () -> ()
    %cst_36 = arith.constant dense<0.000000e+00> : vector<2x8x32xf32>
    %105 = tpu.matmul %103, %104, %cst_36 {dimension_numbers = #tpu.dot_dimension_numbers<[2], [1], [1], [2], [0, 0, 0, 1, 1, 2], [0], [0]>} : vector<2x8x8xbf16>, vector<2x8x32xbf16>, vector<2x8x32xf32> -> vector<2x8x32xf32>
    "tpu.trace_stop"() : () -> ()
    %106 = vector.shape_cast %105 : vector<2x8x32xf32> to vector<16x32xf32>
    %c0_37 = arith.constant 0 : index
    %c32 = arith.constant 32 : index
    %107 = vector.load %arg21[%c0_37, %c32] : memref<16x128xf32, #tpu.memory_space<vmem>>, vector<16x32xf32>
    tpu.vector_store %arg21[%c0_37, %c32], %106 {strides = array<i32>} : memref<16x128xf32, #tpu.memory_space<vmem>>, vector<16x32xf32>,
    %108 = vector.extract_strided_slice %49 {offsets = [0, 64], sizes = [16, 32], strides = [1, 1]} : vector<16x384xf32> to vector<16x32xf32>
    %109 = vector.shape_cast %108 : vector<16x32xf32> to vector<2x8x32xf32>
    %110 = vector.extract_strided_slice %49 {offsets = [0, 192], sizes = [16, 32], strides = [1, 1]} : vector<16x384xf32> to vector<16x32xf32>
    %111 = vector.shape_cast %110 : vector<16x32xf32> to vector<2x8x32xf32>
    %112 = vector.extract_strided_slice %49 {offsets = [0, 320], sizes = [16, 32], strides = [1, 1]} : vector<16x384xf32> to vector<16x32xf32>
    %113 = vector.shape_cast %112 : vector<16x32xf32> to vector<2x8x32xf32>
    %114 = arith.truncf %109 : vector<2x8x32xf32> to vector<2x8x32xbf16>
    %115 = arith.truncf %111 : vector<2x8x32xf32> to vector<2x8x32xbf16>
    "tpu.trace_start"() <{level = 10 : i32, message = "bqd,bkd->bqk"}> : () -> ()
    %cst_38 = arith.constant dense<0.000000e+00> : vector<2x8x8xf32>
    %116 = tpu.matmul %114, %115, %cst_38 {dimension_numbers = #tpu.dot_dimension_numbers<[2], [2], [1], [1], [0, 0, 0, 1, 1, 1], [0], [0]>} : vector<2x8x32xbf16>, vector<2x8x32xbf16>, vector<2x8x8xf32> -> vector<2x8x8xf32>
    "tpu.trace_stop"() : () -> ()
    %cst_39 = arith.constant 0.176776692 : f32
    %117 = vector.broadcast %cst_39 : f32 to vector<2x8x8xf32>
    %118 = arith.mulf %116, %117 : vector<2x8x8xf32>
    %119 = vector.shape_cast %5 : vector<8x8xf32> to vector<1x8x8xf32>
    %120 = vector.broadcast %119 : vector<1x8x8xf32> to vector<2x8x8xf32>
    %121 = arith.addf %118, %120 : vector<2x8x8xf32>
    %cst_40 = arith.constant dense<0xFF800000> : vector<2x8xf32>
    %122 = vector.multi_reduction <maximumf>, %121, %cst_40 [2] : vector<2x8x8xf32> to vector<2x8xf32>
    %123 = vector.shape_cast %122 : vector<2x8xf32> to vector<2x8x1xf32>
    %124 = vector.broadcast %123 : vector<2x8x1xf32> to vector<2x8x8xf32>
    %125 = arith.subf %121, %124 : vector<2x8x8xf32>
    %126 = math.exp %125 : vector<2x8x8xf32>
    %cst_41 = arith.constant dense<0.000000e+00> : vector<2x8xf32>
    %127 = vector.multi_reduction <add>, %126, %cst_41 [2] : vector<2x8x8xf32> to vector<2x8xf32>
    %128 = vector.shape_cast %127 : vector<2x8xf32> to vector<2x8x1xf32>
    %129 = tpu.reciprocal %128 {approx = true} : vector<2x8x1xf32> -> vector<2x8x1xf32>
    %130 = vector.broadcast %129 : vector<2x8x1xf32> to vector<2x8x8xf32>
    %131 = arith.mulf %126, %130 : vector<2x8x8xf32>
    %132 = arith.truncf %131 : vector<2x8x8xf32> to vector<2x8x8xbf16>
    %133 = arith.truncf %113 : vector<2x8x32xf32> to vector<2x8x32xbf16>
    "tpu.trace_start"() <{level = 10 : i32, message = "bqk,bkd->bqd"}> : () -> ()
    %cst_42 = arith.constant dense<0.000000e+00> : vector<2x8x32xf32>
    %134 = tpu.matmul %132, %133, %cst_42 {dimension_numbers = #tpu.dot_dimension_numbers<[2], [1], [1], [2], [0, 0, 0, 1, 1, 2], [0], [0]>} : vector<2x8x8xbf16>, vector<2x8x32xbf16>, vector<2x8x32xf32> -> vector<2x8x32xf32>
    "tpu.trace_stop"() : () -> ()
    %135 = vector.shape_cast %134 : vector<2x8x32xf32> to vector<16x32xf32>
    %c0_43 = arith.constant 0 : index
    %c64 = arith.constant 64 : index
    %136 = vector.load %arg21[%c0_43, %c64] : memref<16x128xf32, #tpu.memory_space<vmem>>, vector<16x32xf32>
    tpu.vector_store %arg21[%c0_43, %c64], %135 {strides = array<i32>} : memref<16x128xf32, #tpu.memory_space<vmem>>, vector<16x32xf32>,
    %137 = vector.extract_strided_slice %49 {offsets = [0, 96], sizes = [16, 32], strides = [1, 1]} : vector<16x384xf32> to vector<16x32xf32>
    %138 = vector.shape_cast %137 : vector<16x32xf32> to vector<2x8x32xf32>
    %139 = vector.extract_strided_slice %49 {offsets = [0, 224], sizes = [16, 32], strides = [1, 1]} : vector<16x384xf32> to vector<16x32xf32>
    %140 = vector.shape_cast %139 : vector<16x32xf32> to vector<2x8x32xf32>
    %141 = vector.extract_strided_slice %49 {offsets = [0, 352], sizes = [16, 32], strides = [1, 1]} : vector<16x384xf32> to vector<16x32xf32>
    %142 = vector.shape_cast %141 : vector<16x32xf32> to vector<2x8x32xf32>
    %143 = arith.truncf %138 : vector<2x8x32xf32> to vector<2x8x32xbf16>
    %144 = arith.truncf %140 : vector<2x8x32xf32> to vector<2x8x32xbf16>
    "tpu.trace_start"() <{level = 10 : i32, message = "bqd,bkd->bqk"}> : () -> ()
    %cst_44 = arith.constant dense<0.000000e+00> : vector<2x8x8xf32>
    %145 = tpu.matmul %143, %144, %cst_44 {dimension_numbers = #tpu.dot_dimension_numbers<[2], [2], [1], [1], [0, 0, 0, 1, 1, 1], [0], [0]>} : vector<2x8x32xbf16>, vector<2x8x32xbf16>, vector<2x8x8xf32> -> vector<2x8x8xf32>
    "tpu.trace_stop"() : () -> ()
    %cst_45 = arith.constant 0.176776692 : f32
    %146 = vector.broadcast %cst_45 : f32 to vector<2x8x8xf32>
    %147 = arith.mulf %145, %146 : vector<2x8x8xf32>
    %148 = vector.shape_cast %5 : vector<8x8xf32> to vector<1x8x8xf32>
    %149 = vector.broadcast %148 : vector<1x8x8xf32> to vector<2x8x8xf32>
    %150 = arith.addf %147, %149 : vector<2x8x8xf32>
    %cst_46 = arith.constant dense<0xFF800000> : vector<2x8xf32>
    %151 = vector.multi_reduction <maximumf>, %150, %cst_46 [2] : vector<2x8x8xf32> to vector<2x8xf32>
    %152 = vector.shape_cast %151 : vector<2x8xf32> to vector<2x8x1xf32>
    %153 = vector.broadcast %152 : vector<2x8x1xf32> to vector<2x8x8xf32>
    %154 = arith.subf %150, %153 : vector<2x8x8xf32>
    %155 = math.exp %154 : vector<2x8x8xf32>
    %cst_47 = arith.constant dense<0.000000e+00> : vector<2x8xf32>
    %156 = vector.multi_reduction <add>, %155, %cst_47 [2] : vector<2x8x8xf32> to vector<2x8xf32>
    %157 = vector.shape_cast %156 : vector<2x8xf32> to vector<2x8x1xf32>
    %158 = tpu.reciprocal %157 {approx = true} : vector<2x8x1xf32> -> vector<2x8x1xf32>
    %159 = vector.broadcast %158 : vector<2x8x1xf32> to vector<2x8x8xf32>
    %160 = arith.mulf %155, %159 : vector<2x8x8xf32>
    %161 = arith.truncf %160 : vector<2x8x8xf32> to vector<2x8x8xbf16>
    %162 = arith.truncf %142 : vector<2x8x32xf32> to vector<2x8x32xbf16>
    "tpu.trace_start"() <{level = 10 : i32, message = "bqk,bkd->bqd"}> : () -> ()
    %cst_48 = arith.constant dense<0.000000e+00> : vector<2x8x32xf32>
    %163 = tpu.matmul %161, %162, %cst_48 {dimension_numbers = #tpu.dot_dimension_numbers<[2], [1], [1], [2], [0, 0, 0, 1, 1, 2], [0], [0]>} : vector<2x8x8xbf16>, vector<2x8x32xbf16>, vector<2x8x32xf32> -> vector<2x8x32xf32>
    "tpu.trace_stop"() : () -> ()
    %164 = vector.shape_cast %163 : vector<2x8x32xf32> to vector<16x32xf32>
    %c0_49 = arith.constant 0 : index
    %c96 = arith.constant 96 : index
    %165 = vector.load %arg21[%c0_49, %c96] : memref<16x128xf32, #tpu.memory_space<vmem>>, vector<16x32xf32>
    tpu.vector_store %arg21[%c0_49, %c96], %164 {strides = array<i32>} : memref<16x128xf32, #tpu.memory_space<vmem>>, vector<16x32xf32>,
    %c0_50 = arith.constant 0 : index
    %c0_51 = arith.constant 0 : index
    %166 = vector.load %arg21[%c0_50, %c0_51] : memref<16x128xf32, #tpu.memory_space<vmem>>, vector<16x128xf32>
    %167 = arith.truncf %166 : vector<16x128xf32> to vector<16x128xbf16>
    %c0_52 = arith.constant 0 : index
    %c0_53 = arith.constant 0 : index
    %c0_54 = arith.constant 0 : index
    %168 = vector.load %arg8[%c0_52, %c0_53, %c0_54] : memref<2x128x128xbf16, #tpu.memory_space<vmem>>, vector<1x128x128xbf16>
    %169 = vector.shape_cast %168 : vector<1x128x128xbf16> to vector<128x128xbf16>
    %cst_55 = arith.constant dense<0.000000e+00> : vector<16x128xf32>
    %170 = tpu.matmul %167, %169, %cst_55 {dimension_numbers = #tpu.dot_dimension_numbers<[1], [0], [0], [1], [0, 0, 1, 1], [], []>} : vector<16x128xbf16>, vector<128x128xbf16>, vector<16x128xf32> -> vector<16x128xf32>
    %171 = arith.addf %15, %170 : vector<16x128xf32>
    %c0_56 = arith.constant 0 : index
    %c0_57 = arith.constant 0 : index
    %c0_58 = arith.constant 0 : index
    %172 = vector.load %arg9[%c0_56, %c0_57, %c0_58] : memref<2x1x128xf32, #tpu.memory_space<vmem>>, vector<1x1x128xf32>
    %173 = vector.shape_cast %172 : vector<1x1x128xf32> to vector<1x128xf32>
    %174 = vector.broadcast %173 : vector<1x128xf32> to vector<16x128xf32>
    %175 = arith.addf %171, %174 : vector<16x128xf32>
    %c0_59 = arith.constant 0 : index
    %c0_60 = arith.constant 0 : index
    %c0_61 = arith.constant 0 : index
    %176 = vector.load %arg10[%c0_59, %c0_60, %c0_61] : memref<2x1x128xf32, #tpu.memory_space<vmem>>, vector<1x1x128xf32>
    %177 = vector.shape_cast %176 : vector<1x1x128xf32> to vector<1x128xf32>
    %c0_62 = arith.constant 0 : index
    %c0_63 = arith.constant 0 : index
    %c0_64 = arith.constant 0 : index
    %178 = vector.load %arg11[%c0_62, %c0_63, %c0_64] : memref<2x1x128xf32, #tpu.memory_space<vmem>>, vector<1x1x128xf32>
    %179 = vector.shape_cast %178 : vector<1x1x128xf32> to vector<1x128xf32>
    %cst_65 = arith.constant dense<0.000000e+00> : vector<16xf32>
    %180 = vector.multi_reduction <add>, %175, %cst_65 [1] : vector<16x128xf32> to vector<16xf32>
    %181 = vector.shape_cast %180 : vector<16xf32> to vector<16x1xf32>
    %cst_66 = arith.constant 1.280000e+02 : f32
    %182 = vector.broadcast %cst_66 : f32 to vector<16x1xf32>
    %183 = arith.divf %181, %182 : vector<16x1xf32>
    %184 = vector.broadcast %183 : vector<16x1xf32> to vector<16x128xf32>
    %185 = arith.subf %175, %184 : vector<16x128xf32>
    %186 = arith.mulf %185, %185 : vector<16x128xf32>
    %cst_67 = arith.constant dense<0.000000e+00> : vector<16xf32>
    %187 = vector.multi_reduction <add>, %186, %cst_67 [1] : vector<16x128xf32> to vector<16xf32>
    %188 = vector.shape_cast %187 : vector<16xf32> to vector<16x1xf32>
    %cst_68 = arith.constant 1.280000e+02 : f32
    %189 = vector.broadcast %cst_68 : f32 to vector<16x1xf32>
    %190 = arith.divf %188, %189 : vector<16x1xf32>
    %191 = vector.broadcast %183 : vector<16x1xf32> to vector<16x128xf32>
    %192 = arith.subf %175, %191 : vector<16x128xf32>
    %cst_69 = arith.constant 9.99999997E-7 : f32
    %193 = vector.broadcast %cst_69 : f32 to vector<16x1xf32>
    %194 = arith.addf %190, %193 : vector<16x1xf32>
    %195 = math.rsqrt %194 : vector<16x1xf32>
    %196 = vector.broadcast %195 : vector<16x1xf32> to vector<16x128xf32>
    %197 = arith.mulf %192, %196 : vector<16x128xf32>
    %198 = vector.broadcast %177 : vector<1x128xf32> to vector<16x128xf32>
    %199 = arith.mulf %197, %198 : vector<16x128xf32>
    %200 = vector.broadcast %179 : vector<1x128xf32> to vector<16x128xf32>
    %201 = arith.addf %199, %200 : vector<16x128xf32>
    %202 = arith.truncf %201 : vector<16x128xf32> to vector<16x128xbf16>
    %c0_70 = arith.constant 0 : index
    %c0_71 = arith.constant 0 : index
    %c0_72 = arith.constant 0 : index
    %203 = vector.load %arg12[%c0_70, %c0_71, %c0_72] : memref<2x128x256xbf16, #tpu.memory_space<vmem>>, vector<1x128x256xbf16>
    %204 = vector.shape_cast %203 : vector<1x128x256xbf16> to vector<128x256xbf16>
    %cst_73 = arith.constant dense<0.000000e+00> : vector<16x256xf32>
    %205 = tpu.matmul %202, %204, %cst_73 {dimension_numbers = #tpu.dot_dimension_numbers<[1], [0], [0], [1], [0, 0, 1, 1], [], []>} : vector<16x128xbf16>, vector<128x256xbf16>, vector<16x256xf32> -> vector<16x256xf32>
    %c0_74 = arith.constant 0 : index
    %c0_75 = arith.constant 0 : index
    %c0_76 = arith.constant 0 : index
    %206 = vector.load %arg13[%c0_74, %c0_75, %c0_76] : memref<2x1x256xf32, #tpu.memory_space<vmem>>, vector<1x1x256xf32>
    %207 = vector.shape_cast %206 : vector<1x1x256xf32> to vector<1x256xf32>
    %208 = vector.broadcast %207 : vector<1x256xf32> to vector<16x256xf32>
    %209 = arith.addf %205, %208 : vector<16x256xf32>
    %cst_77 = arith.constant 5.000000e-01 : f32
    %210 = vector.broadcast %cst_77 : f32 to vector<16x256xf32>
    %211 = arith.mulf %210, %209 : vector<16x256xf32>
    %cst_78 = arith.constant 0.707106769 : f32
    %212 = vector.broadcast %cst_78 : f32 to vector<16x256xf32>
    %213 = arith.mulf %209, %212 : vector<16x256xf32>
    %214 = math.erf %213 : vector<16x256xf32>
    %cst_79 = arith.constant 1.000000e+00 : f32
    %215 = vector.broadcast %cst_79 : f32 to vector<16x256xf32>
    %216 = arith.addf %215, %214 : vector<16x256xf32>
    %217 = arith.mulf %211, %216 : vector<16x256xf32>
    %218 = arith.truncf %217 : vector<16x256xf32> to vector<16x256xbf16>
    %c0_80 = arith.constant 0 : index
    %c0_81 = arith.constant 0 : index
    %c0_82 = arith.constant 0 : index
    %219 = vector.load %arg14[%c0_80, %c0_81, %c0_82] : memref<2x256x128xbf16, #tpu.memory_space<vmem>>, vector<1x256x128xbf16>
    %220 = vector.shape_cast %219 : vector<1x256x128xbf16> to vector<256x128xbf16>
    %cst_83 = arith.constant dense<0.000000e+00> : vector<16x128xf32>
    %221 = tpu.matmul %218, %220, %cst_83 {dimension_numbers = #tpu.dot_dimension_numbers<[1], [0], [0], [1], [0, 0, 1, 1], [], []>} : vector<16x256xbf16>, vector<256x128xbf16>, vector<16x128xf32> -> vector<16x128xf32>
    %c0_84 = arith.constant 0 : index
    %c0_85 = arith.constant 0 : index
    %c0_86 = arith.constant 0 : index
    %222 = vector.load %arg15[%c0_84, %c0_85, %c0_86] : memref<2x1x128xf32, #tpu.memory_space<vmem>>, vector<1x1x128xf32>
    %223 = vector.shape_cast %222 : vector<1x1x128xf32> to vector<1x128xf32>
    %224 = vector.broadcast %223 : vector<1x128xf32> to vector<16x128xf32>
    %225 = arith.addf %221, %224 : vector<16x128xf32>
    %226 = arith.addf %175, %225 : vector<16x128xf32>
    %c1 = arith.constant 1 : index
    %c0_87 = arith.constant 0 : index
    %c0_88 = arith.constant 0 : index
    %227 = vector.load %arg4[%c1, %c0_87, %c0_88] : memref<2x1x128xf32, #tpu.memory_space<vmem>>, vector<1x1x128xf32>
    %228 = vector.shape_cast %227 : vector<1x1x128xf32> to vector<1x128xf32>
    %c1_89 = arith.constant 1 : index
    %c0_90 = arith.constant 0 : index
    %c0_91 = arith.constant 0 : index
    %229 = vector.load %arg5[%c1_89, %c0_90, %c0_91] : memref<2x1x128xf32, #tpu.memory_space<vmem>>, vector<1x1x128xf32>
    %230 = vector.shape_cast %229 : vector<1x1x128xf32> to vector<1x128xf32>
    %cst_92 = arith.constant dense<0.000000e+00> : vector<16xf32>
    %231 = vector.multi_reduction <add>, %226, %cst_92 [1] : vector<16x128xf32> to vector<16xf32>
    %232 = vector.shape_cast %231 : vector<16xf32> to vector<16x1xf32>
    %cst_93 = arith.constant 1.280000e+02 : f32
    %233 = vector.broadcast %cst_93 : f32 to vector<16x1xf32>
    %234 = arith.divf %232, %233 : vector<16x1xf32>
    %235 = vector.broadcast %234 : vector<16x1xf32> to vector<16x128xf32>
    %236 = arith.subf %226, %235 : vector<16x128xf32>
    %237 = arith.mulf %236, %236 : vector<16x128xf32>
    %cst_94 = arith.constant dense<0.000000e+00> : vector<16xf32>
    %238 = vector.multi_reduction <add>, %237, %cst_94 [1] : vector<16x128xf32> to vector<16xf32>
    %239 = vector.shape_cast %238 : vector<16xf32> to vector<16x1xf32>
    %cst_95 = arith.constant 1.280000e+02 : f32
    %240 = vector.broadcast %cst_95 : f32 to vector<16x1xf32>
    %241 = arith.divf %239, %240 : vector<16x1xf32>
    %242 = vector.broadcast %234 : vector<16x1xf32> to vector<16x128xf32>
    %243 = arith.subf %226, %242 : vector<16x128xf32>
    %cst_96 = arith.constant 9.99999997E-7 : f32
    %244 = vector.broadcast %cst_96 : f32 to vector<16x1xf32>
    %245 = arith.addf %241, %244 : vector<16x1xf32>
    %246 = math.rsqrt %245 : vector<16x1xf32>
    %247 = vector.broadcast %246 : vector<16x1xf32> to vector<16x128xf32>
    %248 = arith.mulf %243, %247 : vector<16x128xf32>
    %249 = vector.broadcast %228 : vector<1x128xf32> to vector<16x128xf32>
    %250 = arith.mulf %248, %249 : vector<16x128xf32>
    %251 = vector.broadcast %230 : vector<1x128xf32> to vector<16x128xf32>
    %252 = arith.addf %250, %251 : vector<16x128xf32>
    %253 = arith.truncf %252 : vector<16x128xf32> to vector<16x128xbf16>
    %c1_97 = arith.constant 1 : index
    %c0_98 = arith.constant 0 : index
    %c0_99 = arith.constant 0 : index
    %254 = vector.load %arg6[%c1_97, %c0_98, %c0_99] : memref<2x128x384xbf16, #tpu.memory_space<vmem>>, vector<1x128x384xbf16>
    %255 = vector.shape_cast %254 : vector<1x128x384xbf16> to vector<128x384xbf16>
    %cst_100 = arith.constant dense<0.000000e+00> : vector<16x384xf32>
    %256 = tpu.matmul %253, %255, %cst_100 {dimension_numbers = #tpu.dot_dimension_numbers<[1], [0], [0], [1], [0, 0, 1, 1], [], []>} : vector<16x128xbf16>, vector<128x384xbf16>, vector<16x384xf32> -> vector<16x384xf32>
    %c1_101 = arith.constant 1 : index
    %c0_102 = arith.constant 0 : index
    %c0_103 = arith.constant 0 : index
    %257 = vector.load %arg7[%c1_101, %c0_102, %c0_103] : memref<2x1x384xf32, #tpu.memory_space<vmem>>, vector<1x1x384xf32>
    %258 = vector.shape_cast %257 : vector<1x1x384xf32> to vector<1x384xf32>
    %259 = vector.broadcast %258 : vector<1x384xf32> to vector<16x384xf32>
    %260 = arith.addf %256, %259 : vector<16x384xf32>
    %261 = vector.extract_strided_slice %260 {offsets = [0, 0], sizes = [16, 32], strides = [1, 1]} : vector<16x384xf32> to vector<16x32xf32>
    %262 = vector.shape_cast %261 : vector<16x32xf32> to vector<2x8x32xf32>
    %263 = vector.extract_strided_slice %260 {offsets = [0, 128], sizes = [16, 32], strides = [1, 1]} : vector<16x384xf32> to vector<16x32xf32>
    %264 = vector.shape_cast %263 : vector<16x32xf32> to vector<2x8x32xf32>
    %265 = vector.extract_strided_slice %260 {offsets = [0, 256], sizes = [16, 32], strides = [1, 1]} : vector<16x384xf32> to vector<16x32xf32>
    %266 = vector.shape_cast %265 : vector<16x32xf32> to vector<2x8x32xf32>
    %267 = arith.truncf %262 : vector<2x8x32xf32> to vector<2x8x32xbf16>
    %268 = arith.truncf %264 : vector<2x8x32xf32> to vector<2x8x32xbf16>
    "tpu.trace_start"() <{level = 10 : i32, message = "bqd,bkd->bqk"}> : () -> ()
    %cst_104 = arith.constant dense<0.000000e+00> : vector<2x8x8xf32>
    %269 = tpu.matmul %267, %268, %cst_104 {dimension_numbers = #tpu.dot_dimension_numbers<[2], [2], [1], [1], [0, 0, 0, 1, 1, 1], [0], [0]>} : vector<2x8x32xbf16>, vector<2x8x32xbf16>, vector<2x8x8xf32> -> vector<2x8x8xf32>
    "tpu.trace_stop"() : () -> ()
    %cst_105 = arith.constant 0.176776692 : f32
    %270 = vector.broadcast %cst_105 : f32 to vector<2x8x8xf32>
    %271 = arith.mulf %269, %270 : vector<2x8x8xf32>
    %272 = vector.shape_cast %5 : vector<8x8xf32> to vector<1x8x8xf32>
    %273 = vector.broadcast %272 : vector<1x8x8xf32> to vector<2x8x8xf32>
    %274 = arith.addf %271, %273 : vector<2x8x8xf32>
    %cst_106 = arith.constant dense<0xFF800000> : vector<2x8xf32>
    %275 = vector.multi_reduction <maximumf>, %274, %cst_106 [2] : vector<2x8x8xf32> to vector<2x8xf32>
    %276 = vector.shape_cast %275 : vector<2x8xf32> to vector<2x8x1xf32>
    %277 = vector.broadcast %276 : vector<2x8x1xf32> to vector<2x8x8xf32>
    %278 = arith.subf %274, %277 : vector<2x8x8xf32>
    %279 = math.exp %278 : vector<2x8x8xf32>
    %cst_107 = arith.constant dense<0.000000e+00> : vector<2x8xf32>
    %280 = vector.multi_reduction <add>, %279, %cst_107 [2] : vector<2x8x8xf32> to vector<2x8xf32>
    %281 = vector.shape_cast %280 : vector<2x8xf32> to vector<2x8x1xf32>
    %282 = tpu.reciprocal %281 {approx = true} : vector<2x8x1xf32> -> vector<2x8x1xf32>
    %283 = vector.broadcast %282 : vector<2x8x1xf32> to vector<2x8x8xf32>
    %284 = arith.mulf %279, %283 : vector<2x8x8xf32>
    %285 = arith.truncf %284 : vector<2x8x8xf32> to vector<2x8x8xbf16>
    %286 = arith.truncf %266 : vector<2x8x32xf32> to vector<2x8x32xbf16>
    "tpu.trace_start"() <{level = 10 : i32, message = "bqk,bkd->bqd"}> : () -> ()
    %cst_108 = arith.constant dense<0.000000e+00> : vector<2x8x32xf32>
    %287 = tpu.matmul %285, %286, %cst_108 {dimension_numbers = #tpu.dot_dimension_numbers<[2], [1], [1], [2], [0, 0, 0, 1, 1, 2], [0], [0]>} : vector<2x8x8xbf16>, vector<2x8x32xbf16>, vector<2x8x32xf32> -> vector<2x8x32xf32>
    "tpu.trace_stop"() : () -> ()
    %288 = vector.shape_cast %287 : vector<2x8x32xf32> to vector<16x32xf32>
    %c0_109 = arith.constant 0 : index
    %c0_110 = arith.constant 0 : index
    %289 = vector.load %arg21[%c0_109, %c0_110] : memref<16x128xf32, #tpu.memory_space<vmem>>, vector<16x32xf32>
    tpu.vector_store %arg21[%c0_109, %c0_110], %288 {strides = array<i32>} : memref<16x128xf32, #tpu.memory_space<vmem>>, vector<16x32xf32>,
    %290 = vector.extract_strided_slice %260 {offsets = [0, 32], sizes = [16, 32], strides = [1, 1]} : vector<16x384xf32> to vector<16x32xf32>
    %291 = vector.shape_cast %290 : vector<16x32xf32> to vector<2x8x32xf32>
    %292 = vector.extract_strided_slice %260 {offsets = [0, 160], sizes = [16, 32], strides = [1, 1]} : vector<16x384xf32> to vector<16x32xf32>
    %293 = vector.shape_cast %292 : vector<16x32xf32> to vector<2x8x32xf32>
    %294 = vector.extract_strided_slice %260 {offsets = [0, 288], sizes = [16, 32], strides = [1, 1]} : vector<16x384xf32> to vector<16x32xf32>
    %295 = vector.shape_cast %294 : vector<16x32xf32> to vector<2x8x32xf32>
    %296 = arith.truncf %291 : vector<2x8x32xf32> to vector<2x8x32xbf16>
    %297 = arith.truncf %293 : vector<2x8x32xf32> to vector<2x8x32xbf16>
    "tpu.trace_start"() <{level = 10 : i32, message = "bqd,bkd->bqk"}> : () -> ()
    %cst_111 = arith.constant dense<0.000000e+00> : vector<2x8x8xf32>
    %298 = tpu.matmul %296, %297, %cst_111 {dimension_numbers = #tpu.dot_dimension_numbers<[2], [2], [1], [1], [0, 0, 0, 1, 1, 1], [0], [0]>} : vector<2x8x32xbf16>, vector<2x8x32xbf16>, vector<2x8x8xf32> -> vector<2x8x8xf32>
    "tpu.trace_stop"() : () -> ()
    %cst_112 = arith.constant 0.176776692 : f32
    %299 = vector.broadcast %cst_112 : f32 to vector<2x8x8xf32>
    %300 = arith.mulf %298, %299 : vector<2x8x8xf32>
    %301 = vector.shape_cast %5 : vector<8x8xf32> to vector<1x8x8xf32>
    %302 = vector.broadcast %301 : vector<1x8x8xf32> to vector<2x8x8xf32>
    %303 = arith.addf %300, %302 : vector<2x8x8xf32>
    %cst_113 = arith.constant dense<0xFF800000> : vector<2x8xf32>
    %304 = vector.multi_reduction <maximumf>, %303, %cst_113 [2] : vector<2x8x8xf32> to vector<2x8xf32>
    %305 = vector.shape_cast %304 : vector<2x8xf32> to vector<2x8x1xf32>
    %306 = vector.broadcast %305 : vector<2x8x1xf32> to vector<2x8x8xf32>
    %307 = arith.subf %303, %306 : vector<2x8x8xf32>
    %308 = math.exp %307 : vector<2x8x8xf32>
    %cst_114 = arith.constant dense<0.000000e+00> : vector<2x8xf32>
    %309 = vector.multi_reduction <add>, %308, %cst_114 [2] : vector<2x8x8xf32> to vector<2x8xf32>
    %310 = vector.shape_cast %309 : vector<2x8xf32> to vector<2x8x1xf32>
    %311 = tpu.reciprocal %310 {approx = true} : vector<2x8x1xf32> -> vector<2x8x1xf32>
    %312 = vector.broadcast %311 : vector<2x8x1xf32> to vector<2x8x8xf32>
    %313 = arith.mulf %308, %312 : vector<2x8x8xf32>
    %314 = arith.truncf %313 : vector<2x8x8xf32> to vector<2x8x8xbf16>
    %315 = arith.truncf %295 : vector<2x8x32xf32> to vector<2x8x32xbf16>
    "tpu.trace_start"() <{level = 10 : i32, message = "bqk,bkd->bqd"}> : () -> ()
    %cst_115 = arith.constant dense<0.000000e+00> : vector<2x8x32xf32>
    %316 = tpu.matmul %314, %315, %cst_115 {dimension_numbers = #tpu.dot_dimension_numbers<[2], [1], [1], [2], [0, 0, 0, 1, 1, 2], [0], [0]>} : vector<2x8x8xbf16>, vector<2x8x32xbf16>, vector<2x8x32xf32> -> vector<2x8x32xf32>
    "tpu.trace_stop"() : () -> ()
    %317 = vector.shape_cast %316 : vector<2x8x32xf32> to vector<16x32xf32>
    %c0_116 = arith.constant 0 : index
    %c32_117 = arith.constant 32 : index
    %318 = vector.load %arg21[%c0_116, %c32_117] : memref<16x128xf32, #tpu.memory_space<vmem>>, vector<16x32xf32>
    tpu.vector_store %arg21[%c0_116, %c32_117], %317 {strides = array<i32>} : memref<16x128xf32, #tpu.memory_space<vmem>>, vector<16x32xf32>,
    %319 = vector.extract_strided_slice %260 {offsets = [0, 64], sizes = [16, 32], strides = [1, 1]} : vector<16x384xf32> to vector<16x32xf32>
    %320 = vector.shape_cast %319 : vector<16x32xf32> to vector<2x8x32xf32>
    %321 = vector.extract_strided_slice %260 {offsets = [0, 192], sizes = [16, 32], strides = [1, 1]} : vector<16x384xf32> to vector<16x32xf32>
    %322 = vector.shape_cast %321 : vector<16x32xf32> to vector<2x8x32xf32>
    %323 = vector.extract_strided_slice %260 {offsets = [0, 320], sizes = [16, 32], strides = [1, 1]} : vector<16x384xf32> to vector<16x32xf32>
    %324 = vector.shape_cast %323 : vector<16x32xf32> to vector<2x8x32xf32>
    %325 = arith.truncf %320 : vector<2x8x32xf32> to vector<2x8x32xbf16>
    %326 = arith.truncf %322 : vector<2x8x32xf32> to vector<2x8x32xbf16>
    "tpu.trace_start"() <{level = 10 : i32, message = "bqd,bkd->bqk"}> : () -> ()
    %cst_118 = arith.constant dense<0.000000e+00> : vector<2x8x8xf32>
    %327 = tpu.matmul %325, %326, %cst_118 {dimension_numbers = #tpu.dot_dimension_numbers<[2], [2], [1], [1], [0, 0, 0, 1, 1, 1], [0], [0]>} : vector<2x8x32xbf16>, vector<2x8x32xbf16>, vector<2x8x8xf32> -> vector<2x8x8xf32>
    "tpu.trace_stop"() : () -> ()
    %cst_119 = arith.constant 0.176776692 : f32
    %328 = vector.broadcast %cst_119 : f32 to vector<2x8x8xf32>
    %329 = arith.mulf %327, %328 : vector<2x8x8xf32>
    %330 = vector.shape_cast %5 : vector<8x8xf32> to vector<1x8x8xf32>
    %331 = vector.broadcast %330 : vector<1x8x8xf32> to vector<2x8x8xf32>
    %332 = arith.addf %329, %331 : vector<2x8x8xf32>
    %cst_120 = arith.constant dense<0xFF800000> : vector<2x8xf32>
    %333 = vector.multi_reduction <maximumf>, %332, %cst_120 [2] : vector<2x8x8xf32> to vector<2x8xf32>
    %334 = vector.shape_cast %333 : vector<2x8xf32> to vector<2x8x1xf32>
    %335 = vector.broadcast %334 : vector<2x8x1xf32> to vector<2x8x8xf32>
    %336 = arith.subf %332, %335 : vector<2x8x8xf32>
    %337 = math.exp %336 : vector<2x8x8xf32>
    %cst_121 = arith.constant dense<0.000000e+00> : vector<2x8xf32>
    %338 = vector.multi_reduction <add>, %337, %cst_121 [2] : vector<2x8x8xf32> to vector<2x8xf32>
    %339 = vector.shape_cast %338 : vector<2x8xf32> to vector<2x8x1xf32>
    %340 = tpu.reciprocal %339 {approx = true} : vector<2x8x1xf32> -> vector<2x8x1xf32>
    %341 = vector.broadcast %340 : vector<2x8x1xf32> to vector<2x8x8xf32>
    %342 = arith.mulf %337, %341 : vector<2x8x8xf32>
    %343 = arith.truncf %342 : vector<2x8x8xf32> to vector<2x8x8xbf16>
    %344 = arith.truncf %324 : vector<2x8x32xf32> to vector<2x8x32xbf16>
    "tpu.trace_start"() <{level = 10 : i32, message = "bqk,bkd->bqd"}> : () -> ()
    %cst_122 = arith.constant dense<0.000000e+00> : vector<2x8x32xf32>
    %345 = tpu.matmul %343, %344, %cst_122 {dimension_numbers = #tpu.dot_dimension_numbers<[2], [1], [1], [2], [0, 0, 0, 1, 1, 2], [0], [0]>} : vector<2x8x8xbf16>, vector<2x8x32xbf16>, vector<2x8x32xf32> -> vector<2x8x32xf32>
    "tpu.trace_stop"() : () -> ()
    %346 = vector.shape_cast %345 : vector<2x8x32xf32> to vector<16x32xf32>
    %c0_123 = arith.constant 0 : index
    %c64_124 = arith.constant 64 : index
    %347 = vector.load %arg21[%c0_123, %c64_124] : memref<16x128xf32, #tpu.memory_space<vmem>>, vector<16x32xf32>
    tpu.vector_store %arg21[%c0_123, %c64_124], %346 {strides = array<i32>} : memref<16x128xf32, #tpu.memory_space<vmem>>, vector<16x32xf32>,
    %348 = vector.extract_strided_slice %260 {offsets = [0, 96], sizes = [16, 32], strides = [1, 1]} : vector<16x384xf32> to vector<16x32xf32>
    %349 = vector.shape_cast %348 : vector<16x32xf32> to vector<2x8x32xf32>
    %350 = vector.extract_strided_slice %260 {offsets = [0, 224], sizes = [16, 32], strides = [1, 1]} : vector<16x384xf32> to vector<16x32xf32>
    %351 = vector.shape_cast %350 : vector<16x32xf32> to vector<2x8x32xf32>
    %352 = vector.extract_strided_slice %260 {offsets = [0, 352], sizes = [16, 32], strides = [1, 1]} : vector<16x384xf32> to vector<16x32xf32>
    %353 = vector.shape_cast %352 : vector<16x32xf32> to vector<2x8x32xf32>
    %354 = arith.truncf %349 : vector<2x8x32xf32> to vector<2x8x32xbf16>
    %355 = arith.truncf %351 : vector<2x8x32xf32> to vector<2x8x32xbf16>
    "tpu.trace_start"() <{level = 10 : i32, message = "bqd,bkd->bqk"}> : () -> ()
    %cst_125 = arith.constant dense<0.000000e+00> : vector<2x8x8xf32>
    %356 = tpu.matmul %354, %355, %cst_125 {dimension_numbers = #tpu.dot_dimension_numbers<[2], [2], [1], [1], [0, 0, 0, 1, 1, 1], [0], [0]>} : vector<2x8x32xbf16>, vector<2x8x32xbf16>, vector<2x8x8xf32> -> vector<2x8x8xf32>
    "tpu.trace_stop"() : () -> ()
    %cst_126 = arith.constant 0.176776692 : f32
    %357 = vector.broadcast %cst_126 : f32 to vector<2x8x8xf32>
    %358 = arith.mulf %356, %357 : vector<2x8x8xf32>
    %359 = vector.shape_cast %5 : vector<8x8xf32> to vector<1x8x8xf32>
    %360 = vector.broadcast %359 : vector<1x8x8xf32> to vector<2x8x8xf32>
    %361 = arith.addf %358, %360 : vector<2x8x8xf32>
    %cst_127 = arith.constant dense<0xFF800000> : vector<2x8xf32>
    %362 = vector.multi_reduction <maximumf>, %361, %cst_127 [2] : vector<2x8x8xf32> to vector<2x8xf32>
    %363 = vector.shape_cast %362 : vector<2x8xf32> to vector<2x8x1xf32>
    %364 = vector.broadcast %363 : vector<2x8x1xf32> to vector<2x8x8xf32>
    %365 = arith.subf %361, %364 : vector<2x8x8xf32>
    %366 = math.exp %365 : vector<2x8x8xf32>
    %cst_128 = arith.constant dense<0.000000e+00> : vector<2x8xf32>
    %367 = vector.multi_reduction <add>, %366, %cst_128 [2] : vector<2x8x8xf32> to vector<2x8xf32>
    %368 = vector.shape_cast %367 : vector<2x8xf32> to vector<2x8x1xf32>
    %369 = tpu.reciprocal %368 {approx = true} : vector<2x8x1xf32> -> vector<2x8x1xf32>
    %370 = vector.broadcast %369 : vector<2x8x1xf32> to vector<2x8x8xf32>
    %371 = arith.mulf %366, %370 : vector<2x8x8xf32>
    %372 = arith.truncf %371 : vector<2x8x8xf32> to vector<2x8x8xbf16>
    %373 = arith.truncf %353 : vector<2x8x32xf32> to vector<2x8x32xbf16>
    "tpu.trace_start"() <{level = 10 : i32, message = "bqk,bkd->bqd"}> : () -> ()
    %cst_129 = arith.constant dense<0.000000e+00> : vector<2x8x32xf32>
    %374 = tpu.matmul %372, %373, %cst_129 {dimension_numbers = #tpu.dot_dimension_numbers<[2], [1], [1], [2], [0, 0, 0, 1, 1, 2], [0], [0]>} : vector<2x8x8xbf16>, vector<2x8x32xbf16>, vector<2x8x32xf32> -> vector<2x8x32xf32>
    "tpu.trace_stop"() : () -> ()
    %375 = vector.shape_cast %374 : vector<2x8x32xf32> to vector<16x32xf32>
    %c0_130 = arith.constant 0 : index
    %c96_131 = arith.constant 96 : index
    %376 = vector.load %arg21[%c0_130, %c96_131] : memref<16x128xf32, #tpu.memory_space<vmem>>, vector<16x32xf32>
    tpu.vector_store %arg21[%c0_130, %c96_131], %375 {strides = array<i32>} : memref<16x128xf32, #tpu.memory_space<vmem>>, vector<16x32xf32>,
    %c0_132 = arith.constant 0 : index
    %c0_133 = arith.constant 0 : index
    %377 = vector.load %arg21[%c0_132, %c0_133] : memref<16x128xf32, #tpu.memory_space<vmem>>, vector<16x128xf32>
    %378 = arith.truncf %377 : vector<16x128xf32> to vector<16x128xbf16>
    %c1_134 = arith.constant 1 : index
    %c0_135 = arith.constant 0 : index
    %c0_136 = arith.constant 0 : index
    %379 = vector.load %arg8[%c1_134, %c0_135, %c0_136] : memref<2x128x128xbf16, #tpu.memory_space<vmem>>, vector<1x128x128xbf16>
    %380 = vector.shape_cast %379 : vector<1x128x128xbf16> to vector<128x128xbf16>
    %cst_137 = arith.constant dense<0.000000e+00> : vector<16x128xf32>
    %381 = tpu.matmul %378, %380, %cst_137 {dimension_numbers = #tpu.dot_dimension_numbers<[1], [0], [0], [1], [0, 0, 1, 1], [], []>} : vector<16x128xbf16>, vector<128x128xbf16>, vector<16x128xf32> -> vector<16x128xf32>
    %382 = arith.addf %226, %381 : vector<16x128xf32>
    %c1_138 = arith.constant 1 : index
    %c0_139 = arith.constant 0 : index
    %c0_140 = arith.constant 0 : index
    %383 = vector.load %arg9[%c1_138, %c0_139, %c0_140] : memref<2x1x128xf32, #tpu.memory_space<vmem>>, vector<1x1x128xf32>
    %384 = vector.shape_cast %383 : vector<1x1x128xf32> to vector<1x128xf32>
    %385 = vector.broadcast %384 : vector<1x128xf32> to vector<16x128xf32>
    %386 = arith.addf %382, %385 : vector<16x128xf32>
    %c1_141 = arith.constant 1 : index
    %c0_142 = arith.constant 0 : index
    %c0_143 = arith.constant 0 : index
    %387 = vector.load %arg10[%c1_141, %c0_142, %c0_143] : memref<2x1x128xf32, #tpu.memory_space<vmem>>, vector<1x1x128xf32>
    %388 = vector.shape_cast %387 : vector<1x1x128xf32> to vector<1x128xf32>
    %c1_144 = arith.constant 1 : index
    %c0_145 = arith.constant 0 : index
    %c0_146 = arith.constant 0 : index
    %389 = vector.load %arg11[%c1_144, %c0_145, %c0_146] : memref<2x1x128xf32, #tpu.memory_space<vmem>>, vector<1x1x128xf32>
    %390 = vector.shape_cast %389 : vector<1x1x128xf32> to vector<1x128xf32>
    %cst_147 = arith.constant dense<0.000000e+00> : vector<16xf32>
    %391 = vector.multi_reduction <add>, %386, %cst_147 [1] : vector<16x128xf32> to vector<16xf32>
    %392 = vector.shape_cast %391 : vector<16xf32> to vector<16x1xf32>
    %cst_148 = arith.constant 1.280000e+02 : f32
    %393 = vector.broadcast %cst_148 : f32 to vector<16x1xf32>
    %394 = arith.divf %392, %393 : vector<16x1xf32>
    %395 = vector.broadcast %394 : vector<16x1xf32> to vector<16x128xf32>
    %396 = arith.subf %386, %395 : vector<16x128xf32>
    %397 = arith.mulf %396, %396 : vector<16x128xf32>
    %cst_149 = arith.constant dense<0.000000e+00> : vector<16xf32>
    %398 = vector.multi_reduction <add>, %397, %cst_149 [1] : vector<16x128xf32> to vector<16xf32>
    %399 = vector.shape_cast %398 : vector<16xf32> to vector<16x1xf32>
    %cst_150 = arith.constant 1.280000e+02 : f32
    %400 = vector.broadcast %cst_150 : f32 to vector<16x1xf32>
    %401 = arith.divf %399, %400 : vector<16x1xf32>
    %402 = vector.broadcast %394 : vector<16x1xf32> to vector<16x128xf32>
    %403 = arith.subf %386, %402 : vector<16x128xf32>
    %cst_151 = arith.constant 9.99999997E-7 : f32
    %404 = vector.broadcast %cst_151 : f32 to vector<16x1xf32>
    %405 = arith.addf %401, %404 : vector<16x1xf32>
    %406 = math.rsqrt %405 : vector<16x1xf32>
    %407 = vector.broadcast %406 : vector<16x1xf32> to vector<16x128xf32>
    %408 = arith.mulf %403, %407 : vector<16x128xf32>
    %409 = vector.broadcast %388 : vector<1x128xf32> to vector<16x128xf32>
    %410 = arith.mulf %408, %409 : vector<16x128xf32>
    %411 = vector.broadcast %390 : vector<1x128xf32> to vector<16x128xf32>
    %412 = arith.addf %410, %411 : vector<16x128xf32>
    %413 = arith.truncf %412 : vector<16x128xf32> to vector<16x128xbf16>
    %c1_152 = arith.constant 1 : index
    %c0_153 = arith.constant 0 : index
    %c0_154 = arith.constant 0 : index
    %414 = vector.load %arg12[%c1_152, %c0_153, %c0_154] : memref<2x128x256xbf16, #tpu.memory_space<vmem>>, vector<1x128x256xbf16>
    %415 = vector.shape_cast %414 : vector<1x128x256xbf16> to vector<128x256xbf16>
    %cst_155 = arith.constant dense<0.000000e+00> : vector<16x256xf32>
    %416 = tpu.matmul %413, %415, %cst_155 {dimension_numbers = #tpu.dot_dimension_numbers<[1], [0], [0], [1], [0, 0, 1, 1], [], []>} : vector<16x128xbf16>, vector<128x256xbf16>, vector<16x256xf32> -> vector<16x256xf32>
    %c1_156 = arith.constant 1 : index
    %c0_157 = arith.constant 0 : index
    %c0_158 = arith.constant 0 : index
    %417 = vector.load %arg13[%c1_156, %c0_157, %c0_158] : memref<2x1x256xf32, #tpu.memory_space<vmem>>, vector<1x1x256xf32>
    %418 = vector.shape_cast %417 : vector<1x1x256xf32> to vector<1x256xf32>
    %419 = vector.broadcast %418 : vector<1x256xf32> to vector<16x256xf32>
    %420 = arith.addf %416, %419 : vector<16x256xf32>
    %cst_159 = arith.constant 5.000000e-01 : f32
    %421 = vector.broadcast %cst_159 : f32 to vector<16x256xf32>
    %422 = arith.mulf %421, %420 : vector<16x256xf32>
    %cst_160 = arith.constant 0.707106769 : f32
    %423 = vector.broadcast %cst_160 : f32 to vector<16x256xf32>
    %424 = arith.mulf %420, %423 : vector<16x256xf32>
    %425 = math.erf %424 : vector<16x256xf32>
    %cst_161 = arith.constant 1.000000e+00 : f32
    %426 = vector.broadcast %cst_161 : f32 to vector<16x256xf32>
    %427 = arith.addf %426, %425 : vector<16x256xf32>
    %428 = arith.mulf %422, %427 : vector<16x256xf32>
    %429 = arith.truncf %428 : vector<16x256xf32> to vector<16x256xbf16>
    %c1_162 = arith.constant 1 : index
    %c0_163 = arith.constant 0 : index
    %c0_164 = arith.constant 0 : index
    %430 = vector.load %arg14[%c1_162, %c0_163, %c0_164] : memref<2x256x128xbf16, #tpu.memory_space<vmem>>, vector<1x256x128xbf16>
    %431 = vector.shape_cast %430 : vector<1x256x128xbf16> to vector<256x128xbf16>
    %cst_165 = arith.constant dense<0.000000e+00> : vector<16x128xf32>
    %432 = tpu.matmul %429, %431, %cst_165 {dimension_numbers = #tpu.dot_dimension_numbers<[1], [0], [0], [1], [0, 0, 1, 1], [], []>} : vector<16x256xbf16>, vector<256x128xbf16>, vector<16x128xf32> -> vector<16x128xf32>
    %c1_166 = arith.constant 1 : index
    %c0_167 = arith.constant 0 : index
    %c0_168 = arith.constant 0 : index
    %433 = vector.load %arg15[%c1_166, %c0_167, %c0_168] : memref<2x1x128xf32, #tpu.memory_space<vmem>>, vector<1x1x128xf32>
    %434 = vector.shape_cast %433 : vector<1x1x128xf32> to vector<1x128xf32>
    %435 = vector.broadcast %434 : vector<1x128xf32> to vector<16x128xf32>
    %436 = arith.addf %432, %435 : vector<16x128xf32>
    %437 = arith.addf %386, %436 : vector<16x128xf32>
    %438 = vector.shape_cast %437 : vector<16x128xf32> to vector<2x8x128xf32>
    %439 = vector.extract_strided_slice %438 {offsets = [0, 0, 0], sizes = [2, 1, 128], strides = [1, 1, 1]} : vector<2x8x128xf32> to vector<2x1x128xf32>
    %440 = vector.shape_cast %439 : vector<2x1x128xf32> to vector<2x128xf32>
    %c0_169 = arith.constant 0 : index
    %c0_170 = arith.constant 0 : index
    %441 = vector.load %arg16[%c0_169, %c0_170] : memref<1x128xf32, #tpu.memory_space<vmem>>, vector<1x128xf32>
    %c0_171 = arith.constant 0 : index
    %c0_172 = arith.constant 0 : index
    %442 = vector.load %arg17[%c0_171, %c0_172] : memref<1x128xf32, #tpu.memory_space<vmem>>, vector<1x128xf32>
    %cst_173 = arith.constant dense<0.000000e+00> : vector<2xf32>
    %443 = vector.multi_reduction <add>, %440, %cst_173 [1] : vector<2x128xf32> to vector<2xf32>
    %444 = vector.shape_cast %443 : vector<2xf32> to vector<2x1xf32>
    %cst_174 = arith.constant 1.280000e+02 : f32
    %445 = vector.broadcast %cst_174 : f32 to vector<2x1xf32>
    %446 = arith.divf %444, %445 : vector<2x1xf32>
    %447 = vector.broadcast %446 : vector<2x1xf32> to vector<2x128xf32>
    %448 = arith.subf %440, %447 : vector<2x128xf32>
    %449 = arith.mulf %448, %448 : vector<2x128xf32>
    %cst_175 = arith.constant dense<0.000000e+00> : vector<2xf32>
    %450 = vector.multi_reduction <add>, %449, %cst_175 [1] : vector<2x128xf32> to vector<2xf32>
    %451 = vector.shape_cast %450 : vector<2xf32> to vector<2x1xf32>
    %cst_176 = arith.constant 1.280000e+02 : f32
    %452 = vector.broadcast %cst_176 : f32 to vector<2x1xf32>
    %453 = arith.divf %451, %452 : vector<2x1xf32>
    %454 = vector.broadcast %446 : vector<2x1xf32> to vector<2x128xf32>
    %455 = arith.subf %440, %454 : vector<2x128xf32>
    %cst_177 = arith.constant 9.99999997E-7 : f32
    %456 = vector.broadcast %cst_177 : f32 to vector<2x1xf32>
    %457 = arith.addf %453, %456 : vector<2x1xf32>
    %458 = math.rsqrt %457 : vector<2x1xf32>
    %459 = vector.broadcast %458 : vector<2x1xf32> to vector<2x128xf32>
    %460 = arith.mulf %455, %459 : vector<2x128xf32>
    %461 = vector.broadcast %441 : vector<1x128xf32> to vector<2x128xf32>
    %462 = arith.mulf %460, %461 : vector<2x128xf32>
    %463 = vector.broadcast %442 : vector<1x128xf32> to vector<2x128xf32>
    %464 = arith.addf %462, %463 : vector<2x128xf32>
    %465 = arith.truncf %464 : vector<2x128xf32> to vector<2x128xbf16>
    %c0_178 = arith.constant 0 : index
    %c0_179 = arith.constant 0 : index
    %466 = vector.load %arg18[%c0_178, %c0_179] : memref<128x128xbf16, #tpu.memory_space<vmem>>, vector<128x128xbf16>
    %cst_180 = arith.constant dense<0.000000e+00> : vector<2x128xf32>
    %467 = tpu.matmul %465, %466, %cst_180 {dimension_numbers = #tpu.dot_dimension_numbers<[1], [0], [0], [1], [0, 0, 1, 1], [], []>} : vector<2x128xbf16>, vector<128x128xbf16>, vector<2x128xf32> -> vector<2x128xf32>
    %c0_181 = arith.constant 0 : index
    %c0_182 = arith.constant 0 : index
    %468 = vector.load %arg19[%c0_181, %c0_182] : memref<1x128xf32, #tpu.memory_space<vmem>>, vector<1x128xf32>
    %469 = vector.broadcast %468 : vector<1x128xf32> to vector<2x128xf32>
    %470 = arith.addf %467, %469 : vector<2x128xf32>
    %c0_183 = arith.constant 0 : index
    %c0_184 = arith.constant 0 : index
    %471 = vector.load %arg20[%c0_183, %c0_184] : memref<2x128xf32, #tpu.memory_space<vmem>>, vector<2x128xf32>
    tpu.vector_store %arg20[%c0_183, %c0_184], %470 {strides = array<i32>} : memref<2x128xf32, #tpu.memory_space<vmem>>, vector<2x128xf32>,
    return
  }
  func.func @transform_0(%arg0: i32) -> (i32, i32) {
    %c0_i32 = arith.constant 0 : i32
    %c0_i32_0 = arith.constant 0 : i32
    return %arg0, %c0_i32 : i32, i32
  }
  func.func @transform_1(%arg0: i32) -> (i32, i32) {
    %c0_i32 = arith.constant 0 : i32
    %c0_i32_0 = arith.constant 0 : i32
    %c0_i32_1 = arith.constant 0 : i32
    return %c0_i32, %c0_i32_0 : i32, i32
  }
  func.func @transform_2(%arg0: i32) -> (i32, i32) {
    %c0_i32 = arith.constant 0 : i32
    %c0_i32_0 = arith.constant 0 : i32
    %c0_i32_1 = arith.constant 0 : i32
    return %c0_i32, %c0_i32_0 : i32, i32
  }
  func.func @transform_3(%arg0: i32) -> (i32, i32, i32) {
    %c0_i32 = arith.constant 0 : i32
    %c0_i32_0 = arith.constant 0 : i32
    %c0_i32_1 = arith.constant 0 : i32
    %c0_i32_2 = arith.constant 0 : i32
    return %c0_i32, %c0_i32_0, %c0_i32_1 : i32, i32, i32
  }
  func.func @transform_4(%arg0: i32) -> (i32, i32, i32) {
    %c0_i32 = arith.constant 0 : i32
    %c0_i32_0 = arith.constant 0 : i32
    %c0_i32_1 = arith.constant 0 : i32
    %c0_i32_2 = arith.constant 0 : i32
    return %c0_i32, %c0_i32_0, %c0_i32_1 : i32, i32, i32
  }
  func.func @transform_5(%arg0: i32) -> (i32, i32, i32) {
    %c0_i32 = arith.constant 0 : i32
    %c0_i32_0 = arith.constant 0 : i32
    %c0_i32_1 = arith.constant 0 : i32
    %c0_i32_2 = arith.constant 0 : i32
    return %c0_i32, %c0_i32_0, %c0_i32_1 : i32, i32, i32
  }
  func.func @transform_6(%arg0: i32) -> (i32, i32, i32) {
    %c0_i32 = arith.constant 0 : i32
    %c0_i32_0 = arith.constant 0 : i32
    %c0_i32_1 = arith.constant 0 : i32
    %c0_i32_2 = arith.constant 0 : i32
    return %c0_i32, %c0_i32_0, %c0_i32_1 : i32, i32, i32
  }
  func.func @transform_7(%arg0: i32) -> (i32, i32, i32) {
    %c0_i32 = arith.constant 0 : i32
    %c0_i32_0 = arith.constant 0 : i32
    %c0_i32_1 = arith.constant 0 : i32
    %c0_i32_2 = arith.constant 0 : i32
    return %c0_i32, %c0_i32_0, %c0_i32_1 : i32, i32, i32
  }
  func.func @transform_8(%arg0: i32) -> (i32, i32, i32) {
    %c0_i32 = arith.constant 0 : i32
    %c0_i32_0 = arith.constant 0 : i32
    %c0_i32_1 = arith.constant 0 : i32
    %c0_i32_2 = arith.constant 0 : i32
    return %c0_i32, %c0_i32_0, %c0_i32_1 : i32, i32, i32
  }
  func.func @transform_9(%arg0: i32) -> (i32, i32, i32) {
    %c0_i32 = arith.constant 0 : i32
    %c0_i32_0 = arith.constant 0 : i32
    %c0_i32_1 = arith.constant 0 : i32
    %c0_i32_2 = arith.constant 0 : i32
    return %c0_i32, %c0_i32_0, %c0_i32_1 : i32, i32, i32
  }
  func.func @transform_10(%arg0: i32) -> (i32, i32, i32) {
    %c0_i32 = arith.constant 0 : i32
    %c0_i32_0 = arith.constant 0 : i32
    %c0_i32_1 = arith.constant 0 : i32
    %c0_i32_2 = arith.constant 0 : i32
    return %c0_i32, %c0_i32_0, %c0_i32_1 : i32, i32, i32
  }
  func.func @transform_11(%arg0: i32) -> (i32, i32, i32) {
    %c0_i32 = arith.constant 0 : i32
    %c0_i32_0 = arith.constant 0 : i32
    %c0_i32_1 = arith.constant 0 : i32
    %c0_i32_2 = arith.constant 0 : i32
    return %c0_i32, %c0_i32_0, %c0_i32_1 : i32, i32, i32
  }
  func.func @transform_12(%arg0: i32) -> (i32, i32, i32) {
    %c0_i32 = arith.constant 0 : i32
    %c0_i32_0 = arith.constant 0 : i32
    %c0_i32_1 = arith.constant 0 : i32
    %c0_i32_2 = arith.constant 0 : i32
    return %c0_i32, %c0_i32_0, %c0_i32_1 : i32, i32, i32
  }
  func.func @transform_13(%arg0: i32) -> (i32, i32, i32) {
    %c0_i32 = arith.constant 0 : i32
    %c0_i32_0 = arith.constant 0 : i32
    %c0_i32_1 = arith.constant 0 : i32
    %c0_i32_2 = arith.constant 0 : i32
    return %c0_i32, %c0_i32_0, %c0_i32_1 : i32, i32, i32
  }
  func.func @transform_14(%arg0: i32) -> (i32, i32, i32) {
    %c0_i32 = arith.constant 0 : i32
    %c0_i32_0 = arith.constant 0 : i32
    %c0_i32_1 = arith.constant 0 : i32
    %c0_i32_2 = arith.constant 0 : i32
    return %c0_i32, %c0_i32_0, %c0_i32_1 : i32, i32, i32
  }
  func.func @transform_15(%arg0: i32) -> (i32, i32) {
    %c0_i32 = arith.constant 0 : i32
    %c0_i32_0 = arith.constant 0 : i32
    %c0_i32_1 = arith.constant 0 : i32
    return %c0_i32, %c0_i32_0 : i32, i32
  }
  func.func @transform_16(%arg0: i32) -> (i32, i32) {
    %c0_i32 = arith.constant 0 : i32
    %c0_i32_0 = arith.constant 0 : i32
    %c0_i32_1 = arith.constant 0 : i32
    return %c0_i32, %c0_i32_0 : i32, i32
  }
  func.func @transform_17(%arg0: i32) -> (i32, i32) {
    %c0_i32 = arith.constant 0 : i32
    %c0_i32_0 = arith.constant 0 : i32
    %c0_i32_1 = arith.constant 0 : i32
    return %c0_i32, %c0_i32_0 : i32, i32
  }
  func.func @transform_18(%arg0: i32) -> (i32, i32) {
    %c0_i32 = arith.constant 0 : i32
    %c0_i32_0 = arith.constant 0 : i32
    %c0_i32_1 = arith.constant 0 : i32
    return %c0_i32, %c0_i32_0 : i32, i32
  }
  func.func @transform_19(%arg0: i32) -> (i32, i32) {
    %c0_i32 = arith.constant 0 : i32
    %c0_i32_0 = arith.constant 0 : i32
    return %arg0, %c0_i32 : i32, i32
  }
}

</mosaic_0001>

<bundles_post_ra>
// kernel: conv_classifier_forward.1
= control target key start
LH: loop header
LB: loop body
LE: loop exit
PB: predicated region body
PF: predicated region fallthrough
CT: control target
= control target key end

     0   :  { %s6741_s0 = inlined_call_operand.vmem [shape: f32[16,768], index: 0, kind: input, shape index: {}]   ;;  %s6742_s1 = inlined_call_operand.vmem [shape: f32[8,128], index: 1, kind: input, shape index: {}]   ;;  %s6743_s2 = inlined_call_operand.vmem [shape: bf16[768,128], index: 2, kind: input, shape index: {}]   ;;  %s6744_s3 = inlined_call_operand.vmem [shape: f32[2,1,128], index: 3, kind: input, shape index: {}]   ;;  %s6745_s4 = inlined_call_operand.vmem [shape: f32[2,1,128], index: 4, kind: input, shape index: {}]   ;;  %s6746_s5 = inlined_call_operand.vmem [shape: bf16[2,128,384], index: 5, kind: input, shape index: {}]   ;;  %s6747_s6 = inlined_call_operand.vmem [shape: f32[2,1,384], index: 6, kind: input, shape index: {}]   ;;  %s6748_s7 = inlined_call_operand.vmem [shape: bf16[2,128,128], index: 7, kind: input, shape index: {}]   ;;  %s6749_s8 = inlined_call_operand.vmem [shape: f32[2,1,128], index: 8, kind: input, shape index: {}]   ;;  %s6750_s9 = inlined_call_operand.vmem [shape: f32[2,1,128], index: 9, kind: input, shape index: {}]   ;;  %s6751_s10 = inlined_call_operand.vmem [shape: f32[2,1,128], index: 10, kind: input, shape index: {}]   ;;  %s6752_s11 = inlined_call_operand.vmem [shape: bf16[2,128,256], index: 11, kind: input, shape index: {}]   ;;  %s6753_s12 = inlined_call_operand.vmem [shape: f32[2,1,256], index: 12, kind: input, shape index: {}]   ;;  %s6754_s13 = inlined_call_operand.vmem [shape: bf16[2,256,128], index: 13, kind: input, shape index: {}]   ;;  %s6755_s14 = inlined_call_operand.vmem [shape: f32[2,1,128], index: 14, kind: input, shape index: {}]   ;;  %s6756_s15 = inlined_call_operand.vmem [shape: f32[1,128], index: 15, kind: input, shape index: {}]   ;;  %s6757_s16 = inlined_call_operand.vmem [shape: f32[1,128], index: 16, kind: input, shape index: {}]   ;;  %s6758_s17 = inlined_call_operand.vmem [shape: bf16[128,128], index: 17, kind: input, shape index: {}]   ;;  %s6759_s18 = inlined_call_operand.vmem [shape: f32[1,128], index: 18, kind: input, shape index: {}]   ;;  %s6760_s19 = inlined_call_operand.hbm [shape: f32[2,128], index: 19, kind: output, shape index: {}]  }
   0x1   :  { %6764 = sst [smem:[#allocation6_spill]] %s6741_s0 }
   0x2   :  { %6765 = sst [smem:[#allocation7_spill]] %s6742_s1 }
   0x3   :  { %6766 = sst [smem:[#allocation8_spill]] %s6743_s2 }
   0x4   :  { %6767 = sst [smem:[#allocation9_spill]] %s6744_s3 }
   0x5   :  { %s6768_s20 = sld [smem:[#allocation8_spill]]  ;;  %s6769_s26 = sld [smem:[#allocation6_spill]] }
   0xb   :  { %v5141_v0 = vld [vmem:[%s6768_s20 + $0x40] sm:$0xff]   ;;  %v5145_v4 = vld [vmem:[%s6768_s20 + $0x48] sm:$0xff]   ;;  %v5149_v8 = vld [vmem:[%s6768_s20 + $0x50] sm:$0xff]  }
   0xc   :  { %v5142_v1 = vld [vmem:[%s6768_s20 + $0xc0] sm:$0xff]   ;;  %4622 = vmatprep.subr.bf16.mxu0 %v5141_v0  ;;  %v5146_v5 = vld [vmem:[%s6768_s20 + $0xc8] sm:$0xff]   ;;  %v5150_v9 = vld [vmem:[%s6768_s20 + $0xd0] sm:$0xff]  }
   0xd   :  { %v5143_v2 = vld [vmem:[%s6768_s20] sm:$0xff]   ;;  %4644 = vmatprep.subr.bf16.mxu1 %v5142_v1  ;;  %v5147_v6 = vld [vmem:[%s6768_s20 + $0x8] sm:$0xff]   ;;  %v5151_v10 = vld [vmem:[%s6768_s20 + $0x10] sm:$0xff]  }
   0xe   :  { %v5144_v3 = vld [vmem:[%s6768_s20 + $0x80] sm:$0xff]   ;;  %4623 = vmatpush3.bf16.msra.mxu0 %v5143_v2  ;;  %v5148_v7 = vld [vmem:[%s6768_s20 + $0x88] sm:$0xff]   ;;  %v5152_v11 = vld [vmem:[%s6768_s20 + $0x90] sm:$0xff]  }
   0xf   :  { %4645 = vmatpush3.bf16.msra.mxu1 %v5144_v3  ;;  %4624 = vmatprep.subr.bf16.mxu0 %v5145_v4  ;;  %v5153_v12 = vld [vmem:[%s6768_s20 + $0x58] sm:$0xff]   ;;  %v5157_v16 = vld [vmem:[%s6768_s20 + $0x60] sm:$0xff]   ;;  %v5161_v20 = vld [vmem:[%s6768_s20 + $0x68] sm:$0xff]  }
  0x10   :  { %4646 = vmatprep.subr.bf16.mxu1 %v5146_v5  ;;  %v5154_v13 = vld [vmem:[%s6768_s20 + $0xd8] sm:$0xff]   ;;  %v5158_v17 = vld [vmem:[%s6768_s20 + $0xe0] sm:$0xff]   ;;  %v5162_v21 = vld [vmem:[%s6768_s20 + $0xe8] sm:$0xff]  }
  0x11   :  { %v5155_v14 = vld [vmem:[%s6768_s20 + $0x18] sm:$0xff]   ;;  %v5159_v18 = vld [vmem:[%s6768_s20 + $0x20] sm:$0xff]   ;;  %v5163_v22 = vld [vmem:[%s6768_s20 + $0x28] sm:$0xff]  }
  0x12   :  { %4625 = vmatpush3.bf16.msra.mxu0 %v5147_v6  ;;  %v5156_v15 = vld [vmem:[%s6768_s20 + $0x98] sm:$0xff]   ;;  %v5160_v19 = vld [vmem:[%s6768_s20 + $0xa0] sm:$0xff]   ;;  %v5164_v23 = vld [vmem:[%s6768_s20 + $0xa8] sm:$0xff]  }
  0x13   :  { %4647 = vmatpush3.bf16.msra.mxu1 %v5148_v7  ;;  %4626 = vmatprep.subr.bf16.mxu0 %v5149_v8  ;;  %v5165_v24 = vld [vmem:[%s6768_s20 + $0x70] sm:$0xff]   ;;  %v5169_v28 = vld [vmem:[%s6768_s20 + $0x78] sm:$0xff]   ;;  %v69_v32 = vld [vmem:[%s6769_s26 + $0x8] sm:$0xff] }
  0x14   :  { %4648 = vmatprep.subr.bf16.mxu1 %v5150_v9  ;;  %v5166_v25 = vld [vmem:[%s6768_s20 + $0xf0] sm:$0xff]   ;;  %v5170_v29 = vld [vmem:[%s6768_s20 + $0xf8] sm:$0xff]   ;;  %v77_v36 = vld [vmem:[%s6769_s26 + $0x48] sm:$0xff] }
  0x15   :  { %v5167_v26 = vld [vmem:[%s6768_s20 + $0x30] sm:$0xff]   ;;  %v5171_v30 = vld [vmem:[%s6768_s20 + $0x38] sm:$0xff]   ;;  %v68_v37 = vld [vmem:[%s6769_s26] sm:$0xff] }
  0x16   :  { %4627 = vmatpush3.bf16.msra.mxu0 %v5151_v10  ;;  %v5168_v27 = vld [vmem:[%s6768_s20 + $0xb0] sm:$0xff]   ;;  %v5172_v31 = vld [vmem:[%s6768_s20 + $0xb8] sm:$0xff]   ;;  %v76_v42 = vld [vmem:[%s6769_s26 + $0x40] sm:$0xff] }
  0x17   :  { %4649 = vmatpush3.bf16.msra.mxu1 %v5152_v11  ;;  %4628 = vmatprep.subr.bf16.mxu0 %v5153_v12  ;;  %v75_v33 = vld [vmem:[%s6769_s26 + $0x38] sm:$0xff]  ;;  %v74_v38 = vld [vmem:[%s6769_s26 + $0x30] sm:$0xff]  ;;  %v5173_v44 = vld [vmem:[%s6768_s20 + $0x140] sm:$0xff]  }
  0x18   :  { %4650 = vmatprep.subr.bf16.mxu1 %v5154_v13  ;;  %v71_v34 = vld [vmem:[%s6769_s26 + $0x18] sm:$0xff]  ;;  %v81_v35 = vpack.c.bf16 %v75_v33, %v69_v32  ;;  %v80_v40 = vpack.c.bf16 %v74_v38, %v68_v37  ;;  %v70_v41 = vld [vmem:[%s6769_s26 + $0x10] sm:$0xff]  ;;  %v5174_v45 = vld [vmem:[%s6768_s20 + $0x100] sm:$0xff]  }
  0x19   :  { %v83_v39 = vpack.c.bf16 %v77_v36, %v71_v34  ;;  %v82_v43 = vpack.c.bf16 %v76_v42, %v70_v41  ;;  %v5175_v46 = vld [vmem:[%s6768_s20 + $0x148] sm:$0xff]   ;;  %v5177_v48 = vld [vmem:[%s6768_s20 + $0x150] sm:$0xff]   ;;  %v5179_v50 = vld [vmem:[%s6768_s20 + $0x158] sm:$0xff]  }
  0x1a   :  { %4629 = vmatpush3.bf16.msra.mxu0 %v5155_v14  ;;  %502 = vmatprep.mubr.bf16.mxu0 %v81_v35  ;;  %v5176_v47 = vld [vmem:[%s6768_s20 + $0x108] sm:$0xff]   ;;  %v5178_v49 = vld [vmem:[%s6768_s20 + $0x110] sm:$0xff]   ;;  %v5180_v51 = vld [vmem:[%s6768_s20 + $0x118] sm:$0xff]  }
  0x1b   :  { %4651 = vmatpush3.bf16.msra.mxu1 %v5156_v15  ;;  %4630 = vmatprep.subr.bf16.mxu0 %v5157_v16  ;;  %v5181_v52 = vld [vmem:[%s6768_s20 + $0x160] sm:$0xff]   ;;  %v73_v54 = vld [vmem:[%s6769_s26 + $0x28] sm:$0xff]  ;;  %v79_v56 = vld [vmem:[%s6769_s26 + $0x58] sm:$0xff] }
  0x1c   :  { %4652 = vmatprep.subr.bf16.mxu1 %v5158_v17  ;;  %543 = vmatprep.mubr.bf16.mxu1 %v83_v39  ;;  %v5182_v53 = vld [vmem:[%s6768_s20 + $0x120] sm:$0xff]   ;;  %v5183_v55 = vld [vmem:[%s6768_s20 + $0x168] sm:$0xff]   ;;  %v85_v58 = vpack.c.bf16 %v79_v56, %v73_v54  ;;  %v5185_v59 = vld [vmem:[%s6768_s20 + $0x170] sm:$0xff]  }
  0x1d   :  { %v5184_v57 = vld [vmem:[%s6768_s20 + $0x128] sm:$0xff]   ;;  %v5186_v60 = vld [vmem:[%s6768_s20 + $0x130] sm:$0xff]   ;;  %v5187_v61 = vld [vmem:[%s6768_s20 + $0x178] sm:$0xff]  }
  0x1e   :  { %4631 = vmatpush3.bf16.msra.mxu0 %v5159_v18  ;;  %v5188_v62 = vld [vmem:[%s6768_s20 + $0x138] sm:$0xff]   ;;  %v72_v63 = vld [vmem:[%s6769_s26 + $0x20] sm:$0xff]  ;;  %v78_v0 = vld [vmem:[%s6769_s26 + $0x50] sm:$0xff] }
  0x1f   :  { %4653 = vmatpush3.bf16.msra.mxu1 %v5160_v19  ;;  %4632 = vmatprep.subr.bf16.mxu0 %v5161_v20  ;;  %v84_v1 = vpack.c.bf16 %v78_v0, %v72_v63 }
  0x20   :  { %4654 = vmatprep.subr.bf16.mxu1 %v5162_v21 }
  0x22   :  { %4633 = vmatpush3.bf16.msra.mxu0 %v5163_v22 }
  0x23   :  { %4655 = vmatpush3.bf16.msra.mxu1 %v5164_v23  ;;  %4634 = vmatprep.subr.bf16.mxu0 %v5165_v24 }
  0x24   :  { %4656 = vmatprep.subr.bf16.mxu1 %v5166_v25 }
  0x26   :  { %4635 = vmatpush3.bf16.msra.mxu0 %v5167_v26 }
  0x27   :  { %4657 = vmatpush3.bf16.msra.mxu1 %v5168_v27  ;;  %4636 = vmatprep.subr.bf16.mxu0 %v5169_v28 }
  0x28   :  { %4658 = vmatprep.subr.bf16.mxu1 %v5170_v29 }
  0x2a   :  { %4637 = vmatpush3.bf16.msra.mxu0 %v5171_v30 }
  0x2b   :  { %4659 = vmatpush3.bf16.msra.mxu1 %v5172_v31  ;;  %4666 = vmatprep.subr.bf16.mxu0 %v5173_v44 }
  0x2d   :  { %503 = vmatmul.mubr.bf16.vlgmr.msra.gmra.mrb[0].mxu0 %v80_v40 }
  0x2e   :  { %544 = vmatmul.mubr.bf16.vlgmr.msra.gmra.mrb[0].mxu1 %v82_v43  ;;  %4667 = vmatpush3.bf16.msra.mxu0 %v5174_v45 }
  0x2f   :  { %4668 = vmatprep.subr.bf16.mxu0 %v5175_v46  ;;  %584 = vmatprep.mubr.bf16.mxu0 %v85_v58 }
  0x32   :  { %4669 = vmatpush3.bf16.msra.mxu0 %v5176_v47 }
  0x33   :  { %4670 = vmatprep.subr.bf16.mxu0 %v5177_v48 }
  0x36   :  { %4671 = vmatpush3.bf16.msra.mxu0 %v5178_v49 }
  0x37   :  { %4672 = vmatprep.subr.bf16.mxu0 %v5179_v50 }
  0x3a   :  { %4673 = vmatpush3.bf16.msra.mxu0 %v5180_v51 }
  0x3b   :  { %4674 = vmatprep.subr.bf16.mxu0 %v5181_v52 }
  0x3e   :  { %4675 = vmatpush3.bf16.msra.mxu0 %v5182_v53 }
  0x3f   :  { %4676 = vmatprep.subr.bf16.mxu0 %v5183_v55 }
  0x42   :  { %4677 = vmatpush3.bf16.msra.mxu0 %v5184_v57 }
  0x43   :  { %4678 = vmatprep.subr.bf16.mxu0 %v5185_v59 }
  0x46   :  { %4679 = vmatpush3.bf16.msra.mxu0 %v5186_v60 }
  0x47   :  { %4680 = vmatprep.subr.bf16.mxu0 %v5187_v61 }
  0x4a   :  { %4681 = vmatpush3.bf16.msra.mxu0 %v5188_v62 }
  0x4d   :  { %585 = vmatmul.mubr.bf16.vlgmr.msra.gmra.mrb[4].mxu0 %v84_v1 }
  0x4e   :  { %24 = vsyncpa [#allocation4], 0  ;;  %s6770_s29 = sld [smem:[#allocation7_spill]]  ;;  %v5189_v27 = vld [vmem:[%s6746_s5] ss:$12 sps:$4 sm:$0xff]   ;;  %v5479_v29 = vmov 0.0  }
  0x4f   :  { %v5191_v28 = vld [vmem:[%s6746_s5 + $0x4] ss:$12 sps:$4 sm:$0xff]   ;;  %4841 = vmatprep.subr.bf16.mxu0 %v5479_v29  ;;  %v5192_v30 = vld [vmem:[%s6746_s5 + $0x8] ss:$12 sps:$4 sm:$0xff]   ;;  %v5196_v41 = vld [vmem:[%s6746_s5 + $0x20] ss:$12 sps:$4 sm:$0xff]  }
  0x50   :  { %v5195_v31 = vld [vmem:[%s6746_s5 + $0x1c] ss:$12 sps:$4 sm:$0xff]   ;;  %815 = vmatprep.subr.bf16.mxu1 %v5191_v28  ;;  %4842 = vmatpush3.bf16.msra.mxu0 %v5192_v30  ;;  %v5193_v32 = vld [vmem:[%s6746_s5 + $0x18] ss:$12 sps:$4 sm:$0xff]   ;;  %v5199_v42 = vld [vmem:[%s6746_s5 + $0x34] ss:$12 sps:$4 sm:$0xff]  }
  0x51   :  { %816 = vmatpush1.bf16.msra.mxu1 %v5189_v27  ;;  %4843 = vmatprep.subr.bf16.mxu0 %v5479_v29  ;;  %v5197_v43 = vld [vmem:[%s6746_s5 + $0x30] ss:$12 sps:$4 sm:$0xff]   ;;  %v5200_v44 = vld [vmem:[%s6746_s5 + $0x38] ss:$12 sps:$4 sm:$0xff]   ;;  %v5201_v46 = vld [vmem:[%s6746_s5 + $0x48] ss:$12 sps:$4 sm:$0xff]  }
  0x52   :  { %817 = vmatprep.subr.bf16.mxu1 %v5195_v31  ;;  %v5203_v45 = vld [vmem:[%s6746_s5 + $0x4c] ss:$12 sps:$4 sm:$0xff]   ;;  %v5204_v47 = vld [vmem:[%s6746_s5 + $0x50] ss:$12 sps:$4 sm:$0xff]   ;;  %v5208_v50 = vld [vmem:[%s6746_s5 + $0x68] ss:$12 sps:$4 sm:$0xff]  }
  0x53   :  { %v5207_v48 = vld [vmem:[%s6746_s5 + $0x64] ss:$12 sps:$4 sm:$0xff]   ;;  %v5205_v49 = vld [vmem:[%s6746_s5 + $0x60] ss:$12 sps:$4 sm:$0xff]   ;;  %v5211_v51 = vld [vmem:[%s6746_s5 + $0x7c] ss:$12 sps:$4 sm:$0xff]  }
  0x54   :  { %v593_v21 = vld [vmem:[%s6770_s29] sm:$0xff]  ;;  %4844 = vmatpush3.bf16.msra.mxu0 %v5196_v41  ;;  %v5213_v55 = vld [vmem:[%s6746_s5 + $0x90] ss:$12 sps:$4 sm:$0xff]   ;;  %v5219_v57 = vld [vmem:[%s6746_s5 + $0xac] ss:$12 sps:$4 sm:$0xff]   ;;  %v5480_v60 = vmov 0  }
  0x55   :  { %818 = vmatpush1.bf16.msra.mxu1 %v5193_v32  ;;  %4845 = vmatprep.subr.bf16.mxu0 %v5479_v29  ;;  %v5209_v52 = vld [vmem:[%s6746_s5 + $0x78] ss:$12 sps:$4 sm:$0xff]   ;;  %v5212_v53 = vld [vmem:[%s6746_s5 + $0x80] ss:$12 sps:$4 sm:$0xff]   ;;  %v5217_v58 = vld [vmem:[%s6746_s5 + $0xa8] ss:$12 sps:$4 sm:$0xff]  }
  0x56   :  { %819 = vmatprep.subr.bf16.mxu1 %v5199_v42  ;;  %v5215_v54 = vld [vmem:[%s6746_s5 + $0x94] ss:$12 sps:$4 sm:$0xff]   ;;  %v5216_v56 = vld [vmem:[%s6746_s5 + $0x98] ss:$12 sps:$4 sm:$0xff]   ;;  %v5220_v59 = vld [vmem:[%s6746_s5 + $0xb0] ss:$12 sps:$4 sm:$0xff]   ;;  %847 = vmatprep.mubr.bf16.mxu1 %v5480_v60 }
  0x57   :  { %vm5481_vm0 = vmmov 0   ;;  %s6771_s2 = sld [smem:[#allocation9_spill]]  ;;  %vm903_vm1 = vcmask 261120   ;;  %vm1030_vm2 = vcmask 1043456   ;;  %vm1000_vm4 = vcmask 64512   ;;  %s5483_s27 = smov 96  }
  0x58   :  { %4846 = vmatpush3.bf16.msra.mxu0 %v5200_v44  ;;  %4857 = vmatprep.mubr.msk.bf16.mxu0 %vm5481_vm0, %v5479_v29  ;;  %s5484_s28 = smov 64   ;;  %s5485_s20 = smov 32   ;;  %vm1360_vm5 = vcmask 523520   ;;  %vm1595_vm6 = vcmask 785920   ;;  %vm1830_vm7 = vcmask 1048320   ;;  %vm4102_vm8 = vcmask 1041409  }
  0x59   :  { %820 = vmatpush1.bf16.msra.mxu1 %v5197_v43  ;;  %4847 = vmatprep.subr.bf16.mxu0 %v5479_v29  ;;  %vm4105_vm9 = vcmask 1041408  }
  0x5a   :  { %821 = vmatprep.subr.bf16.mxu1 %v5203_v45 }
  0x5c   :  { %4848 = vmatpush3.bf16.msra.mxu0 %v5204_v47 }
  0x5d   :  { %822 = vmatpush1.bf16.msra.mxu1 %v5201_v46  ;;  %4849 = vmatprep.subr.bf16.mxu0 %v5479_v29 }
  0x5e   :  { %823 = vmatprep.subr.bf16.mxu1 %v5207_v48 }
  0x60   :  { %4850 = vmatpush3.bf16.msra.mxu0 %v5208_v50 }
  0x61   :  { %824 = vmatpush1.bf16.msra.mxu1 %v5205_v49  ;;  %4851 = vmatprep.subr.bf16.mxu0 %v5479_v29  ;;  %v5482_v49 = vmov -1e+30  }
  0x62   :  { %825 = vmatprep.subr.bf16.mxu1 %v5211_v51 }
  0x64   :  { %4852 = vmatpush3.bf16.msra.mxu0 %v5212_v53 }
  0x65   :  { %826 = vmatpush1.bf16.msra.mxu1 %v5209_v52  ;;  %4853 = vmatprep.subr.bf16.mxu0 %v5479_v29 }
  0x66   :  { %827 = vmatprep.subr.bf16.mxu1 %v5215_v54 }
  0x68   :  { %4854 = vmatpush3.bf16.msra.mxu0 %v5216_v56 }
  0x69   :  { %828 = vmatpush1.bf16.msra.mxu1 %v5213_v55  ;;  %4855 = vmatprep.subr.bf16.mxu0 %v5479_v29 }
  0x6a   :  { %829 = vmatprep.subr.bf16.mxu1 %v5219_v57 }
  0x6c   :  { %4856 = vmatpush3.bf16.msra.mxu0 %v5220_v59 }
  0x6d   :  { %830 = vmatpush1.bf16.msra.mxu1 %v5217_v58  ;;  %4885 = vmatprep.subr.bf16.mxu0 %v5479_v29 }
  0x6e   :  { %4861 = vmatprep.subr.bf16.mxu1 %v5479_v29 }
 0x100   :  { %v4638_v2 = vpop.f32.mrb[0].mxu0 }
 0x101   :  { %v4660_v3 = vpop.f32.mrb[0].mxu1  ;;  %v4639_v4 = vpop.f32.mrb[1].mxu0 }
 0x102   :  { %v4640_v5 = vadd.f32 %v4639_v4, %v4638_v2  ;;  %v4661_v6 = vpop.f32.mrb[1].mxu1  ;;  %v4641_v7 = vpop.f32.mrb[2].mxu0 }
 0x103   :  { %v4662_v8 = vadd.f32 %v4661_v6, %v4660_v3  ;;  %v4663_v9 = vpop.f32.mrb[2].mxu1  ;;  %v4642_v10 = vpop.f32.mrb[3].mxu0 }
 0x104   :  { %v4643_v11 = vadd.f32 %v4642_v10, %v4641_v7  ;;  %v4664_v12 = vpop.f32.mrb[3].mxu1 }
 0x105   :  { %v546_v13 = vadd.f32 %v4662_v8, %v4640_v5  ;;  %v4665_v14 = vadd.f32 %v4664_v12, %v4663_v9  ;;  %v4335_v5 = vld [vmem:[%s6771_s2] ss:$0 sm:$0xff] }
 0x106   :  { %v4336_v9 = vld [vmem:[%s6745_s4] ss:$0 sm:$0xff] }
 0x107   :  { %v549_v15 = vadd.f32 %v4665_v14, %v4643_v11  ;;  %v64_v14 = vlaneseq }
 0x109   :  { %v65_v48 = vand.u32 127, %v64_v14 }
 0x10b   :  { %vm66_vm3 = vcmp.lt.s32.totalorder %v65_v48, 5 }
 0x10c   :  { %v5928_v50 = vsel %vm66_vm3, 0.0, %v5482_v49 }
 0x120   :  { %v4682_v16 = vpop.f32.mrb[4].mxu0 }
 0x121   :  { %v4683_v17 = vpop.f32.mrb[5].mxu0 }
 0x122   :  { %v4684_v18 = vadd.f32 %v4683_v17, %v4682_v16  ;;  %v4685_v19 = vpop.f32.mrb[6].mxu0  ;;  %v670_v17 = vld [vmem:[%s6747_s6] sm:$0x7] }
 0x123   :  { %v4686_v20 = vpop.f32.mrb[7].mxu0 }
 0x124   :  { %v587_v22 = vadd.f32 %v4684_v18, %v546_v13  ;;  %v4687_v23 = vadd.f32 %v4686_v20, %v4685_v19 }
 0x126   :  { %v590_v24 = vadd.f32 %v4687_v23, %v549_v15  ;;  %v5770_v25 = vadd.f32 %v593_v21, %v587_v22  ;;  %v5883_v15 = vshrl.u32 %v64_v14, 7 }
 0x128   :  { %598 = vadd.xlane.f32.xlu0 %v5770_v25  ;;  %v5773_v26 = vadd.f32 %v593_v21, %v590_v24  ;;  %v5886_v16 = vsub.s32 1, %v5883_v15  ;;  %v682_v18 = vsub.s32 2, %v5883_v15  ;;  %v5894_v20 = vsub.s32 0, %v5883_v15 }
 0x12a   :  { %v679_v19 = vrot.slane %v670_v17, %v5886_v16  ;;  %v683_v23 = vrot.slane %v670_v17, %v682_v18 }
 0x12c   :  { %600 = vadd.xlane.f32.xlu0 %v5773_v26 }
 0x1b5   :  { %v599_v33 = vpop.xlane.xlu0 %598 }
 0x1b6   :  { %v603_v34 = vmul.f32 0.0078125, %v599_v33 }
 0x1b8   :  { %v5794_v35 = vsub.f32 %v5770_v25, %v603_v34 }
 0x1b9   :  { %v601_v36 = vpop.xlane.xlu0 %600 }
 0x1ba   :  { %v604_v37 = vmul.f32 0.0078125, %v601_v36  ;;  %v607_v38 = vmul.f32 %v5794_v35, %v5794_v35 }
 0x1bc   :  { %v5799_v39 = vsub.f32 %v5773_v26, %v604_v37  ;;  %609 = vadd.xlane.f32.xlu1 %v607_v38 }
 0x1be   :  { %v608_v40 = vmul.f32 %v5799_v39, %v5799_v39 }
 0x1c0   :  { %611 = vadd.xlane.f32.xlu1 %v608_v40 }
 0x249   :  { %v610_v61 = vpop.xlane.xlu1 %609 }
 0x24a   :  { %v613_v62 = vmul.f32 0.0078125, %v610_v61 }
 0x24c   :  { %v615_v63 = vadd.f32 1e-06, %v613_v62 }
 0x24d   :  { %v612_v0 = vpop.xlane.xlu1 %611 }
 0x24e   :  { %5357 = vrsqrt.f32 %v615_v63  ;;  %v614_v1 = vmul.f32 0.0078125, %v612_v0 }
 0x250   :  { %v616_v2 = vadd.f32 1e-06, %v614_v1 }
 0x252   :  { %5359 = vrsqrt.f32 %v616_v2 }
 0x258   :  { %v5358_v3 = vpop.eup %5357 }
 0x259   :  { %v619_v4 = vmul.f32 %v5358_v3, %v5794_v35  ;;  %v675_v35 = vrot.slane %v670_v17, %v5894_v20 }
 0x25b   :  { %v627_v8 = vmul.f32 %v4335_v5, %v619_v4 }
 0x25c   :  { %v5360_v6 = vpop.eup %5359 }
 0x25d   :  { %v620_v7 = vmul.f32 %v5360_v6, %v5799_v39  ;;  %v635_v11 = vadd.f32 %v4336_v9, %v627_v8 }
 0x25f   :  { %v628_v10 = vmul.f32 %v4335_v5, %v620_v7 }
 0x261   :  { %v636_v12 = vadd.f32 %v4336_v9, %v628_v10 }
 0x263   :  { %v637_v13 = vpack.c.bf16 %v636_v12, %v635_v11 }
 0x265   :  { %848 = vmatmul.mubr.bf16.vlgmr.msra.gmra.mrb[4].mxu1 %v637_v13  ;;  %4858 = vmatmul.mubr.bf16.vlgmr.msra.gmra.mrb[8].mxu0 %v637_v13 }
 0x266   :  { %4863 = vmatprep.mubr.msk.bf16.mxu1 %vm5481_vm0, %v5479_v29  ;;  %4887 = vmatprep.mubr.msk.bf16.mxu0 %vm5481_vm0, %v5479_v29 }
 0x338   :  { %v849_v21 = vpop.f32.mrb[4].mxu1  ;;  %v892_v22 = vpop.f32.mrb[8].mxu0 }
 0x339   :  { %v851_v24 = vpop.f32.mrb[5].mxu1  ;;  %v4859_v27 = vpop.f32.mrb[9].mxu0  ;;  %v850_v39 = vadd.f32 %v849_v21, %v675_v35  ;;  %v893_v42 = vadd.f32 %v892_v22, %v683_v23 }
 0x33a   :  { %v852_v28 = vadd.f32 %v851_v24, %v679_v19  ;;  %v853_v30 = vpop.f32.mrb[6].mxu1  ;;  %v895_v31 = vpop.f32.mrb[10].mxu0 }
 0x33b   :  { %v5898_v32 = vadd.f32 %v895_v31, %v683_v23  ;;  %v855_v33 = vpop.f32.mrb[7].mxu1  ;;  %v4860_v34 = vpop.f32.mrb[11].mxu0  ;;  %v5908_v41 = vpack.c.bf16 %v850_v39, %v850_v39  ;;  %v854_v44 = vadd.f32 %v853_v30, %v675_v35  ;;  %v5917_v45 = vpack.c.bf16 %v893_v42, %v893_v42 }
 0x33c   :  { %v5901_v36 = vpack.c.bf16 %v852_v28, %v852_v28  ;;  %v856_v37 = vadd.f32 %v855_v33, %v679_v19 }
 0x33d   :  { %v5919_v46 = vpack.c.bf16 %v854_v44, %v854_v44  ;;  %v1032_v47 = vsel %vm1030_vm2, %v5917_v45, 0  ;;  %v5948_v22 = vpack.c.bf16 %v5898_v32, %v5898_v32 }
 0x33e   :  { %v908_v38 = vsel %vm903_vm1, %v5901_v36, 0  ;;  %v5906_v40 = vpack.c.bf16 %v856_v37, %v856_v37 }
 0x33f   :  { %4862 = vmatpush3.bf16.xpose.msra.mxu1 %v908_v38  ;;  %v1078_v28 = vsel %vm1030_vm2, %v5948_v22, 0 }
 0x340   :  { %4867 = vmatprep.subr.bf16.mxu1 %v5479_v29  ;;  %v954_v43 = vsel %vm903_vm1, %v5906_v40, 0 }
 0x346   :  { %4864 = vmatmul.mubr.msk.bf16.vlgmr.msra.gmra.mrb[8].mxu1 %vm903_vm1, %v5908_v41 }
 0x347   :  { %4868 = vmatpush3.bf16.xpose.msra.mxu1 %v954_v43  ;;  %4869 = vmatprep.mubr.msk.bf16.mxu1 %vm5481_vm0, %v5479_v29 }
 0x348   :  { %4873 = vmatprep.subr.bf16.mxu1 %v5479_v29 }
 0x34e   :  { %4870 = vmatmul.mubr.msk.bf16.vlgmr.msra.gmra.mrb[12].mxu1 %vm903_vm1, %v5919_v46 }
 0x34f   :  { %4874 = vmatpush3.bf16.msra.mxu1 %v1032_v47  ;;  %4875 = vmatprep.mubr.msk.bf16.mxu1 %vm5481_vm0, %v5479_v29 }
 0x350   :  { %4879 = vmatprep.subr.bf16.mxu1 %v5479_v29 }
 0x419   :  { %v944_v51 = vpop.f32.mrb[8].mxu1 }
 0x41a   :  { %v996_v52 = vmul.f32 0.17677669, %v944_v51  ;;  %v4865_v53 = vpop.f32.mrb[9].mxu1 }
 0x41b   :  { %v947_v54 = vpop.f32.mrb[10].mxu1 }
 0x41c   :  { %v4866_v55 = vpop.f32.mrb[11].mxu1  ;;  %v998_v56 = vadd.f32 %v996_v52, %v5928_v50 }
 0x41e   :  { %v1001_v57 = vsel %vm1000_vm4, %v998_v56, -inf }
 0x41f   :  { %1002 = vmax.xlane.f32.xlu0 %v1001_v57 }
 0x421   :  { %v990_v58 = vpop.f32.mrb[12].mxu1 }
 0x422   :  { %v997_v59 = vmul.f32 0.17677669, %v990_v58  ;;  %v4871_v61 = vpop.f32.mrb[13].mxu1 }
 0x423   :  { %v993_v62 = vpop.f32.mrb[14].mxu1 }
 0x424   :  { %v4872_v63 = vpop.f32.mrb[15].mxu1  ;;  %v999_v0 = vadd.f32 %v997_v59, %v5928_v50 }
 0x426   :  { %v1004_v1 = vsel %vm1000_vm4, %v999_v0, -inf }
 0x427   :  { %1005 = vmax.xlane.f32.xlu1 %v1004_v1 }
 0x438   :  { %1178 = vrot.lane.b32.xlu1 %v5906_v40, %s5483_s27 }
 0x4ac   :  { %v1003_v2 = vpop.xlane.xlu0 %1002 }
 0x4ad   :  { %v1007_v3 = vsub.f32 %v998_v56, %v1003_v2 }
 0x4af   :  { %v1009_v4 = vmul.f32 1.442695, %v1007_v3 }
 0x4b1   :  { %5361 = vpow2.f32 %v1009_v4 }
 0x4b4   :  { %v1006_v5 = vpop.xlane.xlu1 %1005 }
 0x4b5   :  { %v1008_v6 = vsub.f32 %v999_v0, %v1006_v5 }
 0x4b7   :  { %v1011_v7 = vmul.f32 1.442695, %v1008_v6 }
 0x4b8   :  { %v1179_v13 = vpop.permute.xlu1 %1178 }
 0x4b9   :  { %5363 = vpow2.f32 %v1011_v7  ;;  %v1184_v33 = vsel %vm903_vm1, %v1179_v13, 0 }
 0x4bb   :  { %v5362_v8 = vpop.eup %5361 }
 0x4bc   :  { %v1013_v9 = vsel %vm1000_vm4, %v5362_v8, 0.0 }
 0x4bd   :  { %1014 = vadd.xlane.f32.xlu0 %v1013_v9 }
 0x4c3   :  { %v5364_v10 = vpop.eup %5363 }
 0x4c4   :  { %v1016_v11 = vsel %vm1000_vm4, %v5364_v10, 0.0 }
 0x4c5   :  { %1017 = vadd.xlane.f32.xlu1 %v1016_v11 }
 0x4d3   :  { %1126 = vrot.lane.b32.xlu0 %v5901_v36, %s5483_s27 }
 0x4d6   :  { %1123 = vrot.lane.b32.xlu1 %v5908_v41, %s5483_s27 }
 0x4da   :  { %1175 = vrot.lane.b32.xlu1 %v5919_v46, %s5483_s27 }
 0x54a   :  { %v1015_v12 = vpop.xlane.xlu0 %1014 }
 0x54b   :  { %5365 = vrcp.f32 %v1015_v12 }
 0x54e   :  { %v1127_v14 = vpop.permute.xlu0 %1126 }
 0x54f   :  { %v1132_v17 = vsel %vm903_vm1, %v1127_v14, 0 }
 0x550   :  { %4886 = vmatpush3.bf16.xpose.msra.mxu0 %v1132_v17 }
 0x551   :  { %4897 = vmatprep.subr.bf16.mxu0 %v5479_v29 }
 0x552   :  { %v1018_v19 = vpop.xlane.xlu1 %1017 }
 0x553   :  { %5367 = vrcp.f32 %v1018_v19 }
 0x555   :  { %v5366_v21 = vpop.eup %5365 }
 0x556   :  { %v1021_v23 = vmul.f32 %v5366_v21, %v5362_v8  ;;  %v1124_v24 = vpop.permute.xlu1 %1123 }
 0x557   :  { %4888 = vmatmul.mubr.msk.bf16.vlgmr.msra.gmra.mrb[12].mxu0 %vm903_vm1, %v1124_v24 }
 0x558   :  { %v1023_v27 = vpack.c.bf16 %v1021_v23, %v1021_v23  ;;  %4899 = vmatprep.mubr.msk.bf16.mxu0 %vm5481_vm0, %v5479_v29 }
 0x55a   :  { %4876 = vmatmul.mubr.msk.bf16.vlgmr.msra.gmra.mrb[16].mxu1 %vm1000_vm4, %v1023_v27  ;;  %v1176_v34 = vpop.permute.xlu1 %1175 }
 0x55b   :  { %4880 = vmatpush3.bf16.msra.mxu1 %v1078_v28  ;;  %4881 = vmatprep.mubr.msk.bf16.mxu1 %vm5481_vm0, %v5479_v29 }
 0x55c   :  { %4891 = vmatprep.subr.bf16.mxu1 %v5479_v29 }
 0x55d   :  { %v5368_v30 = vpop.eup %5367 }
 0x55e   :  { %v1022_v31 = vmul.f32 %v5368_v30, %v5364_v10 }
 0x560   :  { %v1024_v32 = vpack.c.bf16 %v1022_v31, %v1022_v31 }
 0x562   :  { %4882 = vmatmul.mubr.msk.bf16.vlgmr.msra.gmra.mrb[20].mxu1 %vm1000_vm4, %v1024_v32 }
 0x563   :  { %4893 = vmatprep.mubr.msk.bf16.mxu1 %vm5481_vm0, %v5479_v29 }
 0x564   :  { %4892 = vmatpush3.bf16.xpose.msra.mxu1 %v1184_v33 }
 0x565   :  { %4903 = vmatprep.subr.bf16.mxu1 %v5479_v29 }
 0x56b   :  { %4894 = vmatmul.mubr.msk.bf16.vlgmr.msra.gmra.mrb[24].mxu1 %vm903_vm1, %v1176_v34 }
 0x56c   :  { %4905 = vmatprep.mubr.msk.bf16.mxu1 %vm5481_vm0, %v5479_v29 }
 0x62a   :  { %v1168_v35 = vpop.f32.mrb[12].mxu0 }
 0x62b   :  { %v1226_v37 = vmul.f32 0.17677669, %v1168_v35  ;;  %v4889_v38 = vpop.f32.mrb[13].mxu0 }
 0x62c   :  { %v1171_v39 = vpop.f32.mrb[14].mxu0 }
 0x62d   :  { %v1068_v42 = vpop.f32.mrb[16].mxu1  ;;  %v4890_v43 = vpop.f32.mrb[15].mxu0  ;;  %v1228_v44 = vadd.f32 %v1226_v37, %v5928_v50 }
 0x62e   :  { %1120 = vst.msk [vmem:[#allocation2] sm:$0xff] %vm903_vm1, %v1068_v42  ;;  %v4877_v47 = vpop.f32.mrb[17].mxu1 }
 0x62f   :  { %v1071_v48 = vpop.f32.mrb[18].mxu1  ;;  %v1230_v49 = vsel %vm1000_vm4, %v1228_v44, -inf }
 0x630   :  { %v4878_v51 = vpop.f32.mrb[19].mxu1  ;;  %1231 = vmax.xlane.f32.xlu0 %v1230_v49 }
 0x635   :  { %v1114_v52 = vpop.f32.mrb[20].mxu1 }
 0x636   :  { %1121 = vst.msk [vmem:[#allocation2 + $0x8] sm:$0xff] %vm903_vm1, %v1114_v52  ;;  %v4883_v53 = vpop.f32.mrb[21].mxu1 }
 0x637   :  { %v1117_v54 = vpop.f32.mrb[22].mxu1 }
 0x638   :  { %v4884_v55 = vpop.f32.mrb[23].mxu1 }
 0x63e   :  { %v1220_v56 = vpop.f32.mrb[24].mxu1 }
 0x63f   :  { %v1227_v57 = vmul.f32 0.17677669, %v1220_v56  ;;  %v4895_v58 = vpop.f32.mrb[25].mxu1 }
 0x640   :  { %v1223_v59 = vpop.f32.mrb[26].mxu1 }
 0x641   :  { %v4896_v61 = vpop.f32.mrb[27].mxu1  ;;  %v1229_v62 = vadd.f32 %v1227_v57, %v5928_v50 }
 0x643   :  { %v1233_v63 = vsel %vm1000_vm4, %v1229_v62, -inf }
 0x644   :  { %1234 = vmax.xlane.f32.xlu1 %v1233_v63 }
 0x655   :  { %1304 = vrot.lane.b32.xlu1 %v5948_v22, %s5483_s27 }
 0x659   :  { %1365 = vrot.lane.b32.xlu1 %v5901_v36, %s5484_s28 }
 0x65d   :  { %1415 = vrot.lane.b32.xlu1 %v5906_v40, %s5484_s28 }
 0x661   :  { %1413 = vrot.lane.b32.xlu1 %v5919_v46, %s5484_s28 }
 0x6bd   :  { %v1232_v0 = vpop.xlane.xlu0 %1231 }
 0x6be   :  { %v1236_v1 = vsub.f32 %v1228_v44, %v1232_v0 }
 0x6c0   :  { %v1238_v2 = vmul.f32 1.442695, %v1236_v1 }
 0x6c2   :  { %5369 = vpow2.f32 %v1238_v2 }
 0x6cc   :  { %v5370_v3 = vpop.eup %5369 }
 0x6cd   :  { %v1242_v4 = vsel %vm1000_vm4, %v5370_v3, 0.0 }
 0x6ce   :  { %1243 = vadd.xlane.f32.xlu0 %v1242_v4 }
 0x6d1   :  { %v1235_v5 = vpop.xlane.xlu1 %1234 }
 0x6d2   :  { %v1237_v6 = vsub.f32 %v1229_v62, %v1235_v5 }
 0x6d4   :  { %v1240_v7 = vmul.f32 1.442695, %v1237_v6 }
 0x6d5   :  { %v1305_v8 = vpop.permute.xlu1 %1304 }
 0x6d6   :  { %5371 = vpow2.f32 %v1240_v7  ;;  %v1310_v9 = vsel %vm1030_vm2, %v1305_v8, 0 }
 0x6d7   :  { %4904 = vmatpush3.bf16.msra.mxu1 %v1310_v9 }
 0x6d8   :  { %4915 = vmatprep.subr.bf16.mxu1 %v5479_v29 }
 0x6d9   :  { %v1366_v23 = vpop.permute.xlu1 %1365 }
 0x6da   :  { %v1371_v31 = vsel %vm903_vm1, %v1366_v23, 0 }
 0x6dd   :  { %v1416_v30 = vpop.permute.xlu1 %1415 }
 0x6de   :  { %v1421_v33 = vsel %vm903_vm1, %v1416_v30, 0 }
 0x6e0   :  { %v5372_v10 = vpop.eup %5371 }
 0x6e1   :  { %v1245_v11 = vsel %vm1000_vm4, %v5372_v10, 0.0  ;;  %v1414_v35 = vpop.permute.xlu1 %1413 }
 0x6e2   :  { %1246 = vadd.xlane.f32.xlu0 %v1245_v11 }
 0x6f8   :  { %1255 = vrot.lane.b32.xlu0 %v5917_v45, %s5483_s27 }
 0x6fc   :  { %1363 = vrot.lane.b32.xlu0 %v5908_v41, %s5484_s28 }
 0x75b   :  { %v1244_v12 = vpop.xlane.xlu0 %1243 }
 0x75c   :  { %5373 = vrcp.f32 %v1244_v12 }
 0x766   :  { %v5374_v13 = vpop.eup %5373 }
 0x767   :  { %v1250_v17 = vmul.f32 %v5374_v13, %v5370_v3 }
 0x769   :  { %v1252_v24 = vpack.c.bf16 %v1250_v17, %v1250_v17 }
 0x76f   :  { %v1247_v14 = vpop.xlane.xlu0 %1246 }
 0x770   :  { %5375 = vrcp.f32 %v1247_v14 }
 0x773   :  { %v1256_v19 = vpop.permute.xlu0 %1255 }
 0x774   :  { %v1261_v21 = vsel %vm1030_vm2, %v1256_v19, 0 }
 0x775   :  { %4898 = vmatpush3.bf16.msra.mxu0 %v1261_v21 }
 0x776   :  { %4909 = vmatprep.subr.bf16.mxu0 %v5479_v29 }
 0x777   :  { %v1364_v34 = vpop.permute.xlu0 %1363 }
 0x778   :  { %4900 = vmatmul.mubr.msk.bf16.vlgmr.msra.gmra.mrb[16].mxu0 %vm1000_vm4, %v1252_v24 }
 0x779   :  { %4911 = vmatprep.mubr.msk.bf16.mxu0 %vm5481_vm0, %v5479_v29 }
 0x77a   :  { %v5376_v27 = vpop.eup %5375 }
 0x77b   :  { %v1251_v28 = vmul.f32 %v5376_v27, %v5372_v10 }
 0x77d   :  { %v1253_v32 = vpack.c.bf16 %v1251_v28, %v1251_v28 }
 0x77e   :  { %4910 = vmatpush3.bf16.xpose.msra.mxu0 %v1371_v31 }
 0x77f   :  { %4906 = vmatmul.mubr.msk.bf16.vlgmr.msra.gmra.mrb[28].mxu1 %vm1000_vm4, %v1253_v32  ;;  %4921 = vmatprep.subr.bf16.mxu0 %v5479_v29 }
 0x780   :  { %4916 = vmatpush3.bf16.xpose.msra.mxu1 %v1421_v33  ;;  %4917 = vmatprep.mubr.msk.bf16.mxu1 %vm5481_vm0, %v5479_v29 }
 0x781   :  { %4927 = vmatprep.subr.bf16.mxu1 %v5479_v29 }
 0x785   :  { %4912 = vmatmul.mubr.msk.bf16.vlgmr.msra.gmra.mrb[20].mxu0 %vm903_vm1, %v1364_v34 }
 0x786   :  { %4923 = vmatprep.mubr.msk.bf16.mxu0 %vm5481_vm0, %v5479_v29 }
 0x787   :  { %4918 = vmatmul.mubr.msk.bf16.vlgmr.msra.gmra.mrb[32].mxu1 %vm903_vm1, %v1414_v35 }
 0x788   :  { %4929 = vmatprep.mubr.msk.bf16.mxu1 %vm5481_vm0, %v5479_v29 }
 0x84b   :  { %v6007_v37 = vpop.f32.mrb[16].mxu0 }
 0x84c   :  { %v4901_v38 = vpop.f32.mrb[17].mxu0 }
 0x84d   :  { %v1300_v39 = vpop.f32.mrb[18].mxu0 }
 0x84e   :  { %v4902_v42 = vpop.f32.mrb[19].mxu0 }
 0x852   :  { %v6009_v43 = vpop.f32.mrb[28].mxu1 }
 0x853   :  { %v4907_v44 = vpop.f32.mrb[29].mxu1 }
 0x854   :  { %v1349_v47 = vpop.f32.mrb[30].mxu1 }
 0x855   :  { %v4908_v48 = vpop.f32.mrb[31].mxu1 }
 0x858   :  { %v1407_v49 = vpop.f32.mrb[20].mxu0 }
 0x859   :  { %v1463_v51 = vmul.f32 0.17677669, %v1407_v49  ;;  %v4913_v52 = vpop.f32.mrb[21].mxu0 }
 0x85a   :  { %v1410_v53 = vpop.f32.mrb[22].mxu0  ;;  %v1457_v54 = vpop.f32.mrb[32].mxu1 }
 0x85b   :  { %v1464_v55 = vmul.f32 0.17677669, %v1457_v54  ;;  %v4914_v56 = vpop.f32.mrb[23].mxu0  ;;  %v4919_v57 = vpop.f32.mrb[33].mxu1  ;;  %v1465_v58 = vadd.f32 %v1463_v51, %v5928_v50 }
 0x85c   :  { %v1460_v59 = vpop.f32.mrb[34].mxu1 }
 0x85d   :  { %v4920_v61 = vpop.f32.mrb[35].mxu1  ;;  %v1467_v62 = vsel %vm1000_vm4, %v1465_v58, -inf  ;;  %v1466_v63 = vadd.f32 %v1464_v55, %v5928_v50 }
 0x85e   :  { %1468 = vmax.xlane.f32.xlu0 %v1467_v62 }
 0x85f   :  { %v1470_v0 = vsel %vm1000_vm4, %v1466_v63, -inf }
 0x860   :  { %1471 = vmax.xlane.f32.xlu1 %v1470_v0 }
 0x871   :  { %1539 = vrot.lane.b32.xlu1 %v5948_v22, %s5484_s28 }
 0x875   :  { %1600 = vrot.lane.b32.xlu1 %v5901_v36, %s5485_s20 }
 0x879   :  { %1650 = vrot.lane.b32.xlu1 %v5906_v40, %s5485_s20 }
 0x87d   :  { %1648 = vrot.lane.b32.xlu1 %v5919_v46, %s5485_s20 }
 0x8eb   :  { %v1469_v1 = vpop.xlane.xlu0 %1468 }
 0x8ec   :  { %v1473_v2 = vsub.f32 %v1465_v58, %v1469_v1 }
 0x8ed   :  { %v1472_v3 = vpop.xlane.xlu1 %1471 }
 0x8ee   :  { %v1475_v4 = vmul.f32 1.442695, %v1473_v2  ;;  %v1474_v5 = vsub.f32 %v1466_v63, %v1472_v3 }
 0x8f0   :  { %5377 = vpow2.f32 %v1475_v4  ;;  %v1477_v6 = vmul.f32 1.442695, %v1474_v5 }
 0x8f1   :  { %v1540_v7 = vpop.permute.xlu1 %1539 }
 0x8f2   :  { %5379 = vpow2.f32 %v1477_v6  ;;  %v1545_v8 = vsel %vm1030_vm2, %v1540_v7, 0 }
 0x8f3   :  { %4928 = vmatpush3.bf16.msra.mxu1 %v1545_v8 }
 0x8f4   :  { %4939 = vmatprep.subr.bf16.mxu1 %v5479_v29 }
 0x8f5   :  { %v1601_v17 = vpop.permute.xlu1 %1600 }
 0x8f9   :  { %v1651_v27 = vpop.permute.xlu1 %1650 }
 0x8fa   :  { %v5378_v36 = vpop.eup %5377  ;;  %v1656_v30 = vsel %vm903_vm1, %v1651_v27, 0  ;;  %v5222_v27 = vld [vmem:[%s6748_s7 + $0x8] sm:$0xff]  }
 0x8fb   :  { %v1479_v40 = vsel %vm1000_vm4, %v5378_v36, 0.0 }
 0x8fc   :  { %v5380_v9 = vpop.eup %5379  ;;  %1480 = vadd.xlane.f32.xlu0 %v1479_v40 }
 0x8fd   :  { %v1482_v46 = vsel %vm1000_vm4, %v5380_v9, 0.0  ;;  %v1649_v32 = vpop.permute.xlu1 %1648 }
 0x900   :  { %1483 = vadd.xlane.f32.xlu0 %v1482_v46 }
 0x916   :  { %1491 = vrot.lane.b32.xlu0 %v5917_v45, %s5484_s28 }
 0x91a   :  { %1598 = vrot.lane.b32.xlu0 %v5908_v41, %s5485_s20  ;;  %v1606_v41 = vsel %vm903_vm1, %v1601_v17, 0 }
 0x989   :  { %v1481_v10 = vpop.xlane.xlu0 %1480 }
 0x98a   :  { %5381 = vrcp.f32 %v1481_v10 }
 0x98d   :  { %v1484_v11 = vpop.xlane.xlu0 %1483 }
 0x98e   :  { %5383 = vrcp.f32 %v1484_v11 }
 0x991   :  { %v1492_v12 = vpop.permute.xlu0 %1491 }
 0x992   :  { %v1497_v13 = vsel %vm1030_vm2, %v1492_v12, 0 }
 0x993   :  { %4922 = vmatpush3.bf16.msra.mxu0 %v1497_v13 }
 0x994   :  { %v5382_v14 = vpop.eup %5381  ;;  %4933 = vmatprep.subr.bf16.mxu0 %v5479_v29 }
 0x995   :  { %v1487_v19 = vmul.f32 %v5382_v14, %v5378_v36  ;;  %v1599_v31 = vpop.permute.xlu0 %1598 }
 0x997   :  { %v1489_v21 = vpack.c.bf16 %v1487_v19, %v1487_v19 }
 0x998   :  { %v5384_v23 = vpop.eup %5383 }
 0x999   :  { %v1488_v24 = vmul.f32 %v5384_v23, %v5380_v9  ;;  %4924 = vmatmul.mubr.msk.bf16.vlgmr.msra.gmra.mrb[24].mxu0 %vm1000_vm4, %v1489_v21 }
 0x99a   :  { %4935 = vmatprep.mubr.msk.bf16.mxu0 %vm5481_vm0, %v5479_v29 }
 0x99b   :  { %v1490_v28 = vpack.c.bf16 %v1488_v24, %v1488_v24  ;;  %v5221_v24 = vld [vmem:[%s6748_s7] sm:$0xff]  }
 0x99c   :  { %4934 = vmatpush3.bf16.xpose.msra.mxu0 %v1606_v41  ;;  %v5223_v41 = vld [vmem:[%s6748_s7 + $0x10] sm:$0xff]  }
 0x99d   :  { %4930 = vmatmul.mubr.msk.bf16.vlgmr.msra.gmra.mrb[36].mxu1 %vm1000_vm4, %v1490_v28  ;;  %4945 = vmatprep.subr.bf16.mxu0 %v5479_v29  ;;  %v5224_v28 = vld [vmem:[%s6748_s7 + $0x18] sm:$0xff]  }
 0x99e   :  { %4940 = vmatpush3.bf16.xpose.msra.mxu1 %v1656_v30  ;;  %4941 = vmatprep.mubr.msk.bf16.mxu1 %vm5481_vm0, %v5479_v29  ;;  %v5225_v30 = vld [vmem:[%s6748_s7 + $0x20] sm:$0xff]  }
 0x99f   :  { %4951 = vmatprep.subr.bf16.mxu1 %v5479_v29 }
 0x9a3   :  { %4936 = vmatmul.mubr.msk.bf16.vlgmr.msra.gmra.mrb[28].mxu0 %vm903_vm1, %v1599_v31  ;;  %v5226_v31 = vld [vmem:[%s6748_s7 + $0x28] sm:$0xff]  }
 0x9a4   :  { %4947 = vmatprep.mubr.msk.bf16.mxu0 %vm5481_vm0, %v5479_v29 }
 0x9a5   :  { %4942 = vmatmul.mubr.msk.bf16.vlgmr.msra.gmra.mrb[40].mxu1 %vm903_vm1, %v1649_v32  ;;  %v5227_v32 = vld [vmem:[%s6748_s7 + $0x30] sm:$0xff]  }
 0x9a6   :  { %4953 = vmatprep.mubr.msk.bf16.mxu1 %vm5481_vm0, %v5479_v29 }
 0xa6c   :  { %v1533_v33 = vpop.f32.mrb[24].mxu0 }
 0xa6d   :  { %v4925_v34 = vpop.f32.mrb[25].mxu0 }
 0xa6e   :  { %v1536_v35 = vpop.f32.mrb[26].mxu0 }
 0xa6f   :  { %v4926_v38 = vpop.f32.mrb[27].mxu0 }
 0xa70   :  { %v1581_v39 = vpop.f32.mrb[36].mxu1 }
 0xa71   :  { %v4931_v42 = vpop.f32.mrb[37].mxu1 }
 0xa72   :  { %v1584_v44 = vpop.f32.mrb[38].mxu1 }
 0xa73   :  { %v4932_v47 = vpop.f32.mrb[39].mxu1 }
 0xa76   :  { %v1642_v48 = vpop.f32.mrb[28].mxu0 }
 0xa77   :  { %v1698_v49 = vmul.f32 0.17677669, %v1642_v48  ;;  %v4937_v51 = vpop.f32.mrb[29].mxu0 }
 0xa78   :  { %v1645_v52 = vpop.f32.mrb[30].mxu0  ;;  %v1692_v53 = vpop.f32.mrb[40].mxu1 }
 0xa79   :  { %v1699_v54 = vmul.f32 0.17677669, %v1692_v53  ;;  %v4938_v55 = vpop.f32.mrb[31].mxu0  ;;  %v4943_v56 = vpop.f32.mrb[41].mxu1  ;;  %v1700_v57 = vadd.f32 %v1698_v49, %v5928_v50 }
 0xa7a   :  { %v1695_v58 = vpop.f32.mrb[42].mxu1  ;;  %v4385_v56 = vld [vmem:[%s6749_s8] ss:$0 sm:$0xff] }
 0xa7b   :  { %v4944_v59 = vpop.f32.mrb[43].mxu1  ;;  %v1702_v61 = vsel %vm1000_vm4, %v1700_v57, -inf  ;;  %v1701_v62 = vadd.f32 %v1699_v54, %v5928_v50 }
 0xa7c   :  { %1703 = vmax.xlane.f32.xlu0 %v1702_v61 }
 0xa7d   :  { %v1705_v63 = vsel %vm1000_vm4, %v1701_v62, -inf }
 0xa7e   :  { %1706 = vmax.xlane.f32.xlu1 %v1705_v63 }
 0xa8f   :  { %1774 = vrot.lane.b32.xlu1 %v5948_v22, %s5485_s20 }
 0xa93   :  { %1354 = vrot.lane.b32.xlu1 %v6007_v37, %s5485_s20 }
 0xa97   :  { %1356 = vrot.lane.b32.xlu1 %v6009_v43, %s5485_s20 }
 0xa9b   :  { %1591 = vrot.lane.b32.xlu1 %v1581_v39, %s5484_s28 }
 0xb09   :  { %v1704_v0 = vpop.xlane.xlu0 %1703 }
 0xb0a   :  { %v1708_v1 = vsub.f32 %v1700_v57, %v1704_v0 }
 0xb0b   :  { %v1707_v2 = vpop.xlane.xlu1 %1706 }
 0xb0c   :  { %v1710_v3 = vmul.f32 1.442695, %v1708_v1  ;;  %v1709_v4 = vsub.f32 %v1701_v62, %v1707_v2  ;;  %v5229_v1 = vld [vmem:[%s6752_s11] ss:$8 sps:$4 sm:$0xff]   ;;  %v5234_v2 = vld [vmem:[%s6752_s11 + $0x14] ss:$8 sps:$4 sm:$0xff]  }
 0xb0e   :  { %5385 = vpow2.f32 %v1710_v3  ;;  %v1712_v5 = vmul.f32 1.442695, %v1709_v4 }
 0xb0f   :  { %v1775_v6 = vpop.permute.xlu1 %1774 }
 0xb10   :  { %5387 = vpow2.f32 %v1712_v5  ;;  %v1780_v7 = vsel %vm1030_vm2, %v1775_v6, 0 }
 0xb11   :  { %4952 = vmatpush3.bf16.msra.mxu1 %v1780_v7 }
 0xb13   :  { %v1355_v22 = vpop.permute.xlu1 %1354 }
 0xb14   :  { %1361 = vst.msk [vmem:[#allocation2] sm:$0xff] %vm1360_vm5, %v1355_v22 }
 0xb17   :  { %v1357_v37 = vpop.permute.xlu1 %1356 }
 0xb18   :  { %v5386_v43 = vpop.eup %5385  ;;  %1362 = vst.msk [vmem:[#allocation2 + $0x8] sm:$0xff] %vm1360_vm5, %v1357_v37 }
 0xb19   :  { %v1714_v8 = vsel %vm1000_vm4, %v5386_v43, 0.0 }
 0xb1a   :  { %v5388_v36 = vpop.eup %5387  ;;  %1715 = vadd.xlane.f32.xlu0 %v1714_v8  ;;  %v5237_v8 = vld [vmem:[%s6752_s11 + $0x24] ss:$8 sps:$4 sm:$0xff]  }
 0xb1b   :  { %v1592_v40 = vpop.permute.xlu1 %1591  ;;  %v1717_v9 = vsel %vm1000_vm4, %v5388_v36, 0.0 }
 0xb1c   :  { %1597 = vst.msk [vmem:[#allocation2 + $0x8] sm:$0xff] %vm1595_vm6, %v1592_v40  ;;  %v5240_v40 = vld [vmem:[%s6752_s11 + $0x34] ss:$8 sps:$4 sm:$0xff]  }
 0xb1e   :  { %1718 = vadd.xlane.f32.xlu0 %v1717_v9  ;;  %v5238_v9 = vld [vmem:[%s6752_s11 + $0x30] ss:$8 sps:$4 sm:$0xff]  }
 0xb34   :  { %1726 = vrot.lane.b32.xlu0 %v5917_v45, %s5485_s20 }
 0xb38   :  { %1589 = vrot.lane.b32.xlu0 %v1533_v33, %s5484_s28  ;;  %v5228_v33 = vld [vmem:[%s6748_s7 + $0x38] sm:$0xff]  }
 0xba7   :  { %v1716_v46 = vpop.xlane.xlu0 %1715 }
 0xba8   :  { %5389 = vrcp.f32 %v1716_v46  ;;  %v5243_v46 = vld [vmem:[%s6752_s11 + $0x44] ss:$8 sps:$4 sm:$0xff]  }
 0xbab   :  { %v1719_v10 = vpop.xlane.xlu0 %1718 }
 0xbac   :  { %5391 = vrcp.f32 %v1719_v10  ;;  %v5241_v10 = vld [vmem:[%s6752_s11 + $0x40] ss:$8 sps:$4 sm:$0xff]  }
 0xbaf   :  { %v1727_v11 = vpop.permute.xlu0 %1726 }
 0xbb0   :  { %v1732_v12 = vsel %vm1030_vm2, %v1727_v11, 0  ;;  %v5246_v11 = vld [vmem:[%s6752_s11 + $0x54] ss:$8 sps:$4 sm:$0xff]  }
 0xbb1   :  { %4946 = vmatpush3.bf16.msra.mxu0 %v1732_v12  ;;  %v5244_v12 = vld [vmem:[%s6752_s11 + $0x50] ss:$8 sps:$4 sm:$0xff]  }
 0xbb2   :  { %v5390_v13 = vpop.eup %5389  ;;  %4957 = vmatprep.subr.bf16.mxu0 %v5479_v29 }
 0xbb3   :  { %v1722_v14 = vmul.f32 %v5390_v13, %v5386_v43  ;;  %v1590_v17 = vpop.permute.xlu0 %1589  ;;  %v5249_v13 = vld [vmem:[%s6752_s11 + $0x64] ss:$8 sps:$4 sm:$0xff]  }
 0xbb4   :  { %1596 = vst.msk [vmem:[#allocation2] sm:$0xff] %vm1595_vm6, %v1590_v17  ;;  %v5252_v17 = vld [vmem:[%s6752_s11 + $0x74] ss:$8 sps:$4 sm:$0xff]  }
 0xbb5   :  { %v1724_v19 = vpack.c.bf16 %v1722_v14, %v1722_v14  ;;  %v5247_v14 = vld [vmem:[%s6752_s11 + $0x60] ss:$8 sps:$4 sm:$0xff]  }
 0xbb6   :  { %v5392_v21 = vpop.eup %5391 }
 0xbb7   :  { %v1723_v45 = vmul.f32 %v5392_v21, %v5388_v36  ;;  %4948 = vmatmul.mubr.msk.bf16.vlgmr.msra.gmra.mrb[32].mxu0 %vm1000_vm4, %v1724_v19  ;;  %v5235_v36 = vld [vmem:[%s6752_s11 + $0x20] ss:$8 sps:$4 sm:$0xff]   ;;  %v5250_v19 = vld [vmem:[%s6752_s11 + $0x70] ss:$8 sps:$4 sm:$0xff]  }
 0xbb8   :  { %4973 = vmatprep.mubr.msk.bf16.mxu0 %vm5481_vm0, %v5479_v29  ;;  %4958 = vmatpush3.bf16.msra.mxu0 %v5221_v24  ;;  %v5253_v21 = vld [vmem:[%s6754_s13 + $0x40] sm:$0xff]   ;;  %v5256_v24 = vld [vmem:[%s6754_s13 + $0x8] sm:$0xff]  }
 0xbb9   :  { %v1725_v23 = vpack.c.bf16 %v1723_v45, %v1723_v45  ;;  %4959 = vmatprep.subr.bf16.mxu0 %v5479_v29  ;;  %v5254_v45 = vld [vmem:[%s6754_s13] sm:$0xff]  }
 0xbbb   :  { %4954 = vmatmul.mubr.msk.bf16.vlgmr.msra.gmra.mrb[44].mxu1 %vm1000_vm4, %v1725_v23  ;;  %v5255_v23 = vld [vmem:[%s6754_s13 + $0x48] sm:$0xff]  }
 0xbbc   :  { %2133 = vmatprep.mubr.bf16.mxu1 %v5480_v60  ;;  %4960 = vmatpush3.bf16.msra.mxu0 %v5222_v27 }
 0xbbd   :  { %4961 = vmatprep.subr.bf16.mxu0 %v5479_v29 }
 0xbc0   :  { %4962 = vmatpush3.bf16.msra.mxu0 %v5223_v41 }
 0xbc1   :  { %4963 = vmatprep.subr.bf16.mxu0 %v5479_v29 }
 0xbc4   :  { %4964 = vmatpush3.bf16.msra.mxu0 %v5224_v28 }
 0xbc5   :  { %4965 = vmatprep.subr.bf16.mxu0 %v5479_v29 }
 0xbc8   :  { %4966 = vmatpush3.bf16.msra.mxu0 %v5225_v30 }
 0xbc9   :  { %4967 = vmatprep.subr.bf16.mxu0 %v5479_v29 }
 0xbcc   :  { %4968 = vmatpush3.bf16.msra.mxu0 %v5226_v31 }
 0xbcd   :  { %4969 = vmatprep.subr.bf16.mxu0 %v5479_v29 }
 0xbd0   :  { %4970 = vmatpush3.bf16.msra.mxu0 %v5227_v32 }
 0xbd1   :  { %4971 = vmatprep.subr.bf16.mxu0 %v5479_v29 }
 0xbd4   :  { %4972 = vmatpush3.bf16.msra.mxu0 %v5228_v33 }
 0xbd5   :  { %4738 = vmatprep.subr.bf16.mxu0 %v5253_v21 }
 0xc8a   :  { %v1768_v34 = vpop.f32.mrb[32].mxu0 }
 0xc8b   :  { %1824 = vrot.lane.b32.xlu0 %v1768_v34, %s5483_s27  ;;  %v4949_v35 = vpop.f32.mrb[33].mxu0 }
 0xc8c   :  { %v1771_v38 = vpop.f32.mrb[34].mxu0  ;;  %v4386_v35 = vld [vmem:[%s6750_s9] ss:$0 sm:$0xff] }
 0xc8d   :  { %v4950_v39 = vpop.f32.mrb[35].mxu0 }
 0xc8e   :  { %v1816_v42 = vpop.f32.mrb[44].mxu1 }
 0xc8f   :  { %1826 = vrot.lane.b32.xlu1 %v1816_v42, %s5483_s27  ;;  %v4955_v44 = vpop.f32.mrb[45].mxu1 }
 0xc90   :  { %v1819_v47 = vpop.f32.mrb[46].mxu1  ;;  %v4387_v44 = vld [vmem:[%s6751_s10] ss:$0 sm:$0xff] }
 0xc91   :  { %v4956_v48 = vpop.f32.mrb[47].mxu1 }
 0xcfd   :  { %v1825_v49 = vpop.permute.xlu0 %1824 }
 0xcfe   :  { %1831 = vst.msk [vmem:[#allocation2] sm:$0xff] %vm1830_vm7, %v1825_v49 }
 0xd01   :  { %v1827_v51 = vpop.permute.xlu1 %1826 }
 0xd02   :  { %1832 = vst.msk [vmem:[#allocation2 + $0x8] sm:$0xff] %vm1830_vm7, %v1827_v51 }
 0xd05   :  { %v1833_v52 = vld [vmem:[#allocation2] sm:$0xff] }
 0xd09   :  { %v1834_v53 = vld [vmem:[#allocation2 + $0x8] sm:$0xff] }
 0xd0a   :  { %v1835_v54 = vpack.c.bf16 %v1834_v53, %v1833_v52  ;;  %v5257_v52 = vld [vmem:[%s6754_s13 + $0x50] sm:$0xff]  }
 0xd0b   :  { %v5258_v53 = vld [vmem:[%s6754_s13 + $0x10] sm:$0xff]  }
 0xd0c   :  { %4974 = vmatmul.mubr.bf16.vlgmr.msra.gmra.mrb[36].mxu0 %v1835_v54  ;;  %v5259_v54 = vld [vmem:[%s6754_s13 + $0x58] sm:$0xff]  }
 0xd0d   :  { %4739 = vmatpush3.bf16.msra.mxu0 %v5254_v45 }
 0xd0e   :  { %4740 = vmatprep.subr.bf16.mxu0 %v5255_v23 }
 0xd11   :  { %4741 = vmatpush3.bf16.msra.mxu0 %v5256_v24 }
 0xd12   :  { %4742 = vmatprep.subr.bf16.mxu0 %v5257_v52 }
 0xd15   :  { %4743 = vmatpush3.bf16.msra.mxu0 %v5258_v53  ;;  %v5269_v53 = vld [vmem:[%s6746_s5 + $0xc0] ss:$12 sps:$4 sm:$0xff]  }
 0xd16   :  { %4744 = vmatprep.subr.bf16.mxu0 %v5259_v54  ;;  %v5271_v54 = vld [vmem:[%s6746_s5 + $0xc4] ss:$12 sps:$4 sm:$0xff]  }
 0xddf   :  { %v1934_v55 = vpop.f32.mrb[36].mxu0 }
 0xde0   :  { %v1941_v57 = vadd.f32 %v1934_v55, %v5770_v25  ;;  %v4975_v58 = vpop.f32.mrb[37].mxu0  ;;  %v5231_v25 = vld [vmem:[%s6752_s11 + $0x4] ss:$8 sps:$4 sm:$0xff]   ;;  %v5260_v55 = vld [vmem:[%s6754_s13 + $0x18] sm:$0xff]  }
 0xde1   :  { %v1937_v59 = vpop.f32.mrb[38].mxu0  ;;  %2101 = vmatprep.subr.bf16.mxu1 %v5231_v25  ;;  %4745 = vmatpush3.bf16.msra.mxu0 %v5260_v55  ;;  %v5263_v58 = vld [vmem:[%s6754_s13 + $0x68] sm:$0xff]   ;;  %v5268_v25 = vld [vmem:[%s6754_s13 + $0x38] sm:$0xff]  }
 0xde2   :  { %v6116_v61 = vadd.f32 %v4385_v56, %v1941_v57  ;;  %v1942_v62 = vadd.f32 %v1937_v59, %v5773_v26  ;;  %v4976_v63 = vpop.f32.mrb[39].mxu0  ;;  %2102 = vmatpush1.bf16.msra.mxu1 %v5229_v1  ;;  %v5232_v26 = vld [vmem:[%s6752_s11 + $0x10] ss:$8 sps:$4 sm:$0xff]   ;;  %v5262_v57 = vld [vmem:[%s6754_s13 + $0x20] sm:$0xff]   ;;  %v5264_v59 = vld [vmem:[%s6754_s13 + $0x28] sm:$0xff]  }
 0xde3   :  { %2103 = vmatprep.subr.bf16.mxu1 %v5234_v2  ;;  %v5266_v63 = vld [vmem:[%s6754_s13 + $0x30] sm:$0xff]   ;;  %v5267_v1 = vld [vmem:[%s6754_s13 + $0x78] sm:$0xff]   ;;  %v2009_v2 = vld [vmem:[%s6753_s12] sm:$0x3] }
 0xde4   :  { %v6119_v0 = vadd.f32 %v4385_v56, %v1942_v62  ;;  %1954 = vadd.xlane.f32.xlu0 %v6116_v61  ;;  %v5261_v56 = vld [vmem:[%s6754_s13 + $0x60] sm:$0xff]   ;;  %v5265_v62 = vld [vmem:[%s6754_s13 + $0x70] sm:$0xff]   ;;  %v5275_v55 = vld [vmem:[%s6746_s5 + $0xdc] ss:$12 sps:$4 sm:$0xff]  }
 0xde5   :  { %4746 = vmatprep.subr.bf16.mxu0 %v5261_v56  ;;  %v5273_v56 = vld [vmem:[%s6746_s5 + $0xd8] ss:$12 sps:$4 sm:$0xff]  }
 0xde6   :  { %1956 = vadd.xlane.f32.xlu1 %v6119_v0  ;;  %2104 = vmatpush1.bf16.msra.mxu1 %v5232_v26  ;;  %v2014_v26 = vrot.slane %v2009_v2, %v5894_v20 }
 0xde7   :  { %2105 = vmatprep.subr.bf16.mxu1 %v5237_v8  ;;  %4747 = vmatpush3.bf16.msra.mxu0 %v5262_v57 }
 0xde8   :  { %4748 = vmatprep.subr.bf16.mxu0 %v5263_v58 }
 0xdea   :  { %2106 = vmatpush1.bf16.msra.mxu1 %v5235_v36 }
 0xdeb   :  { %2107 = vmatprep.subr.bf16.mxu1 %v5240_v40  ;;  %4749 = vmatpush3.bf16.msra.mxu0 %v5264_v59 }
 0xdec   :  { %4750 = vmatprep.subr.bf16.mxu0 %v5265_v62 }
 0xdee   :  { %2108 = vmatpush1.bf16.msra.mxu1 %v5238_v9 }
 0xdef   :  { %2109 = vmatprep.subr.bf16.mxu1 %v5243_v46  ;;  %4751 = vmatpush3.bf16.msra.mxu0 %v5266_v63 }
 0xdf0   :  { %4752 = vmatprep.subr.bf16.mxu0 %v5267_v1 }
 0xdf2   :  { %2110 = vmatpush1.bf16.msra.mxu1 %v5241_v10 }
 0xdf3   :  { %2111 = vmatprep.subr.bf16.mxu1 %v5246_v11  ;;  %4753 = vmatpush3.bf16.msra.mxu0 %v5268_v25 }
 0xdf4   :  { %4977 = vmatprep.subr.bf16.mxu0 %v5479_v29 }
 0xdf6   :  { %2112 = vmatpush1.bf16.msra.mxu1 %v5244_v12 }
 0xdf7   :  { %2113 = vmatprep.subr.bf16.mxu1 %v5249_v13 }
 0xdfa   :  { %2114 = vmatpush1.bf16.msra.mxu1 %v5247_v14 }
 0xdfb   :  { %2115 = vmatprep.subr.bf16.mxu1 %v5252_v17 }
 0xdfe   :  { %2116 = vmatpush1.bf16.msra.mxu1 %v5250_v19 }
 0xdff   :  { %2566 = vmatprep.subr.bf16.mxu1 %v5271_v54 }
 0xe71   :  { %v1955_v3 = vpop.xlane.xlu0 %1954 }
 0xe72   :  { %v1958_v4 = vmul.f32 0.0078125, %v1955_v3  ;;  %v2018_v3 = vrot.slane %v2009_v2, %v5886_v16 }
 0xe73   :  { %v1957_v5 = vpop.xlane.xlu1 %1956 }
 0xe74   :  { %v1960_v6 = vsub.f32 %v6116_v61, %v1958_v4  ;;  %v1959_v7 = vmul.f32 0.0078125, %v1957_v5 }
 0xe76   :  { %v1961_v22 = vsub.f32 %v6119_v0, %v1959_v7  ;;  %v1962_v37 = vmul.f32 %v1960_v6, %v1960_v6 }
 0xe78   :  { %1964 = vadd.xlane.f32.xlu0 %v1962_v37  ;;  %v1963_v43 = vmul.f32 %v1961_v22, %v1961_v22 }
 0xe7c   :  { %1966 = vadd.xlane.f32.xlu0 %v1963_v43 }
 0xf05   :  { %v1965_v27 = vpop.xlane.xlu0 %1964 }
 0xf06   :  { %v1968_v41 = vmul.f32 0.0078125, %v1965_v27 }
 0xf08   :  { %v1970_v28 = vadd.f32 1e-06, %v1968_v41 }
 0xf09   :  { %v1967_v30 = vpop.xlane.xlu0 %1966 }
 0xf0a   :  { %5393 = vrsqrt.f32 %v1970_v28  ;;  %v1969_v31 = vmul.f32 0.0078125, %v1967_v30 }
 0xf0c   :  { %v1971_v32 = vadd.f32 1e-06, %v1969_v31 }
 0xf0e   :  { %5395 = vrsqrt.f32 %v1971_v32 }
 0xf14   :  { %v5394_v33 = vpop.eup %5393 }
 0xf15   :  { %v1974_v34 = vmul.f32 %v5394_v33, %v1960_v6 }
 0xf17   :  { %v1982_v42 = vmul.f32 %v4386_v35, %v1974_v34 }
 0xf18   :  { %v5396_v38 = vpop.eup %5395 }
 0xf19   :  { %v1975_v39 = vmul.f32 %v5396_v38, %v1961_v22  ;;  %v1990_v48 = vadd.f32 %v4387_v44, %v1982_v42 }
 0xf1b   :  { %v1983_v47 = vmul.f32 %v4386_v35, %v1975_v39  ;;  %v4404_v35 = vld [vmem:[%s6755_s14] ss:$0 sm:$0xff] }
 0xf1d   :  { %v1991_v49 = vadd.f32 %v4387_v44, %v1983_v47 }
 0xf1f   :  { %v1992_v51 = vpack.c.bf16 %v1991_v49, %v1990_v48 }
 0xf21   :  { %2134 = vmatmul.mubr.bf16.vlgmr.msra.gmra.mrb[48].mxu1 %v1992_v51 }
 0xf22   :  { %2598 = vmatprep.mubr.bf16.mxu1 %v5480_v60  ;;  %2567 = vmatpush1.bf16.msra.mxu1 %v5269_v53 }
 0xf23   :  { %2568 = vmatprep.subr.bf16.mxu1 %v5275_v55 }
 0xf26   :  { %2569 = vmatpush1.bf16.msra.mxu1 %v5273_v56 }
 0xff4   :  { %v2135_v4 = vpop.f32.mrb[48].mxu1 }
 0xff5   :  { %v2136_v5 = vadd.f32 %v2135_v4, %v2014_v26  ;;  %v2137_v6 = vpop.f32.mrb[49].mxu1  ;;  %v5280_v4 = vld [vmem:[%s6746_s5 + $0xf8] ss:$12 sps:$4 sm:$0xff]  }
 0xff6   :  { %v2138_v7 = vadd.f32 %v2137_v6, %v2018_v3  ;;  %v2139_v22 = vpop.f32.mrb[50].mxu1  ;;  %v5281_v6 = vld [vmem:[%s6746_s5 + $0x108] ss:$12 sps:$4 sm:$0xff]  }
 0xff7   :  { %v2148_v37 = vmul.f32 0.70710677, %v2136_v5  ;;  %v2140_v43 = vadd.f32 %v2139_v22, %v2014_v26  ;;  %v2141_v8 = vpop.f32.mrb[51].mxu1  ;;  %v2144_v19 = vmul.f32 0.5, %v2136_v5  ;;  %v5279_v26 = vld [vmem:[%s6746_s5 + $0xf4] ss:$12 sps:$4 sm:$0xff]  }
 0xff8   :  { %v2149_v36 = vmul.f32 0.70710677, %v2138_v7  ;;  %v2142_v40 = vadd.f32 %v2141_v8, %v2018_v3  ;;  %v2145_v23 = vmul.f32 0.5, %v2138_v7  ;;  %v5277_v3 = vld [vmem:[%s6746_s5 + $0xf0] ss:$12 sps:$4 sm:$0xff]   ;;  %2570 = vmatprep.subr.bf16.mxu1 %v5279_v26 }
 0xff9   :  { %5397 = verf.f32 %v2148_v37  ;;  %v2150_v9 = vmul.f32 0.70710677, %v2140_v43  ;;  %v2146_v21 = vmul.f32 0.5, %v2140_v43  ;;  %2571 = vmatpush1.bf16.msra.mxu1 %v5277_v3  ;;  %v5283_v5 = vld [vmem:[%s6746_s5 + $0x10c] ss:$12 sps:$4 sm:$0xff]  }
 0xffa   :  { %5399 = verf.f32 %v2149_v36  ;;  %v2151_v46 = vmul.f32 0.70710677, %v2142_v40  ;;  %v2147_v24 = vmul.f32 0.5, %v2142_v40  ;;  %v5284_v7 = vld [vmem:[%s6746_s5 + $0x110] ss:$12 sps:$4 sm:$0xff]   ;;  %2572 = vmatprep.subr.bf16.mxu1 %v5283_v5 }
 0xffb   :  { %5401 = verf.f32 %v2150_v9  ;;  %v5287_v22 = vld [vmem:[%s6746_s5 + $0x124] ss:$12 sps:$4 sm:$0xff]   ;;  %v5285_v37 = vld [vmem:[%s6746_s5 + $0x120] ss:$12 sps:$4 sm:$0xff]   ;;  %v5288_v43 = vld [vmem:[%s6746_s5 + $0x128] ss:$12 sps:$4 sm:$0xff]  }
 0xffc   :  { %5403 = verf.f32 %v2151_v46  ;;  %v5291_v8 = vld [vmem:[%s6746_s5 + $0x13c] ss:$12 sps:$4 sm:$0xff]   ;;  %v5289_v36 = vld [vmem:[%s6746_s5 + $0x138] ss:$12 sps:$4 sm:$0xff]   ;;  %v5292_v40 = vld [vmem:[%s6746_s5 + $0x140] ss:$12 sps:$4 sm:$0xff]  }
 0xffd   :  { %2573 = vmatpush1.bf16.msra.mxu1 %v5281_v6  ;;  %v5295_v9 = vld [vmem:[%s6746_s5 + $0x154] ss:$12 sps:$4 sm:$0xff]   ;;  %v5293_v46 = vld [vmem:[%s6746_s5 + $0x150] ss:$12 sps:$4 sm:$0xff]  }
 0xffe   :  { %2574 = vmatprep.subr.bf16.mxu1 %v5287_v22 }
0x1001   :  { %2575 = vmatpush1.bf16.msra.mxu1 %v5285_v37 }
0x1002   :  { %2576 = vmatprep.subr.bf16.mxu1 %v5291_v8 }
0x1003   :  { %v5398_v10 = vpop.eup %5397 }
0x1004   :  { %v5400_v11 = vpop.eup %5399  ;;  %v2156_v12 = vadd.f32 1.0, %v5398_v10  ;;  %v5296_v10 = vld [vmem:[%s6746_s5 + $0x158] ss:$12 sps:$4 sm:$0xff]  }
0x1005   :  { %v5402_v13 = vpop.eup %5401  ;;  %v2157_v14 = vadd.f32 1.0, %v5400_v11  ;;  %2577 = vmatpush1.bf16.msra.mxu1 %v5289_v36  ;;  %v5299_v11 = vld [vmem:[%s6746_s5 + $0x16c] ss:$12 sps:$4 sm:$0xff]  }
0x1006   :  { %v5404_v17 = vpop.eup %5403  ;;  %v2158_v45 = vadd.f32 1.0, %v5402_v13  ;;  %v2160_v41 = vmul.f32 %v2156_v12, %v2144_v19  ;;  %2578 = vmatprep.subr.bf16.mxu1 %v5295_v9  ;;  %v5297_v12 = vld [vmem:[%s6746_s5 + $0x168] ss:$12 sps:$4 sm:$0xff]   ;;  %v5300_v13 = vld [vmem:[%s6746_s5 + $0x170] ss:$12 sps:$4 sm:$0xff]  }
0x1007   :  { %v2159_v27 = vadd.f32 1.0, %v5404_v17  ;;  %v2161_v30 = vmul.f32 %v2157_v14, %v2145_v23 }
0x1008   :  { %v2162_v28 = vmul.f32 %v2158_v45, %v2146_v21 }
0x1009   :  { %v2163_v31 = vmul.f32 %v2159_v27, %v2147_v24  ;;  %2579 = vmatpush1.bf16.msra.mxu1 %v5293_v46  ;;  %v4423_v27 = vld [vmem:[%s6771_s2 + $0x1] ss:$0 sm:$0xff] }
0x100a   :  { %v2164_v32 = vpack.c.bf16 %v2162_v28, %v2160_v41  ;;  %2580 = vmatprep.subr.bf16.mxu1 %v5299_v11 }
0x100b   :  { %v2165_v33 = vpack.c.bf16 %v2163_v31, %v2161_v30 }
0x100d   :  { %2333 = vmatprep.mubr.bf16.mxu0 %v2165_v33  ;;  %2581 = vmatpush1.bf16.msra.mxu1 %v5297_v12 }
0x100e   :  { %2334 = vmatmul.mubr.bf16.vlgmr.msra.gmra.mrb[40].mxu0 %v2164_v32  ;;  %4997 = vmatprep.subr.bf16.mxu1 %v5479_v29  ;;  %v4424_v32 = vld [vmem:[%s6745_s4 + $0x1] ss:$0 sm:$0xff] }
0x100f   :  { %4993 = vmatprep.mubr.msk.bf16.mxu0 %vm5481_vm0, %v5479_v29 }
0x10e1   :  { %v4754_v34 = vpop.f32.mrb[40].mxu0 }
0x10e2   :  { %v4755_v38 = vpop.f32.mrb[41].mxu0 }
0x10e3   :  { %v4756_v39 = vadd.f32 %v4755_v38, %v4754_v34  ;;  %v4757_v42 = vpop.f32.mrb[42].mxu0 }
0x10e4   :  { %v4758_v44 = vpop.f32.mrb[43].mxu0 }
0x10e5   :  { %v2336_v47 = vadd.f32 %v4756_v39, %v4404_v35  ;;  %v4759_v48 = vadd.f32 %v4758_v44, %v4757_v42  ;;  %v4457_v39 = vld [vmem:[%s6747_s6 + $0x3] sm:$0x7] }
0x10e6   :  { %v2430_v42 = vrot.slane %v4457_v39, %v5886_v16 }
0x10e7   :  { %v2339_v49 = vadd.f32 %v4759_v48, %v4404_v35  ;;  %v6240_v51 = vadd.f32 %v2336_v47, %v6116_v61  ;;  %v5272_v61 = vld [vmem:[%s6746_s5 + $0xc8] ss:$12 sps:$4 sm:$0xff]   ;;  %v2434_v48 = vrot.slane %v4457_v39, %v682_v18 }
0x10e8   :  { %4978 = vmatpush3.bf16.msra.mxu0 %v5272_v61 }
0x10e9   :  { %2348 = vadd.xlane.f32.xlu0 %v6240_v51  ;;  %v6244_v52 = vadd.f32 %v2339_v49, %v6119_v0  ;;  %v5276_v0 = vld [vmem:[%s6746_s5 + $0xe0] ss:$12 sps:$4 sm:$0xff]   ;;  %4979 = vmatprep.subr.bf16.mxu0 %v5479_v29 }
0x10eb   :  { %2350 = vadd.xlane.f32.xlu1 %v6244_v52 }
0x10ec   :  { %4980 = vmatpush3.bf16.msra.mxu0 %v5276_v0 }
0x10ed   :  { %4981 = vmatprep.subr.bf16.mxu0 %v5479_v29 }
0x10f0   :  { %4982 = vmatpush3.bf16.msra.mxu0 %v5280_v4 }
0x10f1   :  { %4983 = vmatprep.subr.bf16.mxu0 %v5479_v29 }
0x10f4   :  { %4984 = vmatpush3.bf16.msra.mxu0 %v5284_v7 }
0x10f5   :  { %4985 = vmatprep.subr.bf16.mxu0 %v5479_v29 }
0x10f8   :  { %4986 = vmatpush3.bf16.msra.mxu0 %v5288_v43 }
0x10f9   :  { %4987 = vmatprep.subr.bf16.mxu0 %v5479_v29 }
0x10fc   :  { %4988 = vmatpush3.bf16.msra.mxu0 %v5292_v40 }
0x10fd   :  { %4989 = vmatprep.subr.bf16.mxu0 %v5479_v29 }
0x1100   :  { %4990 = vmatpush3.bf16.msra.mxu0 %v5296_v10 }
0x1101   :  { %4991 = vmatprep.subr.bf16.mxu0 %v5479_v29 }
0x1104   :  { %4992 = vmatpush3.bf16.msra.mxu0 %v5300_v13 }
0x1105   :  { %5021 = vmatprep.subr.bf16.mxu0 %v5479_v29 }
0x1176   :  { %v2349_v57 = vpop.xlane.xlu0 %2348 }
0x1177   :  { %v2352_v58 = vmul.f32 0.0078125, %v2349_v57 }
0x1178   :  { %v2351_v59 = vpop.xlane.xlu1 %2350 }
0x1179   :  { %v2354_v62 = vsub.f32 %v6240_v51, %v2352_v58  ;;  %v2353_v63 = vmul.f32 0.0078125, %v2351_v59  ;;  %v2426_v58 = vrot.slane %v4457_v39, %v5894_v20 }
0x117b   :  { %v2355_v1 = vsub.f32 %v6244_v52, %v2353_v63  ;;  %v2356_v25 = vmul.f32 %v2354_v62, %v2354_v62 }
0x117d   :  { %2358 = vadd.xlane.f32.xlu0 %v2356_v25  ;;  %v2357_v2 = vmul.f32 %v2355_v1, %v2355_v1 }
0x117f   :  { %2360 = vadd.xlane.f32.xlu1 %v2357_v2 }
0x120a   :  { %v2359_v14 = vpop.xlane.xlu0 %2358 }
0x120b   :  { %v2362_v17 = vmul.f32 0.0078125, %v2359_v14 }
0x120c   :  { %v2361_v19 = vpop.xlane.xlu1 %2360 }
0x120d   :  { %v2364_v21 = vadd.f32 1e-06, %v2362_v17  ;;  %v2363_v45 = vmul.f32 0.0078125, %v2361_v19 }
0x120f   :  { %5405 = vrsqrt.f32 %v2364_v21  ;;  %v2365_v23 = vadd.f32 1e-06, %v2363_v45 }
0x1211   :  { %5407 = vrsqrt.f32 %v2365_v23 }
0x1219   :  { %v5406_v24 = vpop.eup %5405 }
0x121a   :  { %v2368_v41 = vmul.f32 %v5406_v24, %v2354_v62 }
0x121b   :  { %v5408_v28 = vpop.eup %5407 }
0x121c   :  { %v2369_v30 = vmul.f32 %v5408_v28, %v2355_v1  ;;  %v2376_v31 = vmul.f32 %v4423_v27, %v2368_v41 }
0x121e   :  { %v2377_v33 = vmul.f32 %v4423_v27, %v2369_v30  ;;  %v2384_v34 = vadd.f32 %v4424_v32, %v2376_v31 }
0x1220   :  { %v2385_v35 = vadd.f32 %v4424_v32, %v2377_v33 }
0x1222   :  { %v2386_v38 = vpack.c.bf16 %v2385_v35, %v2384_v34 }
0x1224   :  { %2599 = vmatmul.mubr.bf16.vlgmr.msra.gmra.mrb[52].mxu1 %v2386_v38  ;;  %4994 = vmatmul.mubr.bf16.vlgmr.msra.gmra.mrb[44].mxu0 %v2386_v38 }
0x1225   :  { %4999 = vmatprep.mubr.msk.bf16.mxu1 %vm5481_vm0, %v5479_v29  ;;  %5023 = vmatprep.mubr.msk.bf16.mxu0 %vm5481_vm0, %v5479_v29 }
0x12f7   :  { %v2600_v44 = vpop.f32.mrb[52].mxu1  ;;  %v2643_v47 = vpop.f32.mrb[44].mxu0 }
0x12f8   :  { %v2602_v49 = vpop.f32.mrb[53].mxu1  ;;  %v4995_v53 = vpop.f32.mrb[45].mxu0  ;;  %v2601_v15 = vadd.f32 %v2600_v44, %v2426_v58  ;;  %v2644_v25 = vadd.f32 %v2643_v47, %v2434_v48 }
0x12f9   :  { %v2603_v54 = vadd.f32 %v2602_v49, %v2430_v42  ;;  %v2604_v61 = vpop.f32.mrb[54].mxu1  ;;  %v2646_v55 = vpop.f32.mrb[46].mxu0 }
0x12fa   :  { %v6346_v0 = vadd.f32 %v2646_v55, %v2434_v48  ;;  %v2606_v56 = vpop.f32.mrb[55].mxu1  ;;  %v4996_v57 = vpop.f32.mrb[47].mxu0  ;;  %v6356_v1 = vpack.c.bf16 %v2601_v15, %v2601_v15  ;;  %v2605_v26 = vadd.f32 %v2604_v61, %v2426_v58  ;;  %v6365_v3 = vpack.c.bf16 %v2644_v25, %v2644_v25 }
0x12fb   :  { %v6349_v59 = vpack.c.bf16 %v2603_v54, %v2603_v54  ;;  %v2607_v62 = vadd.f32 %v2606_v56, %v2430_v42 }
0x12fc   :  { %v6367_v4 = vpack.c.bf16 %v2605_v26, %v2605_v26  ;;  %v2780_v5 = vsel %vm1030_vm2, %v6365_v3, 0  ;;  %v6394_v38 = vpack.c.bf16 %v6346_v0, %v6346_v0 }
0x12fd   :  { %v2658_v63 = vsel %vm903_vm1, %v6349_v59, 0  ;;  %v6354_v18 = vpack.c.bf16 %v2607_v62, %v2607_v62 }
0x12fe   :  { %4998 = vmatpush3.bf16.xpose.msra.mxu1 %v2658_v63  ;;  %v2826_v47 = vsel %vm1030_vm2, %v6394_v38, 0 }
0x12ff   :  { %5003 = vmatprep.subr.bf16.mxu1 %v5479_v29  ;;  %v2704_v2 = vsel %vm903_vm1, %v6354_v18, 0 }
0x1305   :  { %5000 = vmatmul.mubr.msk.bf16.vlgmr.msra.gmra.mrb[56].mxu1 %vm903_vm1, %v6356_v1 }
0x1306   :  { %5004 = vmatpush3.bf16.xpose.msra.mxu1 %v2704_v2  ;;  %5005 = vmatprep.mubr.msk.bf16.mxu1 %vm5481_vm0, %v5479_v29 }
0x1307   :  { %5009 = vmatprep.subr.bf16.mxu1 %v5479_v29 }
0x130d   :  { %5006 = vmatmul.mubr.msk.bf16.vlgmr.msra.gmra.mrb[60].mxu1 %vm903_vm1, %v6367_v4 }
0x130e   :  { %5010 = vmatpush3.bf16.msra.mxu1 %v2780_v5  ;;  %5011 = vmatprep.mubr.msk.bf16.mxu1 %vm5481_vm0, %v5479_v29 }
0x130f   :  { %5015 = vmatprep.subr.bf16.mxu1 %v5479_v29 }
0x13d8   :  { %v2694_v6 = vpop.f32.mrb[56].mxu1 }
0x13d9   :  { %v2746_v7 = vmul.f32 0.17677669, %v2694_v6  ;;  %v5001_v22 = vpop.f32.mrb[57].mxu1 }
0x13da   :  { %v2697_v37 = vpop.f32.mrb[58].mxu1 }
0x13db   :  { %v5002_v43 = vpop.f32.mrb[59].mxu1  ;;  %v2748_v8 = vadd.f32 %v2746_v7, %v5928_v50 }
0x13dd   :  { %v2750_v36 = vsel %vm1000_vm4, %v2748_v8, -inf }
0x13de   :  { %2751 = vmax.xlane.f32.xlu0 %v2750_v36 }
0x13e0   :  { %v2740_v40 = vpop.f32.mrb[60].mxu1 }
0x13e1   :  { %v2747_v9 = vmul.f32 0.17677669, %v2740_v40  ;;  %v5007_v46 = vpop.f32.mrb[61].mxu1 }
0x13e2   :  { %v2743_v10 = vpop.f32.mrb[62].mxu1 }
0x13e3   :  { %v5008_v11 = vpop.f32.mrb[63].mxu1  ;;  %v2749_v12 = vadd.f32 %v2747_v9, %v5928_v50 }
0x13e5   :  { %v2753_v13 = vsel %vm1000_vm4, %v2749_v12, -inf }
0x13e6   :  { %2754 = vmax.xlane.f32.xlu1 %v2753_v13 }
0x13f7   :  { %2926 = vrot.lane.b32.xlu1 %v6354_v18, %s5483_s27 }
0x146b   :  { %v2752_v14 = vpop.xlane.xlu0 %2751 }
0x146c   :  { %v2756_v17 = vsub.f32 %v2748_v8, %v2752_v14 }
0x146e   :  { %v2758_v19 = vmul.f32 1.442695, %v2756_v17 }
0x1470   :  { %5409 = vpow2.f32 %v2758_v19 }
0x1473   :  { %v2755_v21 = vpop.xlane.xlu1 %2754 }
0x1474   :  { %v2757_v45 = vsub.f32 %v2749_v12, %v2755_v21 }
0x1476   :  { %v2760_v23 = vmul.f32 1.442695, %v2757_v45 }
0x1477   :  { %v2927_v31 = vpop.permute.xlu1 %2926 }
0x1478   :  { %5411 = vpow2.f32 %v2760_v23  ;;  %v2932_v54 = vsel %vm903_vm1, %v2927_v31, 0 }
0x147a   :  { %v5410_v24 = vpop.eup %5409 }
0x147b   :  { %v2762_v27 = vsel %vm1000_vm4, %v5410_v24, 0.0 }
0x147c   :  { %2763 = vadd.xlane.f32.xlu0 %v2762_v27 }
0x1482   :  { %v5412_v41 = vpop.eup %5411 }
0x1483   :  { %v2765_v28 = vsel %vm1000_vm4, %v5412_v41, 0.0 }
0x1484   :  { %2766 = vadd.xlane.f32.xlu1 %v2765_v28 }
0x1492   :  { %2874 = vrot.lane.b32.xlu0 %v6349_v59, %s5483_s27 }
0x1495   :  { %2871 = vrot.lane.b32.xlu1 %v6356_v1, %s5483_s27 }
0x1499   :  { %2923 = vrot.lane.b32.xlu1 %v6367_v4, %s5483_s27 }
0x1509   :  { %v2764_v30 = vpop.xlane.xlu0 %2763 }
0x150a   :  { %5413 = vrcp.f32 %v2764_v30 }
0x150d   :  { %v2875_v32 = vpop.permute.xlu0 %2874 }
0x150e   :  { %v2880_v33 = vsel %vm903_vm1, %v2875_v32, 0 }
0x150f   :  { %5022 = vmatpush3.bf16.xpose.msra.mxu0 %v2880_v33 }
0x1510   :  { %5033 = vmatprep.subr.bf16.mxu0 %v5479_v29 }
0x1511   :  { %v2767_v34 = vpop.xlane.xlu1 %2766 }
0x1512   :  { %5415 = vrcp.f32 %v2767_v34 }
0x1514   :  { %v5414_v35 = vpop.eup %5413 }
0x1515   :  { %v2770_v39 = vmul.f32 %v5414_v35, %v5410_v24  ;;  %v2872_v42 = vpop.permute.xlu1 %2871 }
0x1516   :  { %5024 = vmatmul.mubr.msk.bf16.vlgmr.msra.gmra.mrb[48].mxu0 %vm903_vm1, %v2872_v42 }
0x1517   :  { %v2772_v44 = vpack.c.bf16 %v2770_v39, %v2770_v39  ;;  %5035 = vmatprep.mubr.msk.bf16.mxu0 %vm5481_vm0, %v5479_v29 }
0x1519   :  { %5012 = vmatmul.mubr.msk.bf16.vlgmr.msra.gmra.mrb[64].mxu1 %vm1000_vm4, %v2772_v44  ;;  %v2924_v61 = vpop.permute.xlu1 %2923 }
0x151a   :  { %5016 = vmatpush3.bf16.msra.mxu1 %v2826_v47  ;;  %5017 = vmatprep.mubr.msk.bf16.mxu1 %vm5481_vm0, %v5479_v29 }
0x151b   :  { %5027 = vmatprep.subr.bf16.mxu1 %v5479_v29 }
0x151c   :  { %v5416_v48 = vpop.eup %5415 }
0x151d   :  { %v2771_v49 = vmul.f32 %v5416_v48, %v5412_v41 }
0x151f   :  { %v2773_v53 = vpack.c.bf16 %v2771_v49, %v2771_v49 }
0x1521   :  { %5018 = vmatmul.mubr.msk.bf16.vlgmr.msra.gmra.mrb[68].mxu1 %vm1000_vm4, %v2773_v53 }
0x1522   :  { %5029 = vmatprep.mubr.msk.bf16.mxu1 %vm5481_vm0, %v5479_v29 }
0x1523   :  { %5028 = vmatpush3.bf16.xpose.msra.mxu1 %v2932_v54 }
0x1524   :  { %5039 = vmatprep.subr.bf16.mxu1 %v5479_v29 }
0x152a   :  { %5030 = vmatmul.mubr.msk.bf16.vlgmr.msra.gmra.mrb[72].mxu1 %vm903_vm1, %v2924_v61 }
0x152b   :  { %5041 = vmatprep.mubr.msk.bf16.mxu1 %vm5481_vm0, %v5479_v29 }
0x15e9   :  { %v2916_v55 = vpop.f32.mrb[48].mxu0 }
0x15ea   :  { %v2974_v0 = vmul.f32 0.17677669, %v2916_v55  ;;  %v5025_v56 = vpop.f32.mrb[49].mxu0 }
0x15eb   :  { %v2919_v57 = vpop.f32.mrb[50].mxu0 }
0x15ec   :  { %v2816_v58 = vpop.f32.mrb[64].mxu1  ;;  %v5026_v62 = vpop.f32.mrb[51].mxu0  ;;  %v2976_v63 = vadd.f32 %v2974_v0, %v5928_v50 }
0x15ed   :  { %2868 = vst.msk [vmem:[#allocation2] sm:$0xff] %vm903_vm1, %v2816_v58  ;;  %v5013_v15 = vpop.f32.mrb[65].mxu1 }
0x15ee   :  { %v2819_v25 = vpop.f32.mrb[66].mxu1  ;;  %v2978_v2 = vsel %vm1000_vm4, %v2976_v63, -inf }
0x15ef   :  { %2979 = vmax.xlane.f32.xlu0 %v2978_v2  ;;  %v5014_v26 = vpop.f32.mrb[67].mxu1 }
0x15f4   :  { %v2862_v5 = vpop.f32.mrb[68].mxu1 }
0x15f5   :  { %2869 = vst.msk [vmem:[#allocation2 + $0x8] sm:$0xff] %vm903_vm1, %v2862_v5  ;;  %v5019_v6 = vpop.f32.mrb[69].mxu1 }
0x15f6   :  { %v2865_v7 = vpop.f32.mrb[70].mxu1 }
0x15f7   :  { %v5020_v22 = vpop.f32.mrb[71].mxu1 }
0x15fd   :  { %v2968_v37 = vpop.f32.mrb[72].mxu1 }
0x15fe   :  { %v2975_v43 = vmul.f32 0.17677669, %v2968_v37  ;;  %v5031_v8 = vpop.f32.mrb[73].mxu1 }
0x15ff   :  { %v2971_v36 = vpop.f32.mrb[74].mxu1 }
0x1600   :  { %v5032_v40 = vpop.f32.mrb[75].mxu1  ;;  %v2977_v9 = vadd.f32 %v2975_v43, %v5928_v50 }
0x1602   :  { %v2981_v46 = vsel %vm1000_vm4, %v2977_v9, -inf }
0x1603   :  { %2982 = vmax.xlane.f32.xlu1 %v2981_v46 }
0x1614   :  { %3052 = vrot.lane.b32.xlu1 %v6394_v38, %s5483_s27 }
0x1618   :  { %3112 = vrot.lane.b32.xlu1 %v6349_v59, %s5484_s28 }
0x161c   :  { %3162 = vrot.lane.b32.xlu1 %v6354_v18, %s5484_s28 }
0x1620   :  { %3160 = vrot.lane.b32.xlu1 %v6367_v4, %s5484_s28 }
0x167c   :  { %v2980_v10 = vpop.xlane.xlu0 %2979 }
0x167d   :  { %v2984_v11 = vsub.f32 %v2976_v63, %v2980_v10 }
0x167f   :  { %v2986_v12 = vmul.f32 1.442695, %v2984_v11 }
0x1681   :  { %5417 = vpow2.f32 %v2986_v12 }
0x168b   :  { %v5418_v13 = vpop.eup %5417 }
0x168c   :  { %v2990_v14 = vsel %vm1000_vm4, %v5418_v13, 0.0 }
0x168d   :  { %2991 = vadd.xlane.f32.xlu0 %v2990_v14 }
0x1690   :  { %v2983_v17 = vpop.xlane.xlu1 %2982 }
0x1691   :  { %v2985_v19 = vsub.f32 %v2977_v9, %v2983_v17 }
0x1693   :  { %v2988_v21 = vmul.f32 1.442695, %v2985_v19 }
0x1694   :  { %v3053_v45 = vpop.permute.xlu1 %3052 }
0x1695   :  { %5419 = vpow2.f32 %v2988_v21  ;;  %v3058_v23 = vsel %vm1030_vm2, %v3053_v45, 0 }
0x1696   :  { %5040 = vmatpush3.bf16.msra.mxu1 %v3058_v23 }
0x1697   :  { %5051 = vmatprep.subr.bf16.mxu1 %v5479_v29 }
0x1698   :  { %v3113_v34 = vpop.permute.xlu1 %3112 }
0x1699   :  { %v3118_v47 = vsel %vm903_vm1, %v3113_v34, 0 }
0x169c   :  { %v3163_v44 = vpop.permute.xlu1 %3162 }
0x169d   :  { %v3168_v49 = vsel %vm903_vm1, %v3163_v44, 0 }
0x169f   :  { %v5420_v24 = vpop.eup %5419 }
0x16a0   :  { %v2993_v27 = vsel %vm1000_vm4, %v5420_v24, 0.0  ;;  %v3161_v54 = vpop.permute.xlu1 %3160 }
0x16a1   :  { %2994 = vadd.xlane.f32.xlu0 %v2993_v27 }
0x16b7   :  { %3003 = vrot.lane.b32.xlu0 %v6365_v3, %s5483_s27 }
0x16bb   :  { %3110 = vrot.lane.b32.xlu0 %v6356_v1, %s5484_s28 }
0x171a   :  { %v2992_v41 = vpop.xlane.xlu0 %2991 }
0x171b   :  { %5421 = vrcp.f32 %v2992_v41 }
0x1725   :  { %v5422_v28 = vpop.eup %5421 }
0x1726   :  { %v2998_v31 = vmul.f32 %v5422_v28, %v5418_v13 }
0x1728   :  { %v3000_v35 = vpack.c.bf16 %v2998_v31, %v2998_v31 }
0x172e   :  { %v2995_v30 = vpop.xlane.xlu0 %2994 }
0x172f   :  { %5423 = vrcp.f32 %v2995_v30 }
0x1732   :  { %v3004_v32 = vpop.permute.xlu0 %3003 }
0x1733   :  { %v3009_v33 = vsel %vm1030_vm2, %v3004_v32, 0 }
0x1734   :  { %5034 = vmatpush3.bf16.msra.mxu0 %v3009_v33 }
0x1735   :  { %5045 = vmatprep.subr.bf16.mxu0 %v5479_v29 }
0x1736   :  { %v3111_v53 = vpop.permute.xlu0 %3110 }
0x1737   :  { %5036 = vmatmul.mubr.msk.bf16.vlgmr.msra.gmra.mrb[52].mxu0 %vm1000_vm4, %v3000_v35 }
0x1738   :  { %5047 = vmatprep.mubr.msk.bf16.mxu0 %vm5481_vm0, %v5479_v29 }
0x1739   :  { %v5424_v39 = vpop.eup %5423 }
0x173a   :  { %v2999_v42 = vmul.f32 %v5424_v39, %v5420_v24 }
0x173c   :  { %v3001_v48 = vpack.c.bf16 %v2999_v42, %v2999_v42 }
0x173d   :  { %5046 = vmatpush3.bf16.xpose.msra.mxu0 %v3118_v47 }
0x173e   :  { %5042 = vmatmul.mubr.msk.bf16.vlgmr.msra.gmra.mrb[76].mxu1 %vm1000_vm4, %v3001_v48  ;;  %5057 = vmatprep.subr.bf16.mxu0 %v5479_v29 }
0x173f   :  { %5052 = vmatpush3.bf16.xpose.msra.mxu1 %v3168_v49  ;;  %5053 = vmatprep.mubr.msk.bf16.mxu1 %vm5481_vm0, %v5479_v29 }
0x1740   :  { %5063 = vmatprep.subr.bf16.mxu1 %v5479_v29 }
0x1744   :  { %5048 = vmatmul.mubr.msk.bf16.vlgmr.msra.gmra.mrb[56].mxu0 %vm903_vm1, %v3111_v53 }
0x1745   :  { %5059 = vmatprep.mubr.msk.bf16.mxu0 %vm5481_vm0, %v5479_v29 }
0x1746   :  { %5054 = vmatmul.mubr.msk.bf16.vlgmr.msra.gmra.mrb[80].mxu1 %vm903_vm1, %v3161_v54 }
0x1747   :  { %5065 = vmatprep.mubr.msk.bf16.mxu1 %vm5481_vm0, %v5479_v29 }
0x180a   :  { %v6453_v61 = vpop.f32.mrb[52].mxu0 }
0x180b   :  { %v5037_v55 = vpop.f32.mrb[53].mxu0 }
0x180c   :  { %v3048_v0 = vpop.f32.mrb[54].mxu0 }
0x180d   :  { %v5038_v56 = vpop.f32.mrb[55].mxu0 }
0x1811   :  { %v6455_v57 = vpop.f32.mrb[76].mxu1 }
0x1812   :  { %v5043_v58 = vpop.f32.mrb[77].mxu1 }
0x1813   :  { %v3097_v62 = vpop.f32.mrb[78].mxu1 }
0x1814   :  { %v5044_v63 = vpop.f32.mrb[79].mxu1 }
0x1817   :  { %v3154_v15 = vpop.f32.mrb[56].mxu0 }
0x1818   :  { %v3210_v25 = vmul.f32 0.17677669, %v3154_v15  ;;  %v5049_v2 = vpop.f32.mrb[57].mxu0 }
0x1819   :  { %v3157_v26 = vpop.f32.mrb[58].mxu0  ;;  %v3204_v5 = vpop.f32.mrb[80].mxu1 }
0x181a   :  { %v3211_v6 = vmul.f32 0.17677669, %v3204_v5  ;;  %v5050_v7 = vpop.f32.mrb[59].mxu0  ;;  %v5055_v22 = vpop.f32.mrb[81].mxu1  ;;  %v3212_v37 = vadd.f32 %v3210_v25, %v5928_v50 }
0x181b   :  { %v3207_v43 = vpop.f32.mrb[82].mxu1 }
0x181c   :  { %v5056_v8 = vpop.f32.mrb[83].mxu1  ;;  %v3214_v36 = vsel %vm1000_vm4, %v3212_v37, -inf  ;;  %v3213_v40 = vadd.f32 %v3211_v6, %v5928_v50 }
0x181d   :  { %3215 = vmax.xlane.f32.xlu0 %v3214_v36 }
0x181e   :  { %v3217_v9 = vsel %vm1000_vm4, %v3213_v40, -inf }
0x181f   :  { %3218 = vmax.xlane.f32.xlu1 %v3217_v9 }
0x1830   :  { %3286 = vrot.lane.b32.xlu1 %v6394_v38, %s5484_s28 }
0x1834   :  { %3346 = vrot.lane.b32.xlu1 %v6349_v59, %s5485_s20 }
0x1838   :  { %3396 = vrot.lane.b32.xlu1 %v6354_v18, %s5485_s20 }
0x183c   :  { %3394 = vrot.lane.b32.xlu1 %v6367_v4, %s5485_s20 }
0x18aa   :  { %v3216_v46 = vpop.xlane.xlu0 %3215 }
0x18ab   :  { %v3220_v10 = vsub.f32 %v3212_v37, %v3216_v46 }
0x18ac   :  { %v3219_v11 = vpop.xlane.xlu1 %3218 }
0x18ad   :  { %v3222_v12 = vmul.f32 1.442695, %v3220_v10  ;;  %v3221_v13 = vsub.f32 %v3213_v40, %v3219_v11 }
0x18af   :  { %5425 = vpow2.f32 %v3222_v12  ;;  %v3224_v14 = vmul.f32 1.442695, %v3221_v13 }
0x18b0   :  { %v3287_v17 = vpop.permute.xlu1 %3286 }
0x18b1   :  { %5427 = vpow2.f32 %v3224_v14  ;;  %v3292_v19 = vsel %vm1030_vm2, %v3287_v17, 0 }
0x18b2   :  { %5064 = vmatpush3.bf16.msra.mxu1 %v3292_v19 }
0x18b3   :  { %5075 = vmatprep.subr.bf16.mxu1 %v5479_v29 }
0x18b4   :  { %v3347_v28 = vpop.permute.xlu1 %3346 }
0x18b8   :  { %v3397_v34 = vpop.permute.xlu1 %3396 }
0x18b9   :  { %v5426_v59 = vpop.eup %5425  ;;  %v3402_v39 = vsel %vm903_vm1, %v3397_v34, 0  ;;  %v5306_v34 = vld [vmem:[%s6748_s7 + $0x68] sm:$0xff]  }
0x18ba   :  { %v3226_v18 = vsel %vm1000_vm4, %v5426_v59, 0.0 }
0x18bb   :  { %v5428_v21 = vpop.eup %5427  ;;  %3227 = vadd.xlane.f32.xlu0 %v3226_v18 }
0x18bc   :  { %v3229_v4 = vsel %vm1000_vm4, %v5428_v21, 0.0  ;;  %v3395_v44 = vpop.permute.xlu1 %3394 }
0x18bf   :  { %3230 = vadd.xlane.f32.xlu0 %v3229_v4 }
0x18d5   :  { %3238 = vrot.lane.b32.xlu0 %v6365_v3, %s5484_s28 }
0x18d9   :  { %3344 = vrot.lane.b32.xlu0 %v6356_v1, %s5485_s20  ;;  %v3352_v1 = vsel %vm903_vm1, %v3347_v28, 0 }
0x1948   :  { %v3228_v45 = vpop.xlane.xlu0 %3227 }
0x1949   :  { %5429 = vrcp.f32 %v3228_v45 }
0x194c   :  { %v3231_v23 = vpop.xlane.xlu0 %3230 }
0x194d   :  { %5431 = vrcp.f32 %v3231_v23 }
0x1950   :  { %v3239_v24 = vpop.permute.xlu0 %3238 }
0x1951   :  { %v3244_v27 = vsel %vm1030_vm2, %v3239_v24, 0 }
0x1952   :  { %5058 = vmatpush3.bf16.msra.mxu0 %v3244_v27 }
0x1953   :  { %v5430_v41 = vpop.eup %5429  ;;  %5069 = vmatprep.subr.bf16.mxu0 %v5479_v29 }
0x1954   :  { %v3234_v30 = vmul.f32 %v5430_v41, %v5426_v59  ;;  %v3345_v42 = vpop.permute.xlu0 %3344 }
0x1956   :  { %v3236_v31 = vpack.c.bf16 %v3234_v30, %v3234_v30  ;;  %v5301_v30 = vld [vmem:[%s6748_s7 + $0x40] sm:$0xff]  }
0x1957   :  { %v5432_v32 = vpop.eup %5431 }
0x1958   :  { %v3235_v33 = vmul.f32 %v5432_v32, %v5428_v21  ;;  %5060 = vmatmul.mubr.msk.bf16.vlgmr.msra.gmra.mrb[60].mxu0 %vm1000_vm4, %v3236_v31  ;;  %v5302_v31 = vld [vmem:[%s6748_s7 + $0x48] sm:$0xff]   ;;  %v5303_v32 = vld [vmem:[%s6748_s7 + $0x50] sm:$0xff]  }
0x1959   :  { %5071 = vmatprep.mubr.msk.bf16.mxu0 %vm5481_vm0, %v5479_v29 }
0x195a   :  { %v3237_v35 = vpack.c.bf16 %v3235_v33, %v3235_v33  ;;  %v5305_v33 = vld [vmem:[%s6748_s7 + $0x60] sm:$0xff]  }
0x195b   :  { %5070 = vmatpush3.bf16.xpose.msra.mxu0 %v3352_v1  ;;  %v5307_v1 = vld [vmem:[%s6748_s7 + $0x70] sm:$0xff]  }
0x195c   :  { %5066 = vmatmul.mubr.msk.bf16.vlgmr.msra.gmra.mrb[84].mxu1 %vm1000_vm4, %v3237_v35  ;;  %5081 = vmatprep.subr.bf16.mxu0 %v5479_v29  ;;  %v5308_v35 = vld [vmem:[%s6748_s7 + $0x78] sm:$0xff]  }
0x195d   :  { %5076 = vmatpush3.bf16.xpose.msra.mxu1 %v3402_v39  ;;  %5077 = vmatprep.mubr.msk.bf16.mxu1 %vm5481_vm0, %v5479_v29 }
0x195e   :  { %5087 = vmatprep.subr.bf16.mxu1 %v5479_v29 }
0x1962   :  { %5072 = vmatmul.mubr.msk.bf16.vlgmr.msra.gmra.mrb[64].mxu0 %vm903_vm1, %v3345_v42 }
0x1963   :  { %5083 = vmatprep.mubr.msk.bf16.mxu0 %vm5481_vm0, %v5479_v29 }
0x1964   :  { %5078 = vmatmul.mubr.msk.bf16.vlgmr.msra.gmra.mrb[88].mxu1 %vm903_vm1, %v3395_v44 }
0x1965   :  { %5089 = vmatprep.mubr.msk.bf16.mxu1 %vm5481_vm0, %v5479_v29 }
0x1a2b   :  { %v3280_v47 = vpop.f32.mrb[60].mxu0 }
0x1a2c   :  { %v5061_v48 = vpop.f32.mrb[61].mxu0 }
0x1a2d   :  { %v3283_v49 = vpop.f32.mrb[62].mxu0 }
0x1a2e   :  { %v5062_v53 = vpop.f32.mrb[63].mxu0 }
0x1a2f   :  { %v3328_v54 = vpop.f32.mrb[84].mxu1 }
0x1a30   :  { %v5067_v55 = vpop.f32.mrb[85].mxu1 }
0x1a31   :  { %v3331_v0 = vpop.f32.mrb[86].mxu1 }
0x1a32   :  { %v5068_v56 = vpop.f32.mrb[87].mxu1 }
0x1a35   :  { %v3388_v58 = vpop.f32.mrb[64].mxu0 }
0x1a36   :  { %v3444_v62 = vmul.f32 0.17677669, %v3388_v58  ;;  %v5073_v63 = vpop.f32.mrb[65].mxu0 }
0x1a37   :  { %v3391_v15 = vpop.f32.mrb[66].mxu0  ;;  %v3438_v25 = vpop.f32.mrb[88].mxu1 }
0x1a38   :  { %v3445_v2 = vmul.f32 0.17677669, %v3438_v25  ;;  %v5074_v26 = vpop.f32.mrb[67].mxu0  ;;  %v5079_v5 = vpop.f32.mrb[89].mxu1  ;;  %v3446_v6 = vadd.f32 %v3444_v62, %v5928_v50  ;;  %v4523_v15 = vld [vmem:[%s6749_s8 + $0x1] ss:$0 sm:$0xff] }
0x1a39   :  { %v3441_v7 = vpop.f32.mrb[90].mxu1  ;;  %s5486_s8 = smov [#allocation3]  }
0x1a3a   :  { %v5080_v22 = vpop.f32.mrb[91].mxu1  ;;  %v3448_v37 = vsel %vm1000_vm4, %v3446_v6, -inf  ;;  %v3447_v43 = vadd.f32 %v3445_v2, %v5928_v50 }
0x1a3b   :  { %3449 = vmax.xlane.f32.xlu0 %v3448_v37  ;;  %v5309_v37 = vld [vmem:[%s6752_s11 + $0x80] ss:$8 sps:$4 sm:$0xff]  }
0x1a3c   :  { %v3451_v8 = vsel %vm1000_vm4, %v3447_v43, -inf }
0x1a3d   :  { %3452 = vmax.xlane.f32.xlu1 %v3451_v8 }
0x1a4e   :  { %3520 = vrot.lane.b32.xlu1 %v6394_v38, %s5485_s20 }
0x1a52   :  { %3102 = vrot.lane.b32.xlu1 %v6453_v61, %s5485_s20 }
0x1a56   :  { %3104 = vrot.lane.b32.xlu1 %v6455_v57, %s5485_s20 }
0x1a5a   :  { %3338 = vrot.lane.b32.xlu1 %v3328_v54, %s5484_s28 }
0x1ac8   :  { %v3450_v36 = vpop.xlane.xlu0 %3449 }
0x1ac9   :  { %v3454_v40 = vsub.f32 %v3446_v6, %v3450_v36 }
0x1aca   :  { %v3453_v9 = vpop.xlane.xlu1 %3452 }
0x1acb   :  { %v3456_v46 = vmul.f32 1.442695, %v3454_v40  ;;  %v3455_v50 = vsub.f32 %v3447_v43, %v3453_v9  ;;  %v5314_v43 = vld [vmem:[%s6752_s11 + $0x94] ss:$8 sps:$4 sm:$0xff]  }
0x1acd   :  { %5433 = vpow2.f32 %v3456_v46  ;;  %v3458_v10 = vmul.f32 1.442695, %v3455_v50 }
0x1ace   :  { %v3521_v11 = vpop.permute.xlu1 %3520 }
0x1acf   :  { %5435 = vpow2.f32 %v3458_v10  ;;  %v3526_v12 = vsel %vm1030_vm2, %v3521_v11, 0 }
0x1ad0   :  { %5088 = vmatpush3.bf16.msra.mxu1 %v3526_v12  ;;  %v5317_v12 = vld [vmem:[%s6752_s11 + $0xa4] ss:$8 sps:$4 sm:$0xff]  }
0x1ad2   :  { %v3103_v38 = vpop.permute.xlu1 %3102 }
0x1ad3   :  { %3108 = vst.msk [vmem:[#allocation2] sm:$0xff] %vm1360_vm5, %v3103_v38  ;;  %v5315_v38 = vld [vmem:[%s6752_s11 + $0xa0] ss:$8 sps:$4 sm:$0xff]  }
0x1ad6   :  { %v3105_v61 = vpop.permute.xlu1 %3104 }
0x1ad7   :  { %v5434_v13 = vpop.eup %5433  ;;  %3109 = vst.msk [vmem:[#allocation2 + $0x8] sm:$0xff] %vm1360_vm5, %v3105_v61  ;;  %v5320_v61 = vld [vmem:[%s6752_s11 + $0xb4] ss:$8 sps:$4 sm:$0xff]  }
0x1ad8   :  { %v3460_v57 = vsel %vm1000_vm4, %v5434_v13, 0.0 }
0x1ad9   :  { %v5436_v14 = vpop.eup %5435  ;;  %3461 = vadd.xlane.f32.xlu0 %v3460_v57  ;;  %v5323_v57 = vld [vmem:[%s6752_s11 + $0xc4] ss:$8 sps:$4 sm:$0xff]  }
0x1ada   :  { %v3339_v17 = vpop.permute.xlu1 %3338  ;;  %v3463_v19 = vsel %vm1000_vm4, %v5436_v14, 0.0 }
0x1adb   :  { %3343 = vst.msk [vmem:[#allocation2 + $0x8] sm:$0xff] %vm1595_vm6, %v3339_v17  ;;  %v5326_v17 = vld [vmem:[%s6752_s11 + $0xd4] ss:$8 sps:$4 sm:$0xff]  }
0x1add   :  { %3464 = vadd.xlane.f32.xlu0 %v3463_v19  ;;  %v5324_v19 = vld [vmem:[%s6752_s11 + $0xd0] ss:$8 sps:$4 sm:$0xff]  }
0x1af3   :  { %3472 = vrot.lane.b32.xlu0 %v6365_v3, %s5485_s20 }
0x1af7   :  { %3336 = vrot.lane.b32.xlu0 %v3280_v47, %s5484_s28 }
0x1b66   :  { %v3462_v59 = vpop.xlane.xlu0 %3461 }
0x1b67   :  { %5437 = vrcp.f32 %v3462_v59  ;;  %v5329_v59 = vld [vmem:[%s6752_s11 + $0xe4] ss:$8 sps:$4 sm:$0xff]  }
0x1b6a   :  { %v3465_v18 = vpop.xlane.xlu0 %3464 }
0x1b6b   :  { %5439 = vrcp.f32 %v3465_v18  ;;  %v5327_v18 = vld [vmem:[%s6752_s11 + $0xe0] ss:$8 sps:$4 sm:$0xff]  }
0x1b6e   :  { %v3473_v21 = vpop.permute.xlu0 %3472 }
0x1b6f   :  { %v3478_v4 = vsel %vm1030_vm2, %v3473_v21, 0  ;;  %v5332_v21 = vld [vmem:[%s6752_s11 + $0xf4] ss:$8 sps:$4 sm:$0xff]  }
0x1b70   :  { %5082 = vmatpush3.bf16.msra.mxu0 %v3478_v4  ;;  %v5330_v4 = vld [vmem:[%s6752_s11 + $0xf0] ss:$8 sps:$4 sm:$0xff]  }
0x1b71   :  { %v5438_v45 = vpop.eup %5437  ;;  %5093 = vmatprep.subr.bf16.mxu0 %v5479_v29 }
0x1b72   :  { %v3468_v23 = vmul.f32 %v5438_v45, %v5434_v13  ;;  %v3337_v24 = vpop.permute.xlu0 %3336  ;;  %v5318_v13 = vld [vmem:[%s6752_s11 + $0xb0] ss:$8 sps:$4 sm:$0xff]   ;;  %v5333_v45 = vld [vmem:[%s6754_s13 + $0xc0] sm:$0xff]  }
0x1b73   :  { %3342 = vst.msk [vmem:[#allocation2] sm:$0xff] %vm1595_vm6, %v3337_v24  ;;  %v5335_v24 = vld [vmem:[%s6754_s13 + $0xc8] sm:$0xff]  }
0x1b74   :  { %v3470_v27 = vpack.c.bf16 %v3468_v23, %v3468_v23  ;;  %v5334_v23 = vld [vmem:[%s6754_s13 + $0x80] sm:$0xff]  }
0x1b75   :  { %v5440_v41 = vpop.eup %5439 }
0x1b76   :  { %v3469_v3 = vmul.f32 %v5440_v41, %v5436_v14  ;;  %5084 = vmatmul.mubr.msk.bf16.vlgmr.msra.gmra.mrb[68].mxu0 %vm1000_vm4, %v3470_v27  ;;  %v5321_v14 = vld [vmem:[%s6752_s11 + $0xc0] ss:$8 sps:$4 sm:$0xff]  }
0x1b77   :  { %5109 = vmatprep.mubr.msk.bf16.mxu0 %vm5481_vm0, %v5479_v29  ;;  %5094 = vmatpush3.bf16.msra.mxu0 %v5301_v30  ;;  %v5336_v27 = vld [vmem:[%s6754_s13 + $0x88] sm:$0xff]  }
0x1b78   :  { %v3471_v28 = vpack.c.bf16 %v3469_v3, %v3469_v3  ;;  %5095 = vmatprep.subr.bf16.mxu0 %v5479_v29 }
0x1b7a   :  { %5090 = vmatmul.mubr.msk.bf16.vlgmr.msra.gmra.mrb[92].mxu1 %vm1000_vm4, %v3471_v28 }
0x1b7b   :  { %3884 = vmatprep.mubr.bf16.mxu1 %v5480_v60  ;;  %5096 = vmatpush3.bf16.msra.mxu0 %v5302_v31  ;;  %v5304_v60 = vld [vmem:[%s6748_s7 + $0x58] sm:$0xff]  }
0x1b7c   :  { %5097 = vmatprep.subr.bf16.mxu0 %v5479_v29 }
0x1b7f   :  { %5098 = vmatpush3.bf16.msra.mxu0 %v5303_v32 }
0x1b80   :  { %5099 = vmatprep.subr.bf16.mxu0 %v5479_v29 }
0x1b83   :  { %5100 = vmatpush3.bf16.msra.mxu0 %v5304_v60 }
0x1b84   :  { %5101 = vmatprep.subr.bf16.mxu0 %v5479_v29 }
0x1b87   :  { %5102 = vmatpush3.bf16.msra.mxu0 %v5305_v33 }
0x1b88   :  { %5103 = vmatprep.subr.bf16.mxu0 %v5479_v29 }
0x1b8b   :  { %5104 = vmatpush3.bf16.msra.mxu0 %v5306_v34  ;;  %v4526_v34 = vld [vmem:[%s6750_s9 + $0x1] ss:$0 sm:$0xff] }
0x1b8c   :  { %5105 = vmatprep.subr.bf16.mxu0 %v5479_v29 }
0x1b8f   :  { %5106 = vmatpush3.bf16.msra.mxu0 %v5307_v1 }
0x1b90   :  { %5107 = vmatprep.subr.bf16.mxu0 %v5479_v29 }
0x1b93   :  { %5108 = vmatpush3.bf16.msra.mxu0 %v5308_v35 }
0x1b94   :  { %4810 = vmatprep.subr.bf16.mxu0 %v5333_v45 }
0x1c49   :  { %v3514_v39 = vpop.f32.mrb[68].mxu0 }
0x1c4a   :  { %3570 = vrot.lane.b32.xlu0 %v3514_v39, %s5483_s27  ;;  %v5085_v42 = vpop.f32.mrb[69].mxu0 }
0x1c4b   :  { %v3517_v44 = vpop.f32.mrb[70].mxu0  ;;  %v4527_v42 = vld [vmem:[%s6751_s10 + $0x1] ss:$0 sm:$0xff] }
0x1c4c   :  { %v5086_v47 = vpop.f32.mrb[71].mxu0 }
0x1c4d   :  { %v3562_v48 = vpop.f32.mrb[92].mxu1 }
0x1c4e   :  { %3572 = vrot.lane.b32.xlu1 %v3562_v48, %s5483_s27  ;;  %v5091_v49 = vpop.f32.mrb[93].mxu1 }
0x1c4f   :  { %v3565_v53 = vpop.f32.mrb[94].mxu1 }
0x1c50   :  { %v5092_v54 = vpop.f32.mrb[95].mxu1  ;;  %v5337_v53 = vld [vmem:[%s6754_s13 + $0xd0] sm:$0xff]  }
0x1c51   :  { %v5338_v54 = vld [vmem:[%s6754_s13 + $0x90] sm:$0xff]  }
0x1cbc   :  { %v3571_v55 = vpop.permute.xlu0 %3570 }
0x1cbd   :  { %3576 = vst.msk [vmem:[#allocation2] sm:$0xff] %vm1830_vm7, %v3571_v55  ;;  %v5339_v55 = vld [vmem:[%s6754_s13 + $0xd8] sm:$0xff]  }
0x1cc0   :  { %v3573_v0 = vpop.permute.xlu1 %3572 }
0x1cc1   :  { %3577 = vst.msk [vmem:[#allocation2 + $0x8] sm:$0xff] %vm1830_vm7, %v3573_v0  ;;  %v5340_v0 = vld [vmem:[%s6754_s13 + $0x98] sm:$0xff]  }
0x1cc4   :  { %v3578_v56 = vld [vmem:[#allocation2] sm:$0xff] }
0x1cc8   :  { %v3579_v58 = vld [vmem:[#allocation2 + $0x8] sm:$0xff] }
0x1cc9   :  { %v3580_v62 = vpack.c.bf16 %v3579_v58, %v3578_v56  ;;  %v5341_v56 = vld [vmem:[%s6754_s13 + $0xe0] sm:$0xff]  }
0x1cca   :  { %v5342_v58 = vld [vmem:[%s6754_s13 + $0xa0] sm:$0xff]  }
0x1ccb   :  { %5110 = vmatmul.mubr.bf16.vlgmr.msra.gmra.mrb[72].mxu0 %v3580_v62  ;;  %v5343_v62 = vld [vmem:[%s6754_s13 + $0xe8] sm:$0xff]  }
0x1ccc   :  { %4811 = vmatpush3.bf16.msra.mxu0 %v5334_v23 }
0x1ccd   :  { %4812 = vmatprep.subr.bf16.mxu0 %v5335_v24 }
0x1cd0   :  { %4813 = vmatpush3.bf16.msra.mxu0 %v5336_v27 }
0x1cd1   :  { %4814 = vmatprep.subr.bf16.mxu0 %v5337_v53 }
0x1cd4   :  { %4815 = vmatpush3.bf16.msra.mxu0 %v5338_v54 }
0x1cd5   :  { %4816 = vmatprep.subr.bf16.mxu0 %v5339_v55 }
0x1cd8   :  { %4817 = vmatpush3.bf16.msra.mxu0 %v5340_v0 }
0x1cd9   :  { %4818 = vmatprep.subr.bf16.mxu0 %v5341_v56 }
0x1cdc   :  { %4819 = vmatpush3.bf16.msra.mxu0 %v5342_v58 }
0x1cdd   :  { %4820 = vmatprep.subr.bf16.mxu0 %v5343_v62 }
0x1d9e   :  { %v3680_v63 = vpop.f32.mrb[72].mxu0 }
0x1d9f   :  { %v3687_v25 = vadd.f32 %v3680_v63, %v6240_v51  ;;  %v5111_v2 = vpop.f32.mrb[73].mxu0  ;;  %v5311_v51 = vld [vmem:[%s6752_s11 + $0x84] ss:$8 sps:$4 sm:$0xff]  }
0x1da0   :  { %v3683_v26 = vpop.f32.mrb[74].mxu0  ;;  %3852 = vmatprep.subr.bf16.mxu1 %v5311_v51  ;;  %v5344_v63 = vld [vmem:[%s6754_s13 + $0xa8] sm:$0xff]   ;;  %v5347_v2 = vld [vmem:[%s6754_s13 + $0xf8] sm:$0xff]  }
0x1da1   :  { %v6562_v5 = vadd.f32 %v4523_v15, %v3687_v25  ;;  %v3688_v6 = vadd.f32 %v3683_v26, %v6244_v52  ;;  %v5112_v7 = vpop.f32.mrb[75].mxu0  ;;  %3853 = vmatpush1.bf16.msra.mxu1 %v5309_v37  ;;  %v5312_v52 = vld [vmem:[%s6752_s11 + $0x90] ss:$8 sps:$4 sm:$0xff]   ;;  %4821 = vmatpush3.bf16.msra.mxu0 %v5344_v63  ;;  %v5350_v63 = vld [vmem:[%s6758_s17 + $0x8] sm:$0xff]  }
0x1da2   :  { %3854 = vmatprep.subr.bf16.mxu1 %v5314_v43  ;;  %v5346_v25 = vld [vmem:[%s6754_s13 + $0xb0] sm:$0xff]   ;;  %v5348_v26 = vld [vmem:[%s6754_s13 + $0xb8] sm:$0xff]  }
0x1da3   :  { %v6565_v22 = vadd.f32 %v4523_v15, %v3688_v6  ;;  %3703 = vadd.xlane.f32.xlu0 %v6562_v5  ;;  %v5345_v15 = vld [vmem:[%s6754_s13 + $0xf0] sm:$0xff]   ;;  %v4544_v6 = vld [vmem:[%s6753_s12 + $0x2] sm:$0x3] }
0x1da4   :  { %4822 = vmatprep.subr.bf16.mxu0 %v5345_v15  ;;  %v3765_v7 = vrot.slane %v4544_v6, %v5894_v20  ;;  %v3769_v37 = vrot.slane %v4544_v6, %v5886_v16  ;;  %v5351_v15 = vld [vmem:[%s6758_s17 + $0x10] sm:$0xff]  }
0x1da5   :  { %3705 = vadd.xlane.f32.xlu1 %v6565_v22  ;;  %3855 = vmatpush1.bf16.msra.mxu1 %v5312_v52  ;;  %v5355_v6 = vld [vmem:[%s6758_s17 + $0x30] sm:$0xff]  }
0x1da6   :  { %3856 = vmatprep.subr.bf16.mxu1 %v5317_v12  ;;  %4823 = vmatpush3.bf16.msra.mxu0 %v5346_v25  ;;  %v5352_v25 = vld [vmem:[%s6758_s17 + $0x18] sm:$0xff]  }
0x1da7   :  { %4824 = vmatprep.subr.bf16.mxu0 %v5347_v2  ;;  %v5353_v2 = vld [vmem:[%s6758_s17 + $0x20] sm:$0xff]  }
0x1da9   :  { %3857 = vmatpush1.bf16.msra.mxu1 %v5315_v38 }
0x1daa   :  { %3858 = vmatprep.subr.bf16.mxu1 %v5320_v61  ;;  %4825 = vmatpush3.bf16.msra.mxu0 %v5348_v26  ;;  %v5354_v26 = vld [vmem:[%s6758_s17 + $0x28] sm:$0xff]  }
0x1dad   :  { %3859 = vmatpush1.bf16.msra.mxu1 %v5318_v13 }
0x1dae   :  { %3860 = vmatprep.subr.bf16.mxu1 %v5323_v57 }
0x1db1   :  { %3861 = vmatpush1.bf16.msra.mxu1 %v5321_v14 }
0x1db2   :  { %3862 = vmatprep.subr.bf16.mxu1 %v5326_v17 }
0x1db5   :  { %3863 = vmatpush1.bf16.msra.mxu1 %v5324_v19 }
0x1db6   :  { %3864 = vmatprep.subr.bf16.mxu1 %v5329_v59 }
0x1db9   :  { %3865 = vmatpush1.bf16.msra.mxu1 %v5327_v18 }
0x1dba   :  { %3866 = vmatprep.subr.bf16.mxu1 %v5332_v21 }
0x1dbd   :  { %3867 = vmatpush1.bf16.msra.mxu1 %v5330_v4 }
0x1dbe   :  { %5113 = vmatprep.subr.bf16.mxu1 %v5479_v29 }
0x1e30   :  { %v3704_v8 = vpop.xlane.xlu0 %3703 }
0x1e31   :  { %v3707_v36 = vmul.f32 0.0078125, %v3704_v8 }
0x1e32   :  { %v3706_v40 = vpop.xlane.xlu1 %3705 }
0x1e33   :  { %v3709_v9 = vsub.f32 %v6562_v5, %v3707_v36  ;;  %v3708_v46 = vmul.f32 0.0078125, %v3706_v40 }
0x1e35   :  { %v3710_v50 = vsub.f32 %v6565_v22, %v3708_v46  ;;  %v3711_v10 = vmul.f32 %v3709_v9, %v3709_v9 }
0x1e37   :  { %3713 = vadd.xlane.f32.xlu0 %v3711_v10  ;;  %v3712_v11 = vmul.f32 %v3710_v50, %v3710_v50 }
0x1e3b   :  { %3715 = vadd.xlane.f32.xlu0 %v3712_v11 }
0x1ec4   :  { %v3714_v41 = vpop.xlane.xlu0 %3713 }
0x1ec5   :  { %v3717_v3 = vmul.f32 0.0078125, %v3714_v41 }
0x1ec7   :  { %v3719_v28 = vadd.f32 1e-06, %v3717_v3 }
0x1ec8   :  { %v3716_v30 = vpop.xlane.xlu0 %3715 }
0x1ec9   :  { %5441 = vrsqrt.f32 %v3719_v28  ;;  %v3718_v31 = vmul.f32 0.0078125, %v3716_v30 }
0x1ecb   :  { %v3720_v32 = vadd.f32 1e-06, %v3718_v31 }
0x1ecd   :  { %5443 = vrsqrt.f32 %v3720_v32  ;;  %v4594_v32 = vld [vmem:[%s6755_s14 + $0x1] ss:$0 sm:$0xff] }
0x1ed3   :  { %v5442_v60 = vpop.eup %5441 }
0x1ed4   :  { %v3723_v33 = vmul.f32 %v5442_v60, %v3709_v9 }
0x1ed6   :  { %v3731_v39 = vmul.f32 %v4526_v34, %v3723_v33 }
0x1ed7   :  { %v5444_v1 = vpop.eup %5443 }
0x1ed8   :  { %v3724_v35 = vmul.f32 %v5444_v1, %v3710_v50  ;;  %v3739_v47 = vadd.f32 %v4527_v42, %v3731_v39 }
0x1eda   :  { %v3732_v44 = vmul.f32 %v4526_v34, %v3724_v35 }
0x1edc   :  { %v3740_v48 = vadd.f32 %v4527_v42, %v3732_v44 }
0x1ede   :  { %v3741_v49 = vpack.c.bf16 %v3740_v48, %v3739_v47 }
0x1ee0   :  { %3885 = vmatmul.mubr.bf16.vlgmr.msra.gmra.mrb[96].mxu1 %v3741_v49 }
0x1ee1   :  { %5129 = vmatprep.mubr.msk.bf16.mxu1 %vm5481_vm0, %v5479_v29 }
0x1fb3   :  { %v3886_v51 = vpop.f32.mrb[96].mxu1 }
0x1fb4   :  { %v3887_v43 = vadd.f32 %v3886_v51, %v3765_v7  ;;  %v3888_v52 = vpop.f32.mrb[97].mxu1 }
0x1fb5   :  { %v3889_v8 = vadd.f32 %v3888_v52, %v3769_v37  ;;  %v3890_v36 = vpop.f32.mrb[98].mxu1 }
0x1fb6   :  { %v3899_v40 = vmul.f32 0.70710677, %v3887_v43  ;;  %v3891_v9 = vadd.f32 %v3890_v36, %v3765_v7  ;;  %v3892_v46 = vpop.f32.mrb[99].mxu1  ;;  %v3895_v14 = vmul.f32 0.5, %v3887_v43  ;;  %v5356_v7 = vld [vmem:[%s6758_s17 + $0x38] sm:$0xff]  }
0x1fb7   :  { %v3900_v50 = vmul.f32 0.70710677, %v3889_v8  ;;  %v3893_v10 = vadd.f32 %v3892_v46, %v3769_v37  ;;  %v3896_v59 = vmul.f32 0.5, %v3889_v8  ;;  %v4611_v8 = vld [vmem:[%s6756_s15] ss:$0 sm:$0xff] }
0x1fb8   :  { %5445 = verf.f32 %v3899_v40  ;;  %v3901_v11 = vmul.f32 0.70710677, %v3891_v9  ;;  %v3897_v17 = vmul.f32 0.5, %v3891_v9  ;;  %v4612_v9 = vld [vmem:[%s6757_s16] ss:$0 sm:$0xff]  ;;  %s4279_s16 = sshll.u32 %s5486_s8, 4  ;;  %s4280_s16 = int_to_ptr.vmem [resolvable:$true] %s4279_s16 }
0x1fb9   :  { %5447 = verf.f32 %v3900_v50  ;;  %v3902_v12 = vmul.f32 0.70710677, %v3893_v10  ;;  %v3898_v18 = vmul.f32 0.5, %v3893_v10  ;;  %s5455_s6 = scalar_lea.vmem %s4280_s16, 32  ;;  %p5460_p1 = scmp.lt.s32.totalorder %s4280_s16, %s4280_s16 }
0x1fba   :  { %5449 = verf.f32 %v3901_v11  ;;  %p5456_p0 = scmp.ne.s32.totalorder %s4280_s16, %s5455_s6  ;;  %p5461_p2 = scmp.lt.s32.totalorder %s5455_s6, %s5455_s6 }
0x1fbb   :  { %5451 = verf.f32 %v3902_v12 }
0x1fbc   :  { %p5462_p3 = por %p5461_p2, %p5460_p1 }
0x1fbe   :  { %p5463_p4 = pnand %p5462_p3, %p5456_p0 }
0x1fc2   :  { %v5446_v38 = vpop.eup %5445 }
0x1fc3   :  { %v5448_v20 = vpop.eup %5447  ;;  %v3907_v61 = vadd.f32 1.0, %v5446_v38 }
0x1fc4   :  { %v5450_v16 = vpop.eup %5449  ;;  %v3908_v13 = vadd.f32 1.0, %v5448_v20 }
0x1fc5   :  { %v5452_v57 = vpop.eup %5451  ;;  %v3909_v19 = vadd.f32 1.0, %v5450_v16  ;;  %v3911_v4 = vmul.f32 %v3907_v61, %v3895_v14  ;;  %v4613_v14 = vld [vmem:[%s6759_s18] ss:$0 sm:$0xff] }
0x1fc6   :  { %v3910_v21 = vadd.f32 1.0, %v5452_v57  ;;  %v3912_v23 = vmul.f32 %v3908_v13, %v3896_v59 }
0x1fc7   :  { %v3913_v45 = vmul.f32 %v3909_v19, %v3897_v17 }
0x1fc8   :  { %v3914_v24 = vmul.f32 %v3910_v21, %v3898_v18 }
0x1fc9   :  { %v3915_v27 = vpack.c.bf16 %v3913_v45, %v3911_v4 }
0x1fca   :  { %v3916_v41 = vpack.c.bf16 %v3914_v24, %v3912_v23 }
0x1fcc   :  { %4086 = vmatprep.mubr.bf16.mxu0 %v3916_v41 }
0x1fcd   :  { %4087 = vmatmul.mubr.bf16.vlgmr.msra.gmra.mrb[76].mxu0 %v3915_v27 }
0x20a0   :  { %v4826_v3 = vpop.f32.mrb[76].mxu0 }
0x20a1   :  { %v4827_v28 = vpop.f32.mrb[77].mxu0 }
0x20a2   :  { %v4828_v30 = vadd.f32 %v4827_v28, %v4826_v3  ;;  %v4829_v31 = vpop.f32.mrb[78].mxu0 }
0x20a3   :  { %v4830_v60 = vpop.f32.mrb[79].mxu0 }
0x20a4   :  { %v4831_v33 = vadd.f32 %v4830_v60, %v4829_v31  ;;  %v4089_v34 = vadd.f32 %v4828_v30, %v4594_v32 }
0x20a6   :  { %v4092_v1 = vadd.f32 %v4831_v33, %v4594_v32  ;;  %v4095_v39 = vadd.f32 %v4089_v34, %v6562_v5  ;;  %v5349_v5 = vld [vmem:[%s6758_s17] sm:$0xff]  }
0x20a7   :  { %5114 = vmatpush3.bf16.msra.mxu1 %v5349_v5 }
0x20a8   :  { %v4096_v35 = vadd.f32 %v4092_v1, %v6565_v22  ;;  %5115 = vmatprep.subr.bf16.mxu1 %v5479_v29 }
0x20aa   :  { %v4101_v42 = vrot.slane %v4096_v35, 7 }
0x20ab   :  { %5116 = vmatpush3.bf16.msra.mxu1 %v5350_v63 }
0x20ac   :  { %v4103_v44 = vsel %vm4102_vm8, %v4101_v42, %v4095_v39  ;;  %5117 = vmatprep.subr.bf16.mxu1 %v5479_v29 }
0x20ad   :  { %v4106_v47 = vsel %vm4105_vm9, %v4103_v44, 0.0 }
0x20ae   :  { %4107 = vadd.xlane.f32.xlu0 %v4106_v47 }
0x20af   :  { %5118 = vmatpush3.bf16.msra.mxu1 %v5351_v15 }
0x20b0   :  { %5119 = vmatprep.subr.bf16.mxu1 %v5479_v29 }
0x20b3   :  { %5120 = vmatpush3.bf16.msra.mxu1 %v5352_v25 }
0x20b4   :  { %5121 = vmatprep.subr.bf16.mxu1 %v5479_v29 }
0x20b7   :  { %5122 = vmatpush3.bf16.msra.mxu1 %v5353_v2 }
0x20b8   :  { %5123 = vmatprep.subr.bf16.mxu1 %v5479_v29 }
0x20bb   :  { %5124 = vmatpush3.bf16.msra.mxu1 %v5354_v26 }
0x20bc   :  { %5125 = vmatprep.subr.bf16.mxu1 %v5479_v29 }
0x20bf   :  { %5126 = vmatpush3.bf16.msra.mxu1 %v5355_v6 }
0x20c0   :  { %5127 = vmatprep.subr.bf16.mxu1 %v5479_v29 }
0x20c3   :  { %5128 = vmatpush3.bf16.msra.mxu1 %v5356_v7 }
0x213b   :  { %v4108_v48 = vpop.xlane.xlu0 %4107 }
0x213c   :  { %v4109_v49 = vmul.f32 0.0078125, %v4108_v48 }
0x213e   :  { %v4111_v53 = vrot.slane %v4109_v49, 1  ;;  %v4114_v54 = vsub.f32 %v4095_v39, %v4109_v49 }
0x2140   :  { %v4115_v55 = vsub.f32 %v4096_v35, %v4111_v53  ;;  %v4116_v56 = vmul.f32 %v4114_v54, %v4114_v54 }
0x2142   :  { %v4117_v0 = vmul.f32 %v4115_v55, %v4115_v55 }
0x2144   :  { %v4120_v58 = vrot.slane %v4117_v0, 7 }
0x2146   :  { %v4121_v62 = vsel %vm4102_vm8, %v4120_v58, %v4116_v56 }
0x2147   :  { %v4123_v22 = vsel %vm4105_vm9, %v4121_v62, 0.0 }
0x2148   :  { %4124 = vadd.xlane.f32.xlu1 %v4123_v22 }
0x21d5   :  { %v4125_v37 = vpop.xlane.xlu1 %4124 }
0x21d6   :  { %v4126_v51 = vmul.f32 0.0078125, %v4125_v37 }
0x21d8   :  { %v4127_v43 = vadd.f32 1e-06, %v4126_v51 }
0x21da   :  { %5453 = vrsqrt.f32 %v4127_v43 }
0x21e4   :  { %v5454_v52 = vpop.eup %5453 }
0x21e5   :  { %v4130_v36 = vrot.slane %v5454_v52, 1  ;;  %v4133_v40 = vmul.f32 %v5454_v52, %v4114_v54 }
0x21e7   :  { %v4134_v46 = vmul.f32 %v4130_v36, %v4115_v55  ;;  %v4141_v50 = vmul.f32 %v4611_v8, %v4133_v40 }
0x21e9   :  { %v4142_v10 = vmul.f32 %v4611_v8, %v4134_v46  ;;  %v4149_v29 = vadd.f32 %v4612_v9, %v4141_v50 }
0x21eb   :  { %v4150_v11 = vadd.f32 %v4612_v9, %v4142_v10  ;;  %v4151_v12 = vpack.c.bf16 %v4149_v29, %v4149_v29 }
0x21ed   :  { %v4152_v38 = vpack.c.bf16 %v4150_v11, %v4150_v11  ;;  %v4178_v61 = vunpack.c.l.b16 %v4151_v12 }
0x21ef   :  { %v4179_v20 = vunpack.c.l.b16 %v4152_v38 }
0x21f1   :  { %v4180_v16 = vrot.slane %v4179_v20, 7 }
0x21f3   :  { %v4181_v13 = vsel %vm4102_vm8, %v4180_v16, %v4178_v61 }
0x21f4   :  { %v4182_v57 = vpack.c.b16 %v4181_v13, %v4181_v13 }
0x21f6   :  { %5130 = vmatmul.mubr.bf16.vlgmr.msra.gmra.mrb[100].mxu1 %v4182_v57 }
0x22c9   :  { %v4266_v17 = vpop.f32.mrb[100].mxu1 }
0x22ca   :  { %v4267_v19 = vadd.f32 %v4613_v14, %v4266_v17  ;;  %v5131_v59 = vpop.f32.mrb[101].mxu1 }
0x22cb   :  { %v4269_v18 = vpop.f32.mrb[102].mxu1 }
0x22cc   :  { %4272 = vst [vmem:[#allocation3] sm:$0x3] %v4267_v19  ;;  %v5132_v21 = vpop.f32.mrb[103].mxu1 }
0x22cd   :  { %5466 = shalt.err (!%p5463_p4)
}
0x22ce   :  { %s5467_s18 = scalar_lea.hbm %s6760_s19, 32 }
0x22cf   :  { %p5468_p5 = scmp.ne.s32.totalorder %s6760_s19, %s5467_s18  ;;  %p5471_p6 = scmp.lt.u32.totalorder %s5467_s18, %s6760_s19 }
0x22d1   :  { %p5473_p7 = pnand %p5471_p6, %p5468_p5 }
0x22d3   :  { %5476 = shalt.err (!%p5473_p7)
}
0x22d4   :  { %4282 = dma.vmem_to_hbm [thread:$0]  %s4280_s16, 32, %s6760_s19, [#allocation4]  }
0x22d5   :  { %5477 = dma.done.wait [#allocation4], 32  }
0x22d6   :  { %5478 = vsyncadd [#allocation4], 4294967264 }
0x22d7   :  { %4286 = vsyncpa [#allocation4], 1 }

</bundles_post_ra>
